<compile_context>
chip_gen: v5e
topology: v5e:2x2
jax: 0.10.0
libtpu: 0.0.40
codegen_flags: <defaults>
</compile_context>

<pallas_src>
import math

import jax
import jax.numpy as jnp
from jax.experimental import pallas as pl
from jax.experimental.pallas import tpu as pltpu

EPS = 1e-5
H = W = 8
HW = H * W


# ----------------------------------------------------------------------------
# Pallas kernel: full forward pass (3x3 convs, 1x1 conv, linears, tanh)
# ----------------------------------------------------------------------------
def _reversi_kernel(x_ref, w1_ref, b1_ref, w2_ref, b2_ref, w3_ref, b3_ref,
                    w4_ref, b4_ref, wc0_ref, wc1_ref, b5_ref, w6_ref, b6_ref,
                    out_ref, s1_ref, s2_ref):
    TB = x_ref.shape[0]

    def conv3x3_relu(src_ref, w_ref, b_ref):
        # src_ref: (TB, 8, 10, Cin) bf16.  Column w holds column w of the
        # zero-padded 10-wide image; columns 0 and 9 are never written (may be
        # garbage) and are masked to zero here, so no scratch zero-fill or
        # cross-step halo maintenance is ever needed (megacore safe).
        # w_ref: (3, 3*Cin, Cout) bf16 row-im2col weights (row = dj*Cin + c).
        cin = src_ref.shape[3]
        rows = src_ref[...]                                   # one dense read
        wcol = jax.lax.broadcasted_iota(jnp.int32, (8, cin), 0).reshape(1, 1, 8, cin)
        left = jnp.where(wcol >= 1, rows[:, :, 0:8, :], 0.0)    # tap dj = 0
        center = rows[:, :, 1:9, :]                              # tap dj = 1
        right = jnp.where(wcol <= 6, rows[:, :, 2:10, :], 0.0)   # tap dj = 2
        x3 = jnp.concatenate([left, center, right], axis=-1)    # (TB,8,8,3Cin)

        zrow = jnp.zeros((TB, 1, 8, 3 * cin), x3.dtype)
        acc = None
        for di in range(3):                                      # kernel rows
            if di == 0:
                slab = jnp.concatenate([zrow, x3[:, 0:7]], axis=1)
            elif di == 1:
                slab = x3
            else:
                slab = jnp.concatenate([x3[:, 1:8], zrow], axis=1)
            contrib = jnp.dot(slab.reshape(TB * HW, 3 * cin), w_ref[di],
                              preferred_element_type=jnp.float32)
            acc = contrib if acc is None else acc + contrib
        return jnp.maximum(acc + b_ref[...], 0.0)               # (TB*64, Cout) f32

    # conv_l1 block 1: 4 -> 32
    h1 = conv3x3_relu(x_ref, w1_ref, b1_ref)
    s1_ref[:, :, 1:9, :] = h1.reshape(TB, 8, 8, 32).astype(s1_ref.dtype)

    # conv_l1 block 2: 32 -> 64
    h2 = conv3x3_relu(s1_ref, w2_ref, b2_ref)
    s2_ref[:, :, 1:9, :] = h2.reshape(TB, 8, 8, 64).astype(s2_ref.dtype)

    # conv_l1 block 3: 64 -> 128
    h3 = conv3x3_relu(s2_ref, w3_ref, b3_ref)                   # (TB*64, 128)

    # conv_l2: 1x1 conv 128 -> 2 (+ folded BN) + ReLU (tiny, kept f32)
    r = jnp.maximum(jnp.dot(h3, w4_ref[...],
                            preferred_element_type=jnp.float32) + b4_ref[...],
                    0.0)                                         # (TB*64, 2)

    # NCHW flatten + Linear(128->64) (+ folded BN1d) + ReLU, without the
    # O(B^2) selector: split channels, broadcast against (64,64) weight halves
    # and reduce over the 64 spatial positions.
    r3 = r.reshape(TB, HW, 2)
    t = (r3[:, :, 0:1] * wc0_ref[...][None, :, :] +
         r3[:, :, 1:2] * wc1_ref[...][None, :, :])               # (TB, 64, 64)
    lin1 = jnp.sum(t, axis=1)                                    # (TB, 64)
    h5 = jnp.maximum(lin1 + b5_ref[...], 0.0)

    # Linear(64 -> 1) + tanh
    out = jnp.dot(h5, w6_ref[...],
                  preferred_element_type=jnp.float32) + b6_ref[...]
    out_ref[...] = jnp.tanh(out)


# ----------------------------------------------------------------------------
# Parameter init (matches the PyTorch module structure)
# ----------------------------------------------------------------------------
def init_params(key):
    ks = jax.random.split(key, 32)
    it = iter(range(32))

    def nk():
        return ks[next(it)]

    def conv_p(cin, cout, ksz):
        w = jax.random.normal(nk(), (cout, cin, ksz, ksz),
                              jnp.float32) * math.sqrt(2.0 / (cin * ksz * ksz))
        b = 0.1 * jax.random.normal(nk(), (cout,), jnp.float32)
        return w, b

    def bn_p(c):
        gamma = 1.0 + 0.1 * jax.random.normal(nk(), (c,), jnp.float32)
        beta = 0.1 * jax.random.normal(nk(), (c,), jnp.float32)
        mean = 0.1 * jax.random.normal(nk(), (c,), jnp.float32)
        var = jax.random.uniform(nk(), (c,), jnp.float32, 0.5, 1.5)
        return gamma, beta, mean, var

    p = {}
    p['c1'] = conv_p(4, 32, 3);    p['bn1'] = bn_p(32)
    p['c2'] = conv_p(32, 64, 3);   p['bn2'] = bn_p(64)
    p['c3'] = conv_p(64, 128, 3);  p['bn3'] = bn_p(128)
    p['c4'] = conv_p(128, 2, 1);   p['bn4'] = bn_p(2)
    w5 = jax.random.normal(nk(), (64, 128), jnp.float32) * math.sqrt(2.0 / 128)
    b5 = 0.1 * jax.random.normal(nk(), (64,), jnp.float32)
    p['l5'] = (w5, b5);            p['bn5'] = bn_p(64)
    w6 = jax.random.normal(nk(), (1, 64), jnp.float32) * math.sqrt(2.0 / 64)
    b6 = 0.1 * jax.random.normal(nk(), (1,), jnp.float32)
    p['l6'] = (w6, b6)
    return p


# ----------------------------------------------------------------------------
# One-time preprocessing: BN folding, im2col weight packing (hoisted out of
# the per-call forward path).
# ----------------------------------------------------------------------------
def _fold_conv_bn(w, b, bn):
    # w: torch layout (Cout, Cin, kh, kw) -> folded (kh, kw, Cin, Cout)
    gamma, beta, mean, var = bn
    scale = gamma / jnp.sqrt(var + EPS)                      # (Cout,)
    wf = jnp.transpose(w, (2, 3, 1, 0)) * scale              # (kh, kw, Cin, Cout)
    bf = (b - mean) * scale + beta
    return wf, bf.reshape(1, -1)


def prepare_params(params):
    def conv3x3(cname, bnname):
        wf, bf = _fold_conv_bn(*params[cname], params[bnname])
        kh, kw, cin, cout = wf.shape
        # row-im2col packing: (3, 3*Cin, Cout), row index = dj*Cin + c
        return wf.reshape(kh, kw * cin, cout).astype(jnp.bfloat16), bf

    w1, b1 = conv3x3('c1', 'bn1')
    w2, b2 = conv3x3('c2', 'bn2')
    w3, b3 = conv3x3('c3', 'bn3')

    wf4, b4 = _fold_conv_bn(*params['c4'], params['bn4'])    # 1x1 conv
    w4 = wf4.reshape(128, 2)

    w5, b5 = params['l5']
    g5, be5, m5, v5 = params['bn5']
    s5 = g5 / jnp.sqrt(v5 + EPS)
    w5f = w5 * s5[:, None]                                   # (64, 128)
    b5f = ((b5 - m5) * s5 + be5).reshape(1, 64)
    wc0 = w5f[:, :HW].T                                      # (64, 64) channel 0
    wc1 = w5f[:, HW:].T                                      # (64, 64) channel 1

    w6, b6 = params['l6']
    return dict(w1=w1, b1=b1, w2=w2, b2=b2, w3=w3, b3=b3,
                w4=w4, b4=b4, wc0=wc0, wc1=wc1, b5=b5f,
                w6=w6.T, b6=b6.reshape(1, 1))


# ----------------------------------------------------------------------------
# Forward wrapper: batch-tiled grid, weights resident via constant index_map
# ----------------------------------------------------------------------------
def reversi_critic_forward(x_nchw, fp):
    B = x_nchw.shape[0]
    x = jnp.transpose(x_nchw, (0, 2, 3, 1)).astype(jnp.bfloat16)   # NHWC bf16
    xw = jnp.pad(x, ((0, 0), (0, 0), (1, 1), (0, 0)))              # (B,8,10,4)

    TB = B if B <= 8 else 8
    Bp = ((B + TB - 1) // TB) * TB
    if Bp != B:
        xw = jnp.pad(xw, ((0, Bp - B), (0, 0), (0, 0), (0, 0)))

    def wspec(shape):
        return pl.BlockSpec(shape, lambda b: (0,) * len(shape))

    out = pl.pallas_call(
        _reversi_kernel,
        out_shape=jax.ShapeDtypeStruct((Bp, 1), jnp.float32),
        grid=(Bp // TB,),
        in_specs=[
            pl.BlockSpec((TB, 8, 10, 4), lambda b: (b, 0, 0, 0)),
            wspec((3, 12, 32)), wspec((1, 32)),
            wspec((3, 96, 64)), wspec((1, 64)),
            wspec((3, 192, 128)), wspec((1, 128)),
            wspec((128, 2)), wspec((1, 2)),
            wspec((64, 64)), wspec((64, 64)), wspec((1, 64)),
            wspec((64, 1)), wspec((1, 1)),
        ],
        out_specs=pl.BlockSpec((TB, 1), lambda b: (b, 0)),
        scratch_shapes=[pltpu.VMEM((TB, 8, 10, 32), jnp.bfloat16),
                        pltpu.VMEM((TB, 8, 10, 64), jnp.bfloat16)],
        compiler_params=pltpu.CompilerParams(
            dimension_semantics=("parallel",),
            vmem_limit_bytes=32 * 1024 * 1024),
    )(xw, fp['w1'], fp['b1'], fp['w2'], fp['b2'], fp['w3'], fp['b3'],
      fp['w4'], fp['b4'], fp['wc0'], fp['wc1'], fp['b5'], fp['w6'], fp['b6'])
    return out[:B]


# ----------------------------------------------------------------------------
# Pure-JAX reference (PyTorch NCHW semantics, BN in eval mode)
# ----------------------------------------------------------------------------
def reference_forward(x, p):
    def conv_bn_relu(x, wb, bn, pad):
        w, b = wb
        y = jax.lax.conv_general_dilated(
            x, w, (1, 1), [(pad, pad), (pad, pad)],
            dimension_numbers=('NCHW', 'OIHW', 'NCHW'))
        y = y + b[None, :, None, None]
        g, be, m, v = bn
        y = ((y - m[None, :, None, None]) /
             jnp.sqrt(v[None, :, None, None] + EPS) *
             g[None, :, None, None] + be[None, :, None, None])
        return jnp.maximum(y, 0.0)

    x = conv_bn_relu(x, p['c1'], p['bn1'], 1)
    x = conv_bn_relu(x, p['c2'], p['bn2'], 1)
    x = conv_bn_relu(x, p['c3'], p['bn3'], 1)
    x = conv_bn_relu(x, p['c4'], p['bn4'], 0)
    x = x.reshape(x.shape[0], -1)
    w5, b5 = p['l5']
    g5, be5, m5, v5 = p['bn5']
    x = x @ w5.T + b5
    x = (x - m5) / jnp.sqrt(v5 + EPS) * g5 + be5
    x = jnp.maximum(x, 0.0)
    w6, b6 = p['l6']
    x = x @ w6.T + b6
    return jnp.tanh(x)


if __name__ == "__main__":
    key = jax.random.PRNGKey(0)
    kp, kx = jax.random.split(key)
    params = init_params(kp)

    # One-time parameter preprocessing (hoisted out of the per-step path).
    prepped = prepare_params(params)

    B = 2
    x = jax.random.normal(kx, (B, 4, 8, 8), jnp.float32)      # NCHW like PyTorch

    fwd = jax.jit(reversi_critic_forward)
    out = jax.block_until_ready(fwd(x, prepped))

    ref = jax.block_until_ready(reference_forward(x, params))
    assert out.shape == (B, 1)
    if not bool(jnp.allclose(out, ref, atol=5e-2, rtol=0.0)):
        raise SystemExit(f"MISMATCH:\nkernel={out}\nref={ref}")
    print("KERNEL_OK")
</pallas_src>

<mosaic_0001>
module attributes {stable_mosaic.version = 11 : i64} {
  func.func @_reversi_kernel(%arg0: i32, %arg1: memref<2x8x10x4xbf16, #tpu.memory_space<vmem>>, %arg2: memref<3x12x32xbf16, #tpu.memory_space<vmem>>, %arg3: memref<1x32xf32, #tpu.memory_space<vmem>>, %arg4: memref<3x96x64xbf16, #tpu.memory_space<vmem>>, %arg5: memref<1x64xf32, #tpu.memory_space<vmem>>, %arg6: memref<3x192x128xbf16, #tpu.memory_space<vmem>>, %arg7: memref<1x128xf32, #tpu.memory_space<vmem>>, %arg8: memref<128x2xf32, #tpu.memory_space<vmem>>, %arg9: memref<1x2xf32, #tpu.memory_space<vmem>>, %arg10: memref<64x64xf32, #tpu.memory_space<vmem>>, %arg11: memref<64x64xf32, #tpu.memory_space<vmem>>, %arg12: memref<1x64xf32, #tpu.memory_space<vmem>>, %arg13: memref<64x1xf32, #tpu.memory_space<vmem>>, %arg14: memref<1x1xf32, #tpu.memory_space<vmem>>, %arg15: memref<2x1xf32, #tpu.memory_space<vmem>>, %arg16: memref<2x8x10x32xbf16, #tpu.memory_space<vmem>>, %arg17: memref<2x8x10x64xbf16, #tpu.memory_space<vmem>>) attributes {dimension_semantics = [#tpu.dimension_semantics<parallel>], iteration_bounds = array<i64: 1>, scalar_prefetch = 0 : i64, scratch_operands = 2 : i64, tpu.core_type = #tpu.core_type<tc>, window_params = [{transform_indices = @transform_0, window_bounds = array<i64: 2, 8, 10, 4>}, {pipeline_mode = #tpu.pipeline_mode<synchronous>, transform_indices = @transform_1, window_bounds = array<i64: 3, 12, 32>}, {pipeline_mode = #tpu.pipeline_mode<synchronous>, transform_indices = @transform_2, window_bounds = array<i64: 1, 32>}, {pipeline_mode = #tpu.pipeline_mode<synchronous>, transform_indices = @transform_3, window_bounds = array<i64: 3, 96, 64>}, {pipeline_mode = #tpu.pipeline_mode<synchronous>, transform_indices = @transform_4, window_bounds = array<i64: 1, 64>}, {pipeline_mode = #tpu.pipeline_mode<synchronous>, transform_indices = @transform_5, window_bounds = array<i64: 3, 192, 128>}, {pipeline_mode = #tpu.pipeline_mode<synchronous>, transform_indices = @transform_6, window_bounds = array<i64: 1, 128>}, {pipeline_mode = #tpu.pipeline_mode<synchronous>, transform_indices = @transform_7, window_bounds = array<i64: 128, 2>}, {pipeline_mode = #tpu.pipeline_mode<synchronous>, transform_indices = @transform_8, window_bounds = array<i64: 1, 2>}, {pipeline_mode = #tpu.pipeline_mode<synchronous>, transform_indices = @transform_9, window_bounds = array<i64: 64, 64>}, {pipeline_mode = #tpu.pipeline_mode<synchronous>, transform_indices = @transform_10, window_bounds = array<i64: 64, 64>}, {pipeline_mode = #tpu.pipeline_mode<synchronous>, transform_indices = @transform_11, window_bounds = array<i64: 1, 64>}, {pipeline_mode = #tpu.pipeline_mode<synchronous>, transform_indices = @transform_12, window_bounds = array<i64: 64, 1>}, {pipeline_mode = #tpu.pipeline_mode<synchronous>, transform_indices = @transform_13, window_bounds = array<i64: 1, 1>}, {transform_indices = @transform_14, window_bounds = array<i64: 2, 1>}]} {
    %c0 = arith.constant 0 : index
    %c0_0 = arith.constant 0 : index
    %c0_1 = arith.constant 0 : index
    %c0_2 = arith.constant 0 : index
    %0 = vector.load %arg1[%c0, %c0_0, %c0_1, %c0_2] : memref<2x8x10x4xbf16, #tpu.memory_space<vmem>>, vector<2x8x10x4xbf16>
    %1 = tpu.iota {dimensions = array<i32: 0>} : vector<8x4xi32>
    %2 = vector.shape_cast %1 : vector<8x4xi32> to vector<1x1x8x4xi32>
    %c1_i32 = arith.constant 1 : i32
    %3 = vector.broadcast %c1_i32 : i32 to vector<1x1x8x4xi32>
    %4 = arith.cmpi sge, %2, %3 : vector<1x1x8x4xi32>
    %5 = vector.extract_strided_slice %0 {offsets = [0, 0, 0, 0], sizes = [2, 8, 8, 4], strides = [1, 1, 1, 1]} : vector<2x8x10x4xbf16> to vector<2x8x8x4xbf16>
    %cst = arith.constant 0.000000e+00 : f32
    %6 = arith.truncf %cst : f32 to bf16
    %7 = vector.shape_cast %4 : vector<1x1x8x4xi1> to vector<1x1x8x4xi1>
    %8 = vector.broadcast %7 : vector<1x1x8x4xi1> to vector<2x8x8x4xi1>
    %9 = vector.broadcast %6 : bf16 to vector<2x8x8x4xbf16>
    %10 = arith.select %8, %5, %9 : vector<2x8x8x4xi1>, vector<2x8x8x4xbf16>
    %11 = vector.extract_strided_slice %0 {offsets = [0, 0, 1, 0], sizes = [2, 8, 8, 4], strides = [1, 1, 1, 1]} : vector<2x8x10x4xbf16> to vector<2x8x8x4xbf16>
    %c6_i32 = arith.constant 6 : i32
    %12 = vector.broadcast %c6_i32 : i32 to vector<1x1x8x4xi32>
    %13 = arith.cmpi sle, %2, %12 : vector<1x1x8x4xi32>
    %14 = vector.extract_strided_slice %0 {offsets = [0, 0, 2, 0], sizes = [2, 8, 8, 4], strides = [1, 1, 1, 1]} : vector<2x8x10x4xbf16> to vector<2x8x8x4xbf16>
    %cst_3 = arith.constant 0.000000e+00 : f32
    %15 = arith.truncf %cst_3 : f32 to bf16
    %16 = vector.shape_cast %13 : vector<1x1x8x4xi1> to vector<1x1x8x4xi1>
    %17 = vector.broadcast %16 : vector<1x1x8x4xi1> to vector<2x8x8x4xi1>
    %18 = vector.broadcast %15 : bf16 to vector<2x8x8x4xbf16>
    %19 = arith.select %17, %14, %18 : vector<2x8x8x4xi1>, vector<2x8x8x4xbf16>
    %20 = tpu.concatenate %10, %11, %19 in 3 : vector<2x8x8x4xbf16>, vector<2x8x8x4xbf16>, vector<2x8x8x4xbf16> -> vector<2x8x8x12xbf16>
    %cst_4 = arith.constant 0.000000e+00 : bf16
    %21 = vector.broadcast %cst_4 : bf16 to vector<2x1x8x12xbf16>
    %22 = vector.extract_strided_slice %20 {offsets = [0, 0, 0, 0], sizes = [2, 7, 8, 12], strides = [1, 1, 1, 1]} : vector<2x8x8x12xbf16> to vector<2x7x8x12xbf16>
    %23 = tpu.concatenate %21, %22 in 1 : vector<2x1x8x12xbf16>, vector<2x7x8x12xbf16> -> vector<2x8x8x12xbf16>
    %24 = vector.shape_cast %23 : vector<2x8x8x12xbf16> to vector<128x12xbf16>
    %c0_5 = arith.constant 0 : index
    %c0_6 = arith.constant 0 : index
    %c0_7 = arith.constant 0 : index
    %25 = vector.load %arg2[%c0_5, %c0_6, %c0_7] : memref<3x12x32xbf16, #tpu.memory_space<vmem>>, vector<1x12x32xbf16>
    %26 = vector.shape_cast %25 : vector<1x12x32xbf16> to vector<12x32xbf16>
    %cst_8 = arith.constant dense<0.000000e+00> : vector<128x32xf32>
    %27 = tpu.matmul %24, %26, %cst_8 {dimension_numbers = #tpu.dot_dimension_numbers<[1], [0], [0], [1], [0, 0, 1, 1], [], []>} : vector<128x12xbf16>, vector<12x32xbf16>, vector<128x32xf32> -> vector<128x32xf32>
    %28 = vector.shape_cast %20 : vector<2x8x8x12xbf16> to vector<128x12xbf16>
    %c1 = arith.constant 1 : index
    %c0_9 = arith.constant 0 : index
    %c0_10 = arith.constant 0 : index
    %29 = vector.load %arg2[%c1, %c0_9, %c0_10] : memref<3x12x32xbf16, #tpu.memory_space<vmem>>, vector<1x12x32xbf16>
    %30 = vector.shape_cast %29 : vector<1x12x32xbf16> to vector<12x32xbf16>
    %cst_11 = arith.constant dense<0.000000e+00> : vector<128x32xf32>
    %31 = tpu.matmul %28, %30, %cst_11 {dimension_numbers = #tpu.dot_dimension_numbers<[1], [0], [0], [1], [0, 0, 1, 1], [], []>} : vector<128x12xbf16>, vector<12x32xbf16>, vector<128x32xf32> -> vector<128x32xf32>
    %32 = arith.addf %27, %31 : vector<128x32xf32>
    %33 = vector.extract_strided_slice %20 {offsets = [0, 1, 0, 0], sizes = [2, 7, 8, 12], strides = [1, 1, 1, 1]} : vector<2x8x8x12xbf16> to vector<2x7x8x12xbf16>
    %34 = tpu.concatenate %33, %21 in 1 : vector<2x7x8x12xbf16>, vector<2x1x8x12xbf16> -> vector<2x8x8x12xbf16>
    %35 = vector.shape_cast %34 : vector<2x8x8x12xbf16> to vector<128x12xbf16>
    %c2 = arith.constant 2 : index
    %c0_12 = arith.constant 0 : index
    %c0_13 = arith.constant 0 : index
    %36 = vector.load %arg2[%c2, %c0_12, %c0_13] : memref<3x12x32xbf16, #tpu.memory_space<vmem>>, vector<1x12x32xbf16>
    %37 = vector.shape_cast %36 : vector<1x12x32xbf16> to vector<12x32xbf16>
    %cst_14 = arith.constant dense<0.000000e+00> : vector<128x32xf32>
    %38 = tpu.matmul %35, %37, %cst_14 {dimension_numbers = #tpu.dot_dimension_numbers<[1], [0], [0], [1], [0, 0, 1, 1], [], []>} : vector<128x12xbf16>, vector<12x32xbf16>, vector<128x32xf32> -> vector<128x32xf32>
    %39 = arith.addf %32, %38 : vector<128x32xf32>
    %c0_15 = arith.constant 0 : index
    %c0_16 = arith.constant 0 : index
    %40 = vector.load %arg3[%c0_15, %c0_16] : memref<1x32xf32, #tpu.memory_space<vmem>>, vector<1x32xf32>
    %41 = vector.broadcast %40 : vector<1x32xf32> to vector<128x32xf32>
    %42 = arith.addf %39, %41 : vector<128x32xf32>
    %cst_17 = arith.constant 0.000000e+00 : f32
    %43 = vector.broadcast %cst_17 : f32 to vector<128x32xf32>
    %44 = arith.maximumf %42, %43 : vector<128x32xf32>
    %45 = vector.shape_cast %44 : vector<128x32xf32> to vector<2x8x8x32xf32>
    %46 = arith.truncf %45 : vector<2x8x8x32xf32> to vector<2x8x8x32xbf16>
    %c0_18 = arith.constant 0 : index
    %c0_19 = arith.constant 0 : index
    %c1_20 = arith.constant 1 : index
    %c0_21 = arith.constant 0 : index
    %47 = vector.load %arg16[%c0_18, %c0_19, %c1_20, %c0_21] : memref<2x8x10x32xbf16, #tpu.memory_space<vmem>>, vector<2x8x8x32xbf16>
    tpu.vector_store %arg16[%c0_18, %c0_19, %c1_20, %c0_21], %46 {strides = array<i32>} : memref<2x8x10x32xbf16, #tpu.memory_space<vmem>>, vector<2x8x8x32xbf16>,
    %c0_22 = arith.constant 0 : index
    %c0_23 = arith.constant 0 : index
    %c0_24 = arith.constant 0 : index
    %c0_25 = arith.constant 0 : index
    %48 = vector.load %arg16[%c0_22, %c0_23, %c0_24, %c0_25] : memref<2x8x10x32xbf16, #tpu.memory_space<vmem>>, vector<2x8x10x32xbf16>
    %49 = tpu.iota {dimensions = array<i32: 0>} : vector<8x32xi32>
    %50 = vector.shape_cast %49 : vector<8x32xi32> to vector<1x1x8x32xi32>
    %c1_i32_26 = arith.constant 1 : i32
    %51 = vector.broadcast %c1_i32_26 : i32 to vector<1x1x8x32xi32>
    %52 = arith.cmpi sge, %50, %51 : vector<1x1x8x32xi32>
    %53 = vector.extract_strided_slice %48 {offsets = [0, 0, 0, 0], sizes = [2, 8, 8, 32], strides = [1, 1, 1, 1]} : vector<2x8x10x32xbf16> to vector<2x8x8x32xbf16>
    %cst_27 = arith.constant 0.000000e+00 : f32
    %54 = arith.truncf %cst_27 : f32 to bf16
    %55 = vector.shape_cast %52 : vector<1x1x8x32xi1> to vector<1x1x8x32xi1>
    %56 = vector.broadcast %55 : vector<1x1x8x32xi1> to vector<2x8x8x32xi1>
    %57 = vector.broadcast %54 : bf16 to vector<2x8x8x32xbf16>
    %58 = arith.select %56, %53, %57 : vector<2x8x8x32xi1>, vector<2x8x8x32xbf16>
    %59 = vector.extract_strided_slice %48 {offsets = [0, 0, 1, 0], sizes = [2, 8, 8, 32], strides = [1, 1, 1, 1]} : vector<2x8x10x32xbf16> to vector<2x8x8x32xbf16>
    %c6_i32_28 = arith.constant 6 : i32
    %60 = vector.broadcast %c6_i32_28 : i32 to vector<1x1x8x32xi32>
    %61 = arith.cmpi sle, %50, %60 : vector<1x1x8x32xi32>
    %62 = vector.extract_strided_slice %48 {offsets = [0, 0, 2, 0], sizes = [2, 8, 8, 32], strides = [1, 1, 1, 1]} : vector<2x8x10x32xbf16> to vector<2x8x8x32xbf16>
    %cst_29 = arith.constant 0.000000e+00 : f32
    %63 = arith.truncf %cst_29 : f32 to bf16
    %64 = vector.shape_cast %61 : vector<1x1x8x32xi1> to vector<1x1x8x32xi1>
    %65 = vector.broadcast %64 : vector<1x1x8x32xi1> to vector<2x8x8x32xi1>
    %66 = vector.broadcast %63 : bf16 to vector<2x8x8x32xbf16>
    %67 = arith.select %65, %62, %66 : vector<2x8x8x32xi1>, vector<2x8x8x32xbf16>
    %68 = tpu.concatenate %58, %59, %67 in 3 : vector<2x8x8x32xbf16>, vector<2x8x8x32xbf16>, vector<2x8x8x32xbf16> -> vector<2x8x8x96xbf16>
    %cst_30 = arith.constant 0.000000e+00 : bf16
    %69 = vector.broadcast %cst_30 : bf16 to vector<2x1x8x96xbf16>
    %70 = vector.extract_strided_slice %68 {offsets = [0, 0, 0, 0], sizes = [2, 7, 8, 96], strides = [1, 1, 1, 1]} : vector<2x8x8x96xbf16> to vector<2x7x8x96xbf16>
    %71 = tpu.concatenate %69, %70 in 1 : vector<2x1x8x96xbf16>, vector<2x7x8x96xbf16> -> vector<2x8x8x96xbf16>
    %72 = vector.shape_cast %71 : vector<2x8x8x96xbf16> to vector<128x96xbf16>
    %c0_31 = arith.constant 0 : index
    %c0_32 = arith.constant 0 : index
    %c0_33 = arith.constant 0 : index
    %73 = vector.load %arg4[%c0_31, %c0_32, %c0_33] : memref<3x96x64xbf16, #tpu.memory_space<vmem>>, vector<1x96x64xbf16>
    %74 = vector.shape_cast %73 : vector<1x96x64xbf16> to vector<96x64xbf16>
    %cst_34 = arith.constant dense<0.000000e+00> : vector<128x64xf32>
    %75 = tpu.matmul %72, %74, %cst_34 {dimension_numbers = #tpu.dot_dimension_numbers<[1], [0], [0], [1], [0, 0, 1, 1], [], []>} : vector<128x96xbf16>, vector<96x64xbf16>, vector<128x64xf32> -> vector<128x64xf32>
    %76 = vector.shape_cast %68 : vector<2x8x8x96xbf16> to vector<128x96xbf16>
    %c1_35 = arith.constant 1 : index
    %c0_36 = arith.constant 0 : index
    %c0_37 = arith.constant 0 : index
    %77 = vector.load %arg4[%c1_35, %c0_36, %c0_37] : memref<3x96x64xbf16, #tpu.memory_space<vmem>>, vector<1x96x64xbf16>
    %78 = vector.shape_cast %77 : vector<1x96x64xbf16> to vector<96x64xbf16>
    %cst_38 = arith.constant dense<0.000000e+00> : vector<128x64xf32>
    %79 = tpu.matmul %76, %78, %cst_38 {dimension_numbers = #tpu.dot_dimension_numbers<[1], [0], [0], [1], [0, 0, 1, 1], [], []>} : vector<128x96xbf16>, vector<96x64xbf16>, vector<128x64xf32> -> vector<128x64xf32>
    %80 = arith.addf %75, %79 : vector<128x64xf32>
    %81 = vector.extract_strided_slice %68 {offsets = [0, 1, 0, 0], sizes = [2, 7, 8, 96], strides = [1, 1, 1, 1]} : vector<2x8x8x96xbf16> to vector<2x7x8x96xbf16>
    %82 = tpu.concatenate %81, %69 in 1 : vector<2x7x8x96xbf16>, vector<2x1x8x96xbf16> -> vector<2x8x8x96xbf16>
    %83 = vector.shape_cast %82 : vector<2x8x8x96xbf16> to vector<128x96xbf16>
    %c2_39 = arith.constant 2 : index
    %c0_40 = arith.constant 0 : index
    %c0_41 = arith.constant 0 : index
    %84 = vector.load %arg4[%c2_39, %c0_40, %c0_41] : memref<3x96x64xbf16, #tpu.memory_space<vmem>>, vector<1x96x64xbf16>
    %85 = vector.shape_cast %84 : vector<1x96x64xbf16> to vector<96x64xbf16>
    %cst_42 = arith.constant dense<0.000000e+00> : vector<128x64xf32>
    %86 = tpu.matmul %83, %85, %cst_42 {dimension_numbers = #tpu.dot_dimension_numbers<[1], [0], [0], [1], [0, 0, 1, 1], [], []>} : vector<128x96xbf16>, vector<96x64xbf16>, vector<128x64xf32> -> vector<128x64xf32>
    %87 = arith.addf %80, %86 : vector<128x64xf32>
    %c0_43 = arith.constant 0 : index
    %c0_44 = arith.constant 0 : index
    %88 = vector.load %arg5[%c0_43, %c0_44] : memref<1x64xf32, #tpu.memory_space<vmem>>, vector<1x64xf32>
    %89 = vector.broadcast %88 : vector<1x64xf32> to vector<128x64xf32>
    %90 = arith.addf %87, %89 : vector<128x64xf32>
    %cst_45 = arith.constant 0.000000e+00 : f32
    %91 = vector.broadcast %cst_45 : f32 to vector<128x64xf32>
    %92 = arith.maximumf %90, %91 : vector<128x64xf32>
    %93 = vector.shape_cast %92 : vector<128x64xf32> to vector<2x8x8x64xf32>
    %94 = arith.truncf %93 : vector<2x8x8x64xf32> to vector<2x8x8x64xbf16>
    %c0_46 = arith.constant 0 : index
    %c0_47 = arith.constant 0 : index
    %c1_48 = arith.constant 1 : index
    %c0_49 = arith.constant 0 : index
    %95 = vector.load %arg17[%c0_46, %c0_47, %c1_48, %c0_49] : memref<2x8x10x64xbf16, #tpu.memory_space<vmem>>, vector<2x8x8x64xbf16>
    tpu.vector_store %arg17[%c0_46, %c0_47, %c1_48, %c0_49], %94 {strides = array<i32>} : memref<2x8x10x64xbf16, #tpu.memory_space<vmem>>, vector<2x8x8x64xbf16>,
    %c0_50 = arith.constant 0 : index
    %c0_51 = arith.constant 0 : index
    %c0_52 = arith.constant 0 : index
    %c0_53 = arith.constant 0 : index
    %96 = vector.load %arg17[%c0_50, %c0_51, %c0_52, %c0_53] : memref<2x8x10x64xbf16, #tpu.memory_space<vmem>>, vector<2x8x10x64xbf16>
    %97 = tpu.iota {dimensions = array<i32: 0>} : vector<8x64xi32>
    %98 = vector.shape_cast %97 : vector<8x64xi32> to vector<1x1x8x64xi32>
    %c1_i32_54 = arith.constant 1 : i32
    %99 = vector.broadcast %c1_i32_54 : i32 to vector<1x1x8x64xi32>
    %100 = arith.cmpi sge, %98, %99 : vector<1x1x8x64xi32>
    %101 = vector.extract_strided_slice %96 {offsets = [0, 0, 0, 0], sizes = [2, 8, 8, 64], strides = [1, 1, 1, 1]} : vector<2x8x10x64xbf16> to vector<2x8x8x64xbf16>
    %cst_55 = arith.constant 0.000000e+00 : f32
    %102 = arith.truncf %cst_55 : f32 to bf16
    %103 = vector.shape_cast %100 : vector<1x1x8x64xi1> to vector<1x1x8x64xi1>
    %104 = vector.broadcast %103 : vector<1x1x8x64xi1> to vector<2x8x8x64xi1>
    %105 = vector.broadcast %102 : bf16 to vector<2x8x8x64xbf16>
    %106 = arith.select %104, %101, %105 : vector<2x8x8x64xi1>, vector<2x8x8x64xbf16>
    %107 = vector.extract_strided_slice %96 {offsets = [0, 0, 1, 0], sizes = [2, 8, 8, 64], strides = [1, 1, 1, 1]} : vector<2x8x10x64xbf16> to vector<2x8x8x64xbf16>
    %c6_i32_56 = arith.constant 6 : i32
    %108 = vector.broadcast %c6_i32_56 : i32 to vector<1x1x8x64xi32>
    %109 = arith.cmpi sle, %98, %108 : vector<1x1x8x64xi32>
    %110 = vector.extract_strided_slice %96 {offsets = [0, 0, 2, 0], sizes = [2, 8, 8, 64], strides = [1, 1, 1, 1]} : vector<2x8x10x64xbf16> to vector<2x8x8x64xbf16>
    %cst_57 = arith.constant 0.000000e+00 : f32
    %111 = arith.truncf %cst_57 : f32 to bf16
    %112 = vector.shape_cast %109 : vector<1x1x8x64xi1> to vector<1x1x8x64xi1>
    %113 = vector.broadcast %112 : vector<1x1x8x64xi1> to vector<2x8x8x64xi1>
    %114 = vector.broadcast %111 : bf16 to vector<2x8x8x64xbf16>
    %115 = arith.select %113, %110, %114 : vector<2x8x8x64xi1>, vector<2x8x8x64xbf16>
    %116 = tpu.concatenate %106, %107, %115 in 3 : vector<2x8x8x64xbf16>, vector<2x8x8x64xbf16>, vector<2x8x8x64xbf16> -> vector<2x8x8x192xbf16>
    %cst_58 = arith.constant 0.000000e+00 : bf16
    %117 = vector.broadcast %cst_58 : bf16 to vector<2x1x8x192xbf16>
    %118 = vector.extract_strided_slice %116 {offsets = [0, 0, 0, 0], sizes = [2, 7, 8, 192], strides = [1, 1, 1, 1]} : vector<2x8x8x192xbf16> to vector<2x7x8x192xbf16>
    %119 = tpu.concatenate %117, %118 in 1 : vector<2x1x8x192xbf16>, vector<2x7x8x192xbf16> -> vector<2x8x8x192xbf16>
    %120 = vector.shape_cast %119 : vector<2x8x8x192xbf16> to vector<128x192xbf16>
    %c0_59 = arith.constant 0 : index
    %c0_60 = arith.constant 0 : index
    %c0_61 = arith.constant 0 : index
    %121 = vector.load %arg6[%c0_59, %c0_60, %c0_61] : memref<3x192x128xbf16, #tpu.memory_space<vmem>>, vector<1x192x128xbf16>
    %122 = vector.shape_cast %121 : vector<1x192x128xbf16> to vector<192x128xbf16>
    %cst_62 = arith.constant dense<0.000000e+00> : vector<128x128xf32>
    %123 = tpu.matmul %120, %122, %cst_62 {dimension_numbers = #tpu.dot_dimension_numbers<[1], [0], [0], [1], [0, 0, 1, 1], [], []>} : vector<128x192xbf16>, vector<192x128xbf16>, vector<128x128xf32> -> vector<128x128xf32>
    %124 = vector.shape_cast %116 : vector<2x8x8x192xbf16> to vector<128x192xbf16>
    %c1_63 = arith.constant 1 : index
    %c0_64 = arith.constant 0 : index
    %c0_65 = arith.constant 0 : index
    %125 = vector.load %arg6[%c1_63, %c0_64, %c0_65] : memref<3x192x128xbf16, #tpu.memory_space<vmem>>, vector<1x192x128xbf16>
    %126 = vector.shape_cast %125 : vector<1x192x128xbf16> to vector<192x128xbf16>
    %cst_66 = arith.constant dense<0.000000e+00> : vector<128x128xf32>
    %127 = tpu.matmul %124, %126, %cst_66 {dimension_numbers = #tpu.dot_dimension_numbers<[1], [0], [0], [1], [0, 0, 1, 1], [], []>} : vector<128x192xbf16>, vector<192x128xbf16>, vector<128x128xf32> -> vector<128x128xf32>
    %128 = arith.addf %123, %127 : vector<128x128xf32>
    %129 = vector.extract_strided_slice %116 {offsets = [0, 1, 0, 0], sizes = [2, 7, 8, 192], strides = [1, 1, 1, 1]} : vector<2x8x8x192xbf16> to vector<2x7x8x192xbf16>
    %130 = tpu.concatenate %129, %117 in 1 : vector<2x7x8x192xbf16>, vector<2x1x8x192xbf16> -> vector<2x8x8x192xbf16>
    %131 = vector.shape_cast %130 : vector<2x8x8x192xbf16> to vector<128x192xbf16>
    %c2_67 = arith.constant 2 : index
    %c0_68 = arith.constant 0 : index
    %c0_69 = arith.constant 0 : index
    %132 = vector.load %arg6[%c2_67, %c0_68, %c0_69] : memref<3x192x128xbf16, #tpu.memory_space<vmem>>, vector<1x192x128xbf16>
    %133 = vector.shape_cast %132 : vector<1x192x128xbf16> to vector<192x128xbf16>
    %cst_70 = arith.constant dense<0.000000e+00> : vector<128x128xf32>
    %134 = tpu.matmul %131, %133, %cst_70 {dimension_numbers = #tpu.dot_dimension_numbers<[1], [0], [0], [1], [0, 0, 1, 1], [], []>} : vector<128x192xbf16>, vector<192x128xbf16>, vector<128x128xf32> -> vector<128x128xf32>
    %135 = arith.addf %128, %134 : vector<128x128xf32>
    %c0_71 = arith.constant 0 : index
    %c0_72 = arith.constant 0 : index
    %136 = vector.load %arg7[%c0_71, %c0_72] : memref<1x128xf32, #tpu.memory_space<vmem>>, vector<1x128xf32>
    %137 = vector.broadcast %136 : vector<1x128xf32> to vector<128x128xf32>
    %138 = arith.addf %135, %137 : vector<128x128xf32>
    %cst_73 = arith.constant 0.000000e+00 : f32
    %139 = vector.broadcast %cst_73 : f32 to vector<128x128xf32>
    %140 = arith.maximumf %138, %139 : vector<128x128xf32>
    %c0_74 = arith.constant 0 : index
    %c0_75 = arith.constant 0 : index
    %141 = vector.load %arg8[%c0_74, %c0_75] : memref<128x2xf32, #tpu.memory_space<vmem>>, vector<128x2xf32>
    %cst_76 = arith.constant dense<0.000000e+00> : vector<128x2xf32>
    %142 = tpu.matmul %140, %141, %cst_76 {dimension_numbers = #tpu.dot_dimension_numbers<[1], [0], [0], [1], [0, 0, 1, 1], [], []>} : vector<128x128xf32>, vector<128x2xf32>, vector<128x2xf32> -> vector<128x2xf32>
    %c0_77 = arith.constant 0 : index
    %c0_78 = arith.constant 0 : index
    %143 = vector.load %arg9[%c0_77, %c0_78] : memref<1x2xf32, #tpu.memory_space<vmem>>, vector<1x2xf32>
    %144 = vector.broadcast %143 : vector<1x2xf32> to vector<128x2xf32>
    %145 = arith.addf %142, %144 : vector<128x2xf32>
    %cst_79 = arith.constant 0.000000e+00 : f32
    %146 = vector.broadcast %cst_79 : f32 to vector<128x2xf32>
    %147 = arith.maximumf %145, %146 : vector<128x2xf32>
    %148 = vector.shape_cast %147 : vector<128x2xf32> to vector<2x64x2xf32>
    %149 = vector.extract_strided_slice %148 {offsets = [0, 0, 0], sizes = [2, 64, 1], strides = [1, 1, 1]} : vector<2x64x2xf32> to vector<2x64x1xf32>
    %c0_80 = arith.constant 0 : index
    %c0_81 = arith.constant 0 : index
    %150 = vector.load %arg10[%c0_80, %c0_81] : memref<64x64xf32, #tpu.memory_space<vmem>>, vector<64x64xf32>
    %151 = vector.shape_cast %150 : vector<64x64xf32> to vector<1x64x64xf32>
    %152 = vector.broadcast %149 : vector<2x64x1xf32> to vector<2x64x64xf32>
    %153 = vector.broadcast %151 : vector<1x64x64xf32> to vector<2x64x64xf32>
    %154 = arith.mulf %152, %153 : vector<2x64x64xf32>
    %155 = vector.extract_strided_slice %148 {offsets = [0, 0, 1], sizes = [2, 64, 1], strides = [1, 1, 1]} : vector<2x64x2xf32> to vector<2x64x1xf32>
    %c0_82 = arith.constant 0 : index
    %c0_83 = arith.constant 0 : index
    %156 = vector.load %arg11[%c0_82, %c0_83] : memref<64x64xf32, #tpu.memory_space<vmem>>, vector<64x64xf32>
    %157 = vector.shape_cast %156 : vector<64x64xf32> to vector<1x64x64xf32>
    %158 = vector.broadcast %155 : vector<2x64x1xf32> to vector<2x64x64xf32>
    %159 = vector.broadcast %157 : vector<1x64x64xf32> to vector<2x64x64xf32>
    %160 = arith.mulf %158, %159 : vector<2x64x64xf32>
    %161 = arith.addf %154, %160 : vector<2x64x64xf32>
    %cst_84 = arith.constant dense<0.000000e+00> : vector<2x64xf32>
    %162 = vector.multi_reduction <add>, %161, %cst_84 [1] : vector<2x64x64xf32> to vector<2x64xf32>
    %c0_85 = arith.constant 0 : index
    %c0_86 = arith.constant 0 : index
    %163 = vector.load %arg12[%c0_85, %c0_86] : memref<1x64xf32, #tpu.memory_space<vmem>>, vector<1x64xf32>
    %164 = vector.broadcast %163 : vector<1x64xf32> to vector<2x64xf32>
    %165 = arith.addf %162, %164 : vector<2x64xf32>
    %cst_87 = arith.constant 0.000000e+00 : f32
    %166 = vector.broadcast %cst_87 : f32 to vector<2x64xf32>
    %167 = arith.maximumf %165, %166 : vector<2x64xf32>
    %c0_88 = arith.constant 0 : index
    %c0_89 = arith.constant 0 : index
    %168 = vector.load %arg13[%c0_88, %c0_89] : memref<64x1xf32, #tpu.memory_space<vmem>>, vector<64x1xf32>
    %cst_90 = arith.constant dense<0.000000e+00> : vector<2x1xf32>
    %169 = tpu.matmul %167, %168, %cst_90 {dimension_numbers = #tpu.dot_dimension_numbers<[1], [0], [0], [1], [0, 0, 1, 1], [], []>} : vector<2x64xf32>, vector<64x1xf32>, vector<2x1xf32> -> vector<2x1xf32>
    %c0_91 = arith.constant 0 : index
    %c0_92 = arith.constant 0 : index
    %170 = vector.load %arg14[%c0_91, %c0_92] : memref<1x1xf32, #tpu.memory_space<vmem>>, vector<1x1xf32>
    %171 = vector.broadcast %170 : vector<1x1xf32> to vector<2x1xf32>
    %172 = arith.addf %169, %171 : vector<2x1xf32>
    %173 = math.tanh %172 : vector<2x1xf32>
    %c0_93 = arith.constant 0 : index
    %c0_94 = arith.constant 0 : index
    %174 = vector.load %arg15[%c0_93, %c0_94] : memref<2x1xf32, #tpu.memory_space<vmem>>, vector<2x1xf32>
    tpu.vector_store %arg15[%c0_93, %c0_94], %173 {strides = array<i32>} : memref<2x1xf32, #tpu.memory_space<vmem>>, vector<2x1xf32>,
    return
  }
  func.func @transform_0(%arg0: i32) -> (i32, i32, i32, i32) {
    %c0_i32 = arith.constant 0 : i32
    %c0_i32_0 = arith.constant 0 : i32
    %c0_i32_1 = arith.constant 0 : i32
    %c0_i32_2 = arith.constant 0 : i32
    return %arg0, %c0_i32, %c0_i32_0, %c0_i32_1 : i32, i32, i32, i32
  }
  func.func @transform_1(%arg0: i32) -> (i32, i32, i32) {
    %c0_i32 = arith.constant 0 : i32
    %c0_i32_0 = arith.constant 0 : i32
    %c0_i32_1 = arith.constant 0 : i32
    %c0_i32_2 = arith.constant 0 : i32
    return %c0_i32, %c0_i32_0, %c0_i32_1 : i32, i32, i32
  }
  func.func @transform_2(%arg0: i32) -> (i32, i32) {
    %c0_i32 = arith.constant 0 : i32
    %c0_i32_0 = arith.constant 0 : i32
    %c0_i32_1 = arith.constant 0 : i32
    return %c0_i32, %c0_i32_0 : i32, i32
  }
  func.func @transform_3(%arg0: i32) -> (i32, i32, i32) {
    %c0_i32 = arith.constant 0 : i32
    %c0_i32_0 = arith.constant 0 : i32
    %c0_i32_1 = arith.constant 0 : i32
    %c0_i32_2 = arith.constant 0 : i32
    return %c0_i32, %c0_i32_0, %c0_i32_1 : i32, i32, i32
  }
  func.func @transform_4(%arg0: i32) -> (i32, i32) {
    %c0_i32 = arith.constant 0 : i32
    %c0_i32_0 = arith.constant 0 : i32
    %c0_i32_1 = arith.constant 0 : i32
    return %c0_i32, %c0_i32_0 : i32, i32
  }
  func.func @transform_5(%arg0: i32) -> (i32, i32, i32) {
    %c0_i32 = arith.constant 0 : i32
    %c0_i32_0 = arith.constant 0 : i32
    %c0_i32_1 = arith.constant 0 : i32
    %c0_i32_2 = arith.constant 0 : i32
    return %c0_i32, %c0_i32_0, %c0_i32_1 : i32, i32, i32
  }
  func.func @transform_6(%arg0: i32) -> (i32, i32) {
    %c0_i32 = arith.constant 0 : i32
    %c0_i32_0 = arith.constant 0 : i32
    %c0_i32_1 = arith.constant 0 : i32
    return %c0_i32, %c0_i32_0 : i32, i32
  }
  func.func @transform_7(%arg0: i32) -> (i32, i32) {
    %c0_i32 = arith.constant 0 : i32
    %c0_i32_0 = arith.constant 0 : i32
    %c0_i32_1 = arith.constant 0 : i32
    return %c0_i32, %c0_i32_0 : i32, i32
  }
  func.func @transform_8(%arg0: i32) -> (i32, i32) {
    %c0_i32 = arith.constant 0 : i32
    %c0_i32_0 = arith.constant 0 : i32
    %c0_i32_1 = arith.constant 0 : i32
    return %c0_i32, %c0_i32_0 : i32, i32
  }
  func.func @transform_9(%arg0: i32) -> (i32, i32) {
    %c0_i32 = arith.constant 0 : i32
    %c0_i32_0 = arith.constant 0 : i32
    %c0_i32_1 = arith.constant 0 : i32
    return %c0_i32, %c0_i32_0 : i32, i32
  }
  func.func @transform_10(%arg0: i32) -> (i32, i32) {
    %c0_i32 = arith.constant 0 : i32
    %c0_i32_0 = arith.constant 0 : i32
    %c0_i32_1 = arith.constant 0 : i32
    return %c0_i32, %c0_i32_0 : i32, i32
  }
  func.func @transform_11(%arg0: i32) -> (i32, i32) {
    %c0_i32 = arith.constant 0 : i32
    %c0_i32_0 = arith.constant 0 : i32
    %c0_i32_1 = arith.constant 0 : i32
    return %c0_i32, %c0_i32_0 : i32, i32
  }
  func.func @transform_12(%arg0: i32) -> (i32, i32) {
    %c0_i32 = arith.constant 0 : i32
    %c0_i32_0 = arith.constant 0 : i32
    %c0_i32_1 = arith.constant 0 : i32
    return %c0_i32, %c0_i32_0 : i32, i32
  }
  func.func @transform_13(%arg0: i32) -> (i32, i32) {
    %c0_i32 = arith.constant 0 : i32
    %c0_i32_0 = arith.constant 0 : i32
    %c0_i32_1 = arith.constant 0 : i32
    return %c0_i32, %c0_i32_0 : i32, i32
  }
  func.func @transform_14(%arg0: i32) -> (i32, i32) {
    %c0_i32 = arith.constant 0 : i32
    %c0_i32_0 = arith.constant 0 : i32
    return %arg0, %c0_i32 : i32, i32
  }
}

</mosaic_0001>

<bundles_post_ra>
// kernel: reversi_critic_forward.1
= control target key start
LH: loop header
LB: loop body
LE: loop exit
PB: predicated region body
PF: predicated region fallthrough
CT: control target
= control target key end

     0   :  { %v84_v0 = vlaneseq  ;;  %v4820_v4 = vmov 0   ;;  %s4821_s25 = smov 4   ;;  %s4822_s28 = smov 8   ;;  %vm668_vm8 = vcmask 1045504   ;;  %vm511_vm11 = vcmask 31744   ;;  %s6692_s0 = inlined_call_operand.vmem [shape: bf16[2,8,10,4], index: 0, kind: input, shape index: {}]   ;;  %s6693_s1 = inlined_call_operand.vmem [shape: bf16[3,12,32], index: 1, kind: input, shape index: {}]   ;;  %s6694_s2 = inlined_call_operand.vmem [shape: f32[1,32], index: 2, kind: input, shape index: {}]   ;;  %s6695_s3 = inlined_call_operand.vmem [shape: bf16[3,96,64], index: 3, kind: input, shape index: {}]   ;;  %s6696_s4 = inlined_call_operand.vmem [shape: f32[1,64], index: 4, kind: input, shape index: {}]   ;;  %s6697_s5 = inlined_call_operand.vmem [shape: bf16[3,192,128], index: 5, kind: input, shape index: {}]   ;;  %s6698_s7 = inlined_call_operand.vmem [shape: f32[128,2], index: 7, kind: input, shape index: {}]   ;;  %s6699_s6 = inlined_call_operand.vmem [shape: f32[1,128], index: 6, kind: input, shape index: {}]   ;;  %s6700_s8 = inlined_call_operand.vmem [shape: f32[1,2], index: 8, kind: input, shape index: {}]   ;;  %s6701_s12 = inlined_call_operand.vmem [shape: f32[64,1], index: 12, kind: input, shape index: {}]   ;;  %s6702_s9 = inlined_call_operand.vmem [shape: f32[64,64], index: 9, kind: input, shape index: {}]   ;;  %s6703_s10 = inlined_call_operand.vmem [shape: f32[64,64], index: 10, kind: input, shape index: {}]   ;;  %s6704_s11 = inlined_call_operand.vmem [shape: f32[1,64], index: 11, kind: input, shape index: {}]   ;;  %s6705_s13 = inlined_call_operand.<no memory space> [shape: f32[1,1], index: 13, kind: input, shape index: {}]   ;;  %s6706_s14 = inlined_call_operand.vmem [shape: f32[2,1], index: 14, kind: output, shape index: {}]  }
   0x1   :  { %v4129_v1 = vld [vmem:[%s6692_s0 + $0x40] sm:$0xf]  ;;  %v4672_v2 = vld [vmem:[%s6692_s0 + $0x40] sm:$0x10]  ;;  %v4133_v3 = vld [vmem:[%s6692_s0 + $0x48] sm:$0xf]  ;;  %4778 = vset.pattern.permute.xlu1 %v4820_v4  ;;  %4780 = vset.pattern.permute.xlu2 %v4820_v4  ;;  %v4924_v15 = vunpack.c.l.b16 %v4820_v4  ;;  %v116_v19 = vunpack.c.h.b16 %v4820_v4 }
   0x2   :  { %v4130_v5 = vor.u32 %v4672_v2, %v4129_v1  ;;  %v4673_v6 = vld [vmem:[%s6692_s0 + $0x48] sm:$0x10]  ;;  %4784 = vset.pattern.permute.xlu0 %v4820_v4  ;;  %v4916_v8 = vshrl.u32 %v84_v0, 7  ;;  %v4137_v13 = vld [vmem:[%s6692_s0 + $0x50] sm:$0xf]  ;;  %vm560_vm12 = vcmask 64512  }
   0x3   :  { %v4134_v7 = vor.u32 %v4673_v6, %v4133_v3  ;;  %v4674_v16 = vld [vmem:[%s6692_s0 + $0x50] sm:$0x10]  ;;  %v4934_v23 = vld [vmem:[%s6692_s0 + $0x40] sm:$0xf]  ;;  %v69_v27 = vld [vmem:[%s6692_s0 + $0x44] sm:$0x1] }
   0x4   :  { %v296_v9 = vshrl.u32 %v4130_v5, 16  ;;  %v298_v10 = vshll.u32 %v4130_v5, 16  ;;  %vm106_vm0 = vcmp.le.s32.totalorder %v4916_v8, 6  ;;  %v4138_v20 = vor.u32 %v4674_v16, %v4137_v13  ;;  %v4942_v28 = vld [vmem:[%s6692_s0 + $0x50] sm:$0xf]  ;;  %s4823_s26 = smov 64  }
   0x5   :  { %v305_v11 = vshll.u32 %v4134_v7, 16  ;;  %vm109_vm1 = vmpackc.low %vm106_vm0, %vm106_vm0  ;;  %v303_v21 = vshrl.u32 %v4134_v7, 16  ;;  %v73_v33 = vld [vmem:[%s6692_s0 + $0x54] sm:$0x1]  ;;  %v4141_v34 = vld [vmem:[%s6692_s0 + $0x58] sm:$0xf] }
   0x6   :  { %v300_v12 = vrot.slane %v298_v10, 1  ;;  %v110_v14 = vsel %vm109_vm1, 65537, %v4820_v4  ;;  %v310_v29 = vshrl.u32 %v4138_v20, 16  ;;  %v312_v30 = vshll.u32 %v4138_v20, 16  ;;  %v4675_v35 = vld [vmem:[%s6692_s0 + $0x58] sm:$0x10] }
   0x7   :  { %v111_v18 = vrot.slane %v110_v14, 7  ;;  %v307_v22 = vrot.slane %v305_v11, 1  ;;  %v4961_v38 = vld [vmem:[%s6692_s0 + $0x48] sm:$0xf]  ;;  %v71_v39 = vld [vmem:[%s6692_s0 + $0x4c] sm:$0x1]  ;;  %v4142_v49 = vor.u32 %v4675_v35, %v4141_v34 }
   0x8   :  { %v301_v17 = vor.u32 %v300_v12, %v296_v9  ;;  %v314_v40 = vrot.slane %v312_v30, 1  ;;  %v4117_v46 = vld [vmem:[%s6692_s0 + $0x28] sm:$0xf]  ;;  %v4669_v47 = vld [vmem:[%s6692_s0 + $0x28] sm:$0x10]  ;;  %vm86_vm9 = vcmp.ge.s32.totalorder %v4916_v8, 1 }
   0x9   :  { %v112_v24 = vrot.slane %v111_v18, 4  ;;  %v113_v25 = vunpack.c.l.b16 %v111_v18  ;;  %v114_v26 = vunpack.c.h.b16 %v111_v18  ;;  %v308_v36 = vor.u32 %v307_v22, %v303_v21  ;;  %v4997_v61 = vld [vmem:[%s6692_s0 + $0x58] sm:$0xf]  ;;  %v4113_v0 = vld [vmem:[%s6692_s0 + $0x20] sm:$0xf]  ;;  %vm5271_vm10 = vmpackc.low %vm86_vm9, %vm86_vm9  ;;  %s4824_s27 = smov 32  }
   0xa   :  { %367 = vrot.lane.b32.xlu0 %v301_v17, %s4821_s25  ;;  %v315_v48 = vor.u32 %v314_v40, %v310_v29  ;;  %v4118_v56 = vor.u32 %v4669_v47, %v4117_v46  ;;  %v317_v62 = vshrl.u32 %v4142_v49, 16  ;;  %v319_v63 = vshll.u32 %v4142_v49, 16  ;;  %v4668_v1 = vld [vmem:[%s6692_s0 + $0x20] sm:$0x10]  ;;  %v75_v3 = vld [vmem:[%s6692_s0 + $0x5c] sm:$0x1] }
   0xb   :  { %vm117_vm2 = vcmp.ne.s32.totalorder %v113_v25, %v4924_v15  ;;  %vm118_vm3 = vcmp.ne.s32.totalorder %v114_v26, %v116_v19  ;;  %v120_v31 = vunpack.c.l.b16 %v112_v24  ;;  %v121_v32 = vunpack.c.h.b16 %v112_v24  ;;  %v4145_v5 = vld [vmem:[%s6692_s0 + $0x60] sm:$0xf]  ;;  %v4676_v9 = vld [vmem:[%s6692_s0 + $0x60] sm:$0x10]  ;;  %v5023_v17 = vld [vmem:[%s6692_s0 + $0x28] sm:$0xf] }
   0xc   :  { %vm4954_vm4 = vmpackc.low %vm118_vm3, %vm117_vm2  ;;  %371 = vrot.lane.b32.xlu2 %v315_v48, %s4821_s25  ;;  %v277_v7 = vshll.u32 %v4118_v56, 16  ;;  %v321_v10 = vrot.slane %v319_v63, 1  ;;  %v4114_v13 = vor.u32 %v4668_v1, %v4113_v0  ;;  %v4146_v18 = vor.u32 %v4676_v9, %v4145_v5  ;;  %v63_v20 = vld [vmem:[%s6692_s0 + $0x2c] sm:$0x1]  ;;  %v5060_v47 = vld [vmem:[%s6692_s0 + $0x60] sm:$0xf] }
   0xd   :  { %vm124_vm5 = vcmp.ne.s32.totalorder %v120_v31, %v4924_v15  ;;  %vm125_vm6 = vcmp.ne.s32.totalorder %v121_v32, %v116_v19  ;;  %v143_v41 = vsel %vm4954_vm4, %v4934_v23, 0  ;;  %v147_v42 = vsel %vm4954_vm4, %v4942_v28, 0  ;;  %v5036_v31 = vld [vmem:[%s6692_s0 + $0x20] sm:$0xf]  ;;  %v61_v32 = vld [vmem:[%s6692_s0 + $0x24] sm:$0x1] }
   0xe   :  { %vm4973_vm7 = vmpackc.low %vm125_vm6, %vm124_vm5  ;;  %v431_v44 = vunpack.c.l.b16 %v143_v41  ;;  %v435_v45 = vunpack.c.l.b16 %v147_v42  ;;  %v145_v52 = vsel %vm4954_vm4, %v4961_v38, 0  ;;  %v149_v12 = vsel %vm4954_vm4, %v4997_v61, 0  ;;  %v79_v46 = vld [vmem:[%s6692_s0 + $0x6c] sm:$0x1]  ;;  %v77_v48 = vld [vmem:[%s6692_s0 + $0x64] sm:$0x1] }
   0xf   :  { %v144_v50 = vsel %vm4973_vm7, %v69_v27, 0  ;;  %v148_v51 = vsel %vm4973_vm7, %v73_v33, 0  ;;  %v146_v53 = vsel %vm4973_vm7, %v71_v39, 0  ;;  %v433_v59 = vunpack.c.l.b16 %v145_v52  ;;  %v65_v9 = vld [vmem:[%s6692_s0 + $0x34] sm:$0x1] }
  0x10   :  { %v432_v54 = vunpack.c.l.b16 %v144_v50  ;;  %v436_v55 = vunpack.c.l.b16 %v148_v51  ;;  %v434_v60 = vunpack.c.l.b16 %v146_v53  ;;  %v150_v14 = vsel %vm4973_vm7, %v75_v3, 0  ;;  %v4763_v37 = vld [vmem:[%s6697_s5 + $0xf0] sm:$0xff] }
  0x11   :  { %v322_v16 = vor.u32 %v321_v10, %v317_v62  ;;  %v270_v19 = vshll.u32 %v4114_v13, 16  ;;  %v275_v21 = vshrl.u32 %v4118_v56, 16  ;;  %v279_v22 = vrot.slane %v277_v7, 1  ;;  %v5087_v7 = vld [vmem:[%s6692_s0 + $0x30] sm:$0xf] }
  0x12   :  { %369 = vrot.lane.b32.xlu0 %v308_v36, %s4821_s25  ;;  %v455_v57 = vpack.c.b16 %v432_v54, %v431_v44  ;;  %v457_v58 = vpack.c.b16 %v436_v55, %v435_v45  ;;  %v456_v11 = vpack.c.b16 %v434_v60, %v433_v59  ;;  %v437_v24 = vunpack.c.l.b16 %v149_v12  ;;  %v5052_v45 = vld [vmem:[%s6692_s0 + $0x68] sm:$0xf]  ;;  %v4677_v60 = vld [vmem:[%s6692_s0 + $0x68] sm:$0x10]  ;;  %v4125_v10 = vld [vmem:[%s6692_s0 + $0x38] sm:$0xf] }
  0x13   :  { %v268_v25 = vshrl.u32 %v4114_v13, 16  ;;  %v438_v27 = vunpack.c.l.b16 %v150_v14  ;;  %v272_v29 = vrot.slane %v270_v19, 1  ;;  %v137_v30 = vsel %vm4954_vm4, %v5023_v17, 0  ;;  %v4149_v59 = vld [vmem:[%s6692_s0 + $0x68] sm:$0xf] }
  0x14   :  { %v471_v2 = vrot.slane %v455_v57, 1  ;;  %v473_v6 = vrot.slane %v457_v58, 1  ;;  %373 = vrot.lane.b32.xlu2 %v322_v16, %s4821_s25  ;;  %v472_v26 = vrot.slane %v456_v11, 1  ;;  %v138_v33 = vsel %vm4973_vm7, %v63_v20, 0  ;;  %v4671_v11 = vld [vmem:[%s6692_s0 + $0x38] sm:$0x10] }
  0x15   :  { %v326_v34 = vshll.u32 %v4146_v18, 16  ;;  %v280_v35 = vor.u32 %v279_v22, %v275_v21  ;;  %v273_v36 = vor.u32 %v272_v29, %v268_v25  ;;  %v425_v39 = vunpack.c.l.b16 %v137_v30  ;;  %v4121_v21 = vld [vmem:[%s6692_s0 + $0x30] sm:$0xf]  ;;  %v4670_v22 = vld [vmem:[%s6692_s0 + $0x30] sm:$0x10] }
  0x16   :  { %495 = vrot.lane.b32.xlu1 %v471_v2, %s4822_s28  ;;  %v426_v40 = vunpack.c.l.b16 %v138_v33  ;;  %v458_v41 = vpack.c.b16 %v438_v27, %v437_v24  ;;  %v135_v42 = vsel %vm4954_vm4, %v5036_v31, 0  ;;  %v136_v44 = vsel %vm4973_vm7, %v61_v32, 0  ;;  %v4105_v25 = vld [vmem:[%s6692_s0 + $0x10] sm:$0xf]  ;;  %v4666_v29 = vld [vmem:[%s6692_s0 + $0x10] sm:$0x10] }
  0x17   :  { %v324_v49 = vshrl.u32 %v4146_v18, 16  ;;  %v328_v50 = vrot.slane %v326_v34, 1  ;;  %v423_v51 = vunpack.c.l.b16 %v135_v42  ;;  %v424_v52 = vunpack.c.l.b16 %v136_v44 }
  0x18   :  { %v153_v53 = vsel %vm4954_vm4, %v5052_v45, 0  ;;  %v452_v54 = vpack.c.b16 %v426_v40, %v425_v39  ;;  %v474_v55 = vrot.slane %v458_v41, 1  ;;  %v154_v56 = vsel %vm4973_vm7, %v79_v46, 0  ;;  %v4101_v39 = vld [vmem:[%s6692_s0 + $0x8] sm:$0xf] }
  0x19   :  { %v151_v57 = vsel %vm4954_vm4, %v5060_v47, 0  ;;  %v152_v58 = vsel %vm4973_vm7, %v77_v48, 0  ;;  %v329_v62 = vor.u32 %v328_v50, %v324_v49  ;;  %v441_v63 = vunpack.c.l.b16 %v153_v53  ;;  %v4665_v40 = vld [vmem:[%s6692_s0 + $0x8] sm:$0x10]  ;;  %v5129_v50 = vld [vmem:[%s6692_s0 + $0x38] sm:$0xf] }
  0x1a   :  { %499 = vrot.lane.b32.xlu0 %v473_v6, %s4822_s28  ;;  %v442_v0 = vunpack.c.l.b16 %v154_v56  ;;  %v468_v1 = vrot.slane %v452_v54, 1  ;;  %v439_v2 = vunpack.c.l.b16 %v151_v57  ;;  %v440_v3 = vunpack.c.l.b16 %v152_v58  ;;  %v4097_v54 = vld [vmem:[%s6692_s0] sm:$0xf] }
  0x1b   :  { %v451_v5 = vpack.c.b16 %v424_v52, %v423_v51  ;;  %v4150_v6 = vor.u32 %v4677_v60, %v4149_v59  ;;  %v139_v13 = vsel %vm4954_vm4, %v5087_v7, 0  ;;  %v4126_v16 = vor.u32 %v4671_v11, %v4125_v10  ;;  %v67_v52 = vld [vmem:[%s6692_s0 + $0x3c] sm:$0x1]  ;;  %v57_v10 = vld [vmem:[%s6692_s0 + $0x14] sm:$0x1] }
  0x1c   :  { %359 = vrot.lane.b32.xlu2 %v273_v36, %s4821_s25  ;;  %v460_v12 = vpack.c.b16 %v442_v0, %v441_v63  ;;  %v459_v14 = vpack.c.b16 %v440_v3, %v439_v2  ;;  %v140_v20 = vsel %vm4973_vm7, %v65_v9, 0  ;;  %v427_v24 = vunpack.c.l.b16 %v139_v13  ;;  %v5149_v2 = vld [vmem:[%s6692_s0 + $0x8] sm:$0xf]  ;;  %v5156_v9 = vld [vmem:[%s6692_s0 + $0x10] sm:$0xf] }
  0x1d   :  { %v467_v18 = vrot.slane %v451_v5, 1  ;;  %v333_v19 = vshll.u32 %v4150_v6, 16  ;;  %v428_v27 = vunpack.c.l.b16 %v140_v20  ;;  %v291_v32 = vshll.u32 %v4126_v16, 16  ;;  %v55_v13 = vld [vmem:[%s6692_s0 + $0xc] sm:$0x1] }
  0x1e   :  { %497 = vrot.lane.b32.xlu1 %v472_v26, %s4822_s28  ;;  %v476_v26 = vrot.slane %v460_v12, 1  ;;  %v475_v30 = vrot.slane %v459_v14, 1  ;;  %v331_v33 = vshrl.u32 %v4150_v6, 16  ;;  %v4106_v36 = vor.u32 %v4666_v29, %v4105_v25  ;;  %v4667_v29 = vld [vmem:[%s6692_s0 + $0x18] sm:$0x10] }
  0x1f   :  { %v335_v34 = vrot.slane %v333_v19, 1  ;;  %v453_v41 = vpack.c.b16 %v428_v27, %v427_v24  ;;  %v289_v42 = vshrl.u32 %v4126_v16, 16  ;;  %v293_v44 = vrot.slane %v291_v32, 1  ;;  %v4109_v27 = vld [vmem:[%s6692_s0 + $0x18] sm:$0xf] }
  0x20   :  { %v4102_v46 = vor.u32 %v4665_v40, %v4101_v39  ;;  %v256_v51 = vshll.u32 %v4106_v36, 16  ;;  %v141_v60 = vsel %vm4954_vm4, %v5129_v50, 0  ;;  %v254_v63 = vshrl.u32 %v4106_v36, 16  ;;  %v59_v32 = vld [vmem:[%s6692_s0 + $0x1c] sm:$0x1] }
  0x21   :  { %v336_v48 = vor.u32 %v335_v34, %v331_v33  ;;  %v469_v53 = vrot.slane %v453_v41, 1  ;;  %v294_v56 = vor.u32 %v293_v44, %v289_v42  ;;  %v429_v3 = vunpack.c.l.b16 %v141_v60 }
  0x22   :  { %361 = vrot.lane.b32.xlu0 %v280_v35, %s4821_s25  ;;  %v4122_v35 = vor.u32 %v4670_v22, %v4121_v21  ;;  %v249_v57 = vshll.u32 %v4102_v46, 16  ;;  %v258_v0 = vrot.slane %v256_v51, 1  ;;  %v247_v5 = vshrl.u32 %v4102_v46, 16  ;;  %v53_v51 = vld [vmem:[%s6692_s0 + $0x4] sm:$0x1] }
  0x23   :  { %v131_v14 = vsel %vm4954_vm4, %v5156_v9, 0  ;;  %v132_v16 = vsel %vm4973_vm7, %v57_v10, 0  ;;  %v129_v20 = vsel %vm4954_vm4, %v5149_v2, 0  ;;  %v130_v21 = vsel %vm4973_vm7, %v55_v13, 0  ;;  %v4153_v10 = vld [vmem:[%s6692_s0 + $0x70] sm:$0xf] }
  0x24   :  { %489 = vrot.lane.b32.xlu2 %v468_v1, %s4822_s28  ;;  %v284_v49 = vshll.u32 %v4122_v35, 16  ;;  %v282_v58 = vshrl.u32 %v4122_v35, 16  ;;  %v251_v6 = vrot.slane %v249_v57, 1  ;;  %v419_v24 = vunpack.c.l.b16 %v131_v14 }
  0x25   :  { %v420_v25 = vunpack.c.l.b16 %v132_v16  ;;  %v417_v35 = vunpack.c.l.b16 %v129_v20  ;;  %v418_v36 = vunpack.c.l.b16 %v130_v21  ;;  %v4110_v40 = vor.u32 %v4667_v29, %v4109_v27  ;;  %v4163_v29 = vld [vmem:[%s6693_s1 + $0x8] sm:$0xf] }
  0x26   :  { %501 = vrot.lane.b32.xlu1 %v474_v55, %s4822_s28  ;;  %v4664_v55 = vld [vmem:[%s6692_s0] sm:$0x10]  ;;  %v286_v59 = vrot.slane %v284_v49, 1  ;;  %v252_v22 = vor.u32 %v251_v6, %v247_v5  ;;  %v134_v44 = vsel %vm4973_vm7, %v59_v32, 0  ;;  %v5199_v49 = vld [vmem:[%s6692_s0] sm:$0xf] }
  0x27   :  { %v4098_v1 = vor.u32 %v4664_v55, %v4097_v54  ;;  %v449_v39 = vpack.c.b16 %v420_v25, %v419_v24  ;;  %v263_v55 = vshll.u32 %v4110_v40, 16  ;;  %v128_v57 = vsel %vm4973_vm7, %v53_v51, 0  ;;  %v4681_v32 = vld [vmem:[%s6693_s1 + $0x8] sm:$0x30] }
  0x28   :  { %v287_v11 = vor.u32 %v286_v59, %v282_v58  ;;  %v5213_v58 = vld [vmem:[%s6692_s0 + $0x70] sm:$0xf]  ;;  %v81_v59 = vld [vmem:[%s6692_s0 + $0x74] sm:$0x1]  ;;  %vm643_vm13 = vcmask 97280   ;;  %vm1108_vm14 = vcmask 257024  }
  0x29   :  { %v242_v19 = vshll.u32 %v4098_v1, 16  ;;  %v240_v33 = vshrl.u32 %v4098_v1, 16  ;;  %v465_v54 = vrot.slane %v449_v39, 1  ;;  %v155_v5 = vsel %vm4954_vm4, %v5213_v58, 0  ;;  %v4682_v39 = vld [vmem:[%s6693_s1 + $0x10] sm:$0x30] }
  0x2a   :  { %375 = vrot.lane.b32.xlu0 %v329_v62, %s4821_s25  ;;  %v142_v62 = vsel %vm4973_vm7, %v67_v52, 0  ;;  %v156_v6 = vsel %vm4973_vm7, %v81_v59, 0  ;;  %v443_v14 = vunpack.c.l.b16 %v155_v5  ;;  %vm1109_vm15 = vsmask.f32 7938 }
  0x2b   :  { %v430_v12 = vunpack.c.l.b16 %v142_v62  ;;  %v244_v34 = vrot.slane %v242_v19, 1  ;;  %v444_v16 = vunpack.c.l.b16 %v156_v6  ;;  %vm1114_vm0 = vcmask 253952   ;;  %vm5448_vm2 = vmand %vm1108_vm14, %vm1109_vm15 }
  0x2c   :  { %503 = vrot.lane.b32.xlu2 %v475_v30, %s4822_s28  ;;  %v5184_v30 = vld [vmem:[%s6692_s0 + $0x18] sm:$0xf]  ;;  %vm1115_vm1 = vsmask.f32 256  ;;  %vm1642_vm5 = vcmask 261120   ;;  %vm1691_vm6 = vcmask 523264  }
  0x2d   :  { %v133_v42 = vsel %vm4954_vm4, %v5184_v30, 0  ;;  %v245_v46 = vor.u32 %v244_v34, %v240_v33  ;;  %v461_v20 = vpack.c.b16 %v444_v16, %v443_v14  ;;  %v4164_v33 = vor.u32 %v4681_v32, %v4163_v29  ;;  %v4175_v14 = vld [vmem:[%s6693_s1] sm:$0xf]  ;;  %vm5454_vm3 = vmand %vm1114_vm0, %vm1115_vm1 }
  0x2e   :  { %487 = vrot.lane.b32.xlu1 %v467_v18, %s4822_s28  ;;  %v259_v18 = vor.u32 %v258_v0, %v254_v63  ;;  %v421_v52 = vunpack.c.l.b16 %v133_v42  ;;  %v261_v63 = vshrl.u32 %v4110_v40, 16  ;;  %v265_v0 = vrot.slane %v263_v55, 1 }
  0x2f   :  { %v477_v24 = vrot.slane %v461_v20, 1  ;;  %vm2350_vm9 = vcmask 519168  }
  0x30   :  { %v266_v13 = vor.u32 %v265_v0, %v261_v63  ;;  %v3704_v0 = vld [vmem:[%s6698_s7 + $0x70] sm:$0xff] }
  0x32   :  { %505 = vrot.lane.b32.xlu0 %v476_v26, %s4822_s28  ;;  %v454_v26 = vpack.c.b16 %v430_v12, %v429_v3  ;;  %v416_v3 = vunpack.c.l.b16 %v128_v57 }
  0x34   :  { %365 = vrot.lane.b32.xlu2 %v294_v56, %s4821_s25  ;;  %v470_v41 = vrot.slane %v454_v26, 1  ;;  %v127_v56 = vsel %vm4954_vm4, %v5199_v49, 0 }
  0x35   :  { %v415_v1 = vunpack.c.l.b16 %v127_v56 }
  0x36   :  { %377 = vrot.lane.b32.xlu1 %v336_v48, %s4821_s25  ;;  %v448_v48 = vpack.c.b16 %v418_v36, %v417_v35  ;;  %v670_v35 = vsel %vm668_vm8, %v4164_v33, 0  ;;  %v4189_v36 = vld [vmem:[%s6693_s1 + $0x10] sm:$0xf] }
  0x37   :  { %4770 = vmatpush.bf16.msra.mxu2 %v670_v35  ;;  %4769 = vmatpush.bf16.msra.mxu1 %v670_v35 }
  0x38   :  { %v464_v60 = vrot.slane %v448_v48, 1  ;;  %679 = vmatpush.bf16.msra.mxu0 %v670_v35  ;;  %4771 = vmatpush.bf16.msra.mxu3 %v670_v35  ;;  %v4679_v48 = vld [vmem:[%s6692_s0 + $0x78] sm:$0x10]  ;;  %v101_v35 = vsel %vm5271_vm10, %v4997_v61, 0  ;;  %v94_v61 = vsel %vm5271_vm10, %v5036_v31, 0 }
  0x3a   :  { %491 = vrot.lane.b32.xlu0 %v469_v53, %s4822_s28  ;;  %v422_v53 = vunpack.c.l.b16 %v134_v44 }
  0x3c   :  { %353 = vrot.lane.b32.xlu2 %v252_v22, %s4821_s25  ;;  %v450_v62 = vpack.c.b16 %v422_v53, %v421_v52  ;;  %v5260_v52 = vld [vmem:[%s6692_s0 + $0x78] sm:$0xf]  ;;  %v83_v53 = vld [vmem:[%s6692_s0 + $0x7c] sm:$0x1] }
  0x3d   :  { %v157_v56 = vsel %vm4954_vm4, %v5260_v52, 0  ;;  %v158_v57 = vsel %vm4973_vm7, %v83_v53, 0 }
  0x3e   :  { %363 = vrot.lane.b32.xlu1 %v287_v11, %s4821_s25  ;;  %v4678_v11 = vld [vmem:[%s6692_s0 + $0x70] sm:$0x10]  ;;  %v466_v12 = vrot.slane %v450_v62, 1  ;;  %v445_v59 = vunpack.c.l.b16 %v157_v56 }
  0x3f   :  { %v4154_v19 = vor.u32 %v4678_v11, %v4153_v10  ;;  %v98_v10 = vsel %vm5271_vm10, %v4934_v23, 0  ;;  %v100_v11 = vsel %vm5271_vm10, %v4942_v28, 0  ;;  %v4680_v23 = vld [vmem:[%s6693_s1] sm:$0x30] }
  0x41   :  { %v340_v22 = vshll.u32 %v4154_v19, 16  ;;  %v338_v25 = vshrl.u32 %v4154_v19, 16 }
  0x42   :  { %355 = vrot.lane.b32.xlu0 %v259_v18, %s4821_s25  ;;  %v447_v18 = vpack.c.b16 %v416_v3, %v415_v1 }
  0x43   :  { %v342_v26 = vrot.slane %v340_v22, 1 }
  0x44   :  { %483 = vrot.lane.b32.xlu2 %v465_v54, %s4822_s28  ;;  %v463_v21 = vrot.slane %v447_v18, 1  ;;  %v4176_v18 = vor.u32 %v4680_v23, %v4175_v14  ;;  %v96_v14 = vsel %vm5271_vm10, %v5087_v7, 0 }
  0x45   :  { %v343_v27 = vor.u32 %v342_v26, %v338_v25 }
  0x46   :  { %493 = vrot.lane.b32.xlu1 %v470_v41, %s4822_s28  ;;  %v4190_v41 = vor.u32 %v4682_v39, %v4189_v36  ;;  %v761_v20 = vsel %vm668_vm8, %v4176_v18, 0  ;;  %v95_v36 = vsel %vm5271_vm10, %v5023_v17, 0 }
  0x47   :  { %770 = vmatpush.bf16.msrb.mxu1 %v761_v20  ;;  %v92_v20 = vsel %vm5271_vm10, %v5156_v9, 0 }
  0x48   :  { %v829_v44 = vsel %vm668_vm8, %v4190_v41, 0  ;;  %vm1825_vm8 = vcmask 785408  }
  0x49   :  { %838 = vmatpush.bf16.msrb.mxu2 %v829_v44 }
  0x4a   :  { %351 = vrot.lane.b32.xlu0 %v245_v46, %s4821_s25  ;;  %v4157_v46 = vld [vmem:[%s6692_s0 + $0x78] sm:$0xf] }
  0x4b   :  { %v4158_v51 = vor.u32 %v4679_v48, %v4157_v46 }
  0x4c   :  { %357 = vrot.lane.b32.xlu2 %v266_v13, %s4821_s25 }
  0x4d   :  { %v347_v55 = vshll.u32 %v4158_v51, 16  ;;  %v345_v62 = vshrl.u32 %v4158_v51, 16 }
  0x4e   :  { %481 = vrot.lane.b32.xlu1 %v464_v60, %s4822_s28  ;;  %v446_v60 = vunpack.c.l.b16 %v158_v57 }
  0x4f   :  { %v349_v63 = vrot.slane %v347_v55, 1 }
  0x50   :  { %v462_v3 = vpack.c.b16 %v446_v60, %v445_v59 }
  0x51   :  { %v350_v8 = vor.u32 %v349_v63, %v345_v62 }
  0x52   :  { %485 = vrot.lane.b32.xlu0 %v466_v12, %s4822_s28  ;;  %v478_v6 = vrot.slane %v462_v3, 1  ;;  %v99_v12 = vsel %vm5271_vm10, %v4961_v38, 0 }
  0x54   :  { %507 = vrot.lane.b32.xlu2 %v477_v24, %s4822_s28 }
  0x56   :  { %479 = vrot.lane.b32.xlu1 %v463_v21, %s4822_s28 }
  0x5a   :  { %381 = vrot.lane.b32.xlu0 %v350_v8, %s4821_s25 }
  0x5e   :  { %379 = vrot.lane.b32.xlu1 %v343_v27, %s4821_s25 }
  0x66   :  { %v372_v34 = vpop.permute.xlu2 %371  ;;  %509 = vrot.lane.b32.xlu1 %v478_v6, %s4822_s28 }
  0x67   :  { %v544_v28 = vsel %vm511_vm11, %v100_v11, %v372_v34 }
  0x6e   :  { %v374_v42 = vpop.permute.xlu2 %373 }
  0x6f   :  { %v547_v41 = vsel %vm511_vm11, %v101_v35, %v374_v42 }
  0x76   :  { %v360_v1 = vpop.permute.xlu2 %359 }
  0x77   :  { %v526_v42 = vsel %vm511_vm11, %v94_v61, %v360_v1  ;;  %v103_v1 = vsel %vm5271_vm10, %v5052_v45, 0 }
  0x7c   :  { %v368_v40 = vpop.permute.xlu0 %367 }
  0x7d   :  { %v538_v16 = vsel %vm511_vm11, %v98_v10, %v368_v40  ;;  %v102_v40 = vsel %vm5271_vm10, %v5060_v47, 0 }
  0x7e   :  { %v490_v24 = vpop.permute.xlu2 %489 }
  0x84   :  { %v370_v54 = vpop.permute.xlu0 %369 }
  0x85   :  { %v541_v19 = vsel %vm511_vm11, %v99_v12, %v370_v54 }
  0x86   :  { %v504_v46 = vpop.permute.xlu2 %503 }
  0x88   :  { %v496_v5 = vpop.permute.xlu1 %495 }
  0x89   :  { %v5297_v38 = vsel %vm560_vm12, %v538_v16, %v496_v5 }
  0x8a   :  { %v622_v26 = vunpack.c.l.b16 %v5297_v38 }
  0x8c   :  { %v500_v13 = vpop.permute.xlu0 %499 }
  0x8d   :  { %v582_v21 = vsel %vm560_vm12, %v544_v28, %v500_v13  ;;  %v97_v28 = vsel %vm5271_vm10, %v5129_v50, 0 }
  0x8e   :  { %v624_v27 = vunpack.c.l.b16 %v582_v21  ;;  %v366_v5 = vpop.permute.xlu2 %365 }
  0x8f   :  { %v535_v7 = vsel %vm511_vm11, %v97_v28, %v366_v5 }
  0x90   :  { %v498_v22 = vpop.permute.xlu1 %497 }
  0x91   :  { %v580_v25 = vsel %vm560_vm12, %v541_v19, %v498_v22 }
  0x92   :  { %v623_v29 = vunpack.c.l.b16 %v580_v25 }
  0x94   :  { %v362_v32 = vpop.permute.xlu0 %361  ;;  %v634_v33 = vpack.c.b16 %v623_v29, %v622_v26  ;;  %v5304_v34 = vpack.c.b16 %v624_v27, %v623_v29 }
  0x95   :  { %v529_v44 = vsel %vm511_vm11, %v95_v36, %v362_v32  ;;  %v91_v32 = vsel %vm5271_vm10, %v5149_v2, 0  ;;  %v93_v2 = vsel %vm5271_vm10, %v5184_v30, 0 }
  0x96   :  { %4169 = vmatmul.msk.bf16.vlgmr.msra.gmra.mxu2 %vm643_vm13, %v634_v33  ;;  %v5324_v17 = vsel %vm560_vm12, %v529_v44, %v490_v24  ;;  %v354_v23 = vpop.permute.xlu2 %353  ;;  %v90_v44 = vsel %vm5271_vm10, %v5199_v49, 0 }
  0x97   :  { %v619_v56 = vunpack.c.l.b16 %v5324_v17  ;;  %v517_v9 = vsel %vm511_vm11, %v91_v32, %v354_v23  ;;  %v105_v17 = vsel %vm5271_vm10, %v5260_v52, 0  ;;  %v727_v52 = vpack.c.b16 %v622_v26, %v4924_v15 }
  0x98   :  { %v502_v39 = vpop.permute.xlu1 %501 }
  0x99   :  { %v584_v48 = vsel %vm560_vm12, %v547_v41, %v502_v39 }
  0x9a   :  { %v625_v47 = vunpack.c.l.b16 %v584_v48 }
  0x9c   :  { %v376_v51 = vpop.permute.xlu0 %375  ;;  %v635_v3 = vpack.c.b16 %v625_v47, %v624_v27 }
  0x9d   :  { %v550_v53 = vsel %vm511_vm11, %v102_v40, %v376_v51 }
  0x9e   :  { %v586_v54 = vsel %vm560_vm12, %v550_v53, %v504_v46  ;;  %v484_v29 = vpop.permute.xlu2 %483 }
  0x9f   :  { %v626_v55 = vunpack.c.l.b16 %v586_v54 }
  0xa0   :  { %v488_v57 = vpop.permute.xlu1 %487 }
  0xa1   :  { %v5329_v59 = vpack.c.b16 %v626_v55, %v625_v47  ;;  %v570_v60 = vsel %vm560_vm12, %v526_v42, %v488_v57 }
  0xa2   :  { %v618_v62 = vunpack.c.l.b16 %v570_v60 }
  0xa4   :  { %v506_v63 = vpop.permute.xlu0 %505  ;;  %v632_v31 = vpack.c.b16 %v619_v56, %v618_v62 }
  0xa6   :  { %4167 = vmatmul.msk.bf16.vlgmr.msra.gmra.mxu1 %vm643_vm13, %v632_v31  ;;  %4170 = vmatmul.msk.bf16.gmra.mxu2 %vm643_vm13, %v635_v3  ;;  %v358_v51 = vpop.permute.xlu2 %357 }
  0xa7   :  { %v523_v54 = vsel %vm511_vm11, %v93_v2, %v358_v51  ;;  %v1111_v51 = vld [vmem:[#allocation2] sm:$0xf] }
  0xa8   :  { %v378_v8 = vpop.permute.xlu1 %377 }
  0xa9   :  { %v553_v6 = vsel %vm511_vm11, %v103_v1, %v378_v8 }
  0xaa   :  { %v5341_v11 = vsel %vm560_vm12, %v553_v6, %v506_v63 }
  0xab   :  { %v627_v12 = vunpack.c.l.b16 %v5341_v11 }
  0xac   :  { %v492_v10 = vpop.permute.xlu0 %491 }
  0xad   :  { %v636_v45 = vpack.c.b16 %v627_v12, %v626_v55 }
  0xae   :  { %v508_v5 = vpop.permute.xlu2 %507 }
  0xb0   :  { %v364_v13 = vpop.permute.xlu1 %363 }
  0xb1   :  { %v532_v16 = vsel %vm511_vm11, %v96_v14, %v364_v13 }
  0xb2   :  { %v574_v19 = vsel %vm560_vm12, %v532_v16, %v492_v10 }
  0xb3   :  { %v620_v24 = vunpack.c.l.b16 %v574_v19 }
  0xb4   :  { %v356_v18 = vpop.permute.xlu0 %355 }
  0xb5   :  { %v520_v25 = vsel %vm511_vm11, %v92_v20, %v356_v18  ;;  %v726_v31 = vpack.c.b16 %v620_v24, %v619_v56 }
  0xb6   :  { %4171 = vmatmul.msk.bf16.gmra.mxu2 %vm643_vm13, %v636_v45  ;;  %v566_v33 = vsel %vm560_vm12, %v520_v25, %v484_v29 }
  0xb7   :  { %v616_v35 = vunpack.c.l.b16 %v566_v33 }
  0xb8   :  { %v494_v21 = vpop.permute.xlu1 %493 }
  0xb9   :  { %v576_v22 = vsel %vm560_vm12, %v535_v7, %v494_v21 }
  0xba   :  { %v621_v27 = vunpack.c.l.b16 %v576_v22 }
  0xbc   :  { %v633_v50 = vpack.c.b16 %v621_v27, %v620_v24  ;;  %v352_v36 = vpop.permute.xlu0 %351  ;;  %v815_v1 = vpack.c.b16 %v4924_v15, %v621_v27  ;;  %v5444_v27 = vld [vmem:[%s6694_s2] ss:$0 sm:$0xff] }
  0xbd   :  { %v514_v48 = vsel %vm511_vm11, %v90_v44, %v352_v36 }
  0xbe   :  { %4168 = vmatmul.msk.bf16.gmra.mxu1 %vm643_vm13, %v633_v50 }
  0xc0   :  { %v482_v39 = vpop.permute.xlu1 %481 }
  0xc1   :  { %v564_v40 = vsel %vm560_vm12, %v517_v9, %v482_v39 }
  0xc2   :  { %v615_v41 = vunpack.c.l.b16 %v564_v40 }
  0xc4   :  { %v724_v46 = vpack.c.b16 %v616_v35, %v615_v41  ;;  %v486_v47 = vpop.permute.xlu0 %485 }
  0xc5   :  { %v568_v57 = vsel %vm560_vm12, %v523_v54, %v486_v47 }
  0xc6   :  { %4191 = vmatmul.msk.bf16.vlgmr.msrb.gmra.mxu2 %vm643_vm13, %v724_v46  ;;  %v617_v60 = vunpack.c.l.b16 %v568_v57 }
  0xc8   :  { %v480_v53 = vpop.permute.xlu1 %479  ;;  %v725_v63 = vpack.c.b16 %v618_v62, %v617_v60  ;;  %v631_v30 = vpack.c.b16 %v617_v60, %v616_v35  ;;  %v104_v62 = vsel %vm5271_vm10, %v5213_v58, 0 }
  0xc9   :  { %v562_v61 = vsel %vm560_vm12, %v514_v48, %v480_v53 }
  0xca   :  { %v614_v55 = vunpack.c.l.b16 %v562_v61  ;;  %v1117_v61 = vld [vmem:[#allocation2 + $0x4] sm:$0x1] }
  0xcc   :  { %v723_v42 = vpack.c.b16 %v614_v55, %v4924_v15  ;;  %v630_v49 = vpack.c.b16 %v615_v41, %v614_v55  ;;  %v382_v6 = vpop.permute.xlu0 %381 }
  0xcd   :  { %v559_v10 = vsel %vm511_vm11, %v105_v17, %v382_v6  ;;  %v1120_v17 = vld [vmem:[#allocation2 + $0x8] sm:$0xf] }
  0xce   :  { %4165 = vmatmul.msk.bf16.vlgmr.msra.gmra.mxu0 %vm643_vm13, %v630_v49  ;;  %4177 = vmatmul.msk.bf16.vlgmr.msrb.gmra.mxu1 %vm643_vm13, %v723_v42 }
  0xd0   :  { %v380_v3 = vpop.permute.xlu1 %379 }
  0xd1   :  { %v556_v8 = vsel %vm511_vm11, %v104_v62, %v380_v3  ;;  %vm2355_vm11 = vcmask 516096  }
  0xd2   :  { %v590_v56 = vsel %vm560_vm12, %v556_v8, %v508_v5 }
  0xd3   :  { %v628_v23 = vunpack.c.l.b16 %v590_v56  ;;  %v1123_v56 = vld [vmem:[#allocation2 + $0xc] sm:$0x1] }
  0xd5   :  { %v730_v18 = vpack.c.b16 %v628_v23, %v627_v12 }
  0xd6   :  { %4192 = vmatmul.msk.bf16.gmra.mxu2 %vm643_vm13, %v725_v63 }
  0xd8   :  { %v510_v13 = vpop.permute.xlu1 %509 }
  0xd9   :  { %v592_v14 = vsel %vm560_vm12, %v559_v10, %v510_v13  ;;  %vm5880_vm12 = vmand %vm2350_vm9, %vm1109_vm15 }
  0xda   :  { %v629_v58 = vunpack.c.l.b16 %v592_v14 }
  0xdc   :  { %v637_v16 = vpack.c.b16 %v629_v58, %v628_v23  ;;  %v816_v20 = vpack.c.b16 %v4924_v15, %v629_v58 }
  0xde   :  { %4166 = vmatmul.msk.bf16.gmra.mxu0 %vm643_vm13, %v631_v30  ;;  %4178 = vmatmul.msk.bf16.gmra.mxu1 %vm643_vm13, %v724_v46 }
  0xdf   :  { %4172 = vmatmul.msk.bf16.vlgmr.msra.gmra.mxu3 %vm643_vm13, %v637_v16 }
  0xe6   :  { %4193 = vmatmul.msk.bf16.gmra.mxu2 %vm643_vm13, %v726_v31 }
  0xee   :  { %4179 = vmatmul.msk.bf16.gmra.mxu1 %vm643_vm13, %v725_v63 }
  0xf6   :  { %4194 = vmatmul.msk.bf16.gmra.mxu2 %vm643_vm13, %v815_v1 }
  0xfe   :  { %4180 = vmatmul.msk.bf16.gmra.mxu1 %vm643_vm13, %v726_v31 }
 0x106   :  { %4195 = vmatmul.msk.bf16.gmra.mxu2 %vm643_vm13, %v5304_v34 }
 0x10e   :  { %4181 = vmatmul.msk.bf16.gmra.mxu1 %vm643_vm13, %v727_v52 }
 0x116   :  { %4196 = vmatmul.msk.bf16.gmra.mxu2 %vm643_vm13, %v5329_v59 }
 0x119   :  { %v5411_v45 = vpop.f32.mrf.mxu2 }
 0x11e   :  { %4182 = vmatmul.msk.bf16.gmra.mxu1 %vm643_vm13, %v5304_v34 }
 0x121   :  { %v5415_v28 = vpop.f32.mrf.mxu2 }
 0x123   :  { %v5420_v19 = vpop.f32.mrf.mxu1 }
 0x126   :  { %4197 = vmatmul.msk.bf16.gmra.mxu2 %vm643_vm13, %v730_v18 }
 0x129   :  { %v5422_v38 = vpop.f32.mrf.mxu2 }
 0x12b   :  { %v5429_v7 = vpop.f32.mrf.mxu1 }
 0x12e   :  { %4183 = vmatmul.msk.bf16.gmra.mxu1 %vm643_vm13, %v5329_v59 }
 0x131   :  { %v5426_v26 = vpop.f32.mrf.mxu2 }
 0x136   :  { %4198 = vmatmul.msk.bf16.gmra.mxu2 %vm643_vm13, %v816_v20 }
 0x139   :  { %v5432_v34 = vpop.f32.mrf.mxu2 }
 0x13b   :  { %v5434_v11 = vpop.f32.mrf.mxu1 }
 0x13e   :  { %4184 = vmatmul.msk.bf16.gmra.mxu1 %vm643_vm13, %v730_v18  ;;  %vm5886_vm13 = vmand %vm2355_vm11, %vm1115_vm1 }
 0x141   :  { %v5437_v12 = vpop.f32.mrf.mxu2 }
 0x143   :  { %v5439_v21 = vpop.f32.mrf.mxu1 }
 0x149   :  { %v840_v22 = vpop.f32.mrf.mxu2 }
 0x14b   :  { %v681_v59 = vpop.f32.mrf.mxu0  ;;  %v772_v24 = vpop.f32.mrf.mxu1 }
 0x14c   :  { %v773_v25 = vadd.f32 %v772_v24, %v681_v59 }
 0x14e   :  { %v880_v29 = vadd.f32 %v840_v22, %v773_v25 }
 0x150   :  { %v900_v50 = vadd.f32 %v5444_v27, %v880_v29 }
 0x151   :  { %v842_v32 = vpop.f32.mrf.mxu2 }
 0x152   :  { %v916_v33 = vmax.f32 %v900_v50, 0.0 }
 0x153   :  { %v683_v9 = vpop.f32.mrf.mxu0  ;;  %v774_v35 = vpop.f32.mrf.mxu1 }
 0x154   :  { %v932_v36 = vpack.c.bf16 %v916_v33, %v916_v33  ;;  %v775_v39 = vadd.f32 %v774_v35, %v683_v9  ;;  %v4716_v33 = vld [vmem:[%s6695_s3 + $0x88] sm:$0xff] }
 0x155   :  { %2075 = vmatpush.bf16.msra.mxu1 %v4716_v33 }
 0x156   :  { %v949_v40 = vshrl.u32 %v932_v36, 16  ;;  %v881_v41 = vadd.f32 %v842_v32, %v775_v39  ;;  %v952_v46 = vshll.u32 %v932_v36, 16 }
 0x158   :  { %v951_v44 = vrot.slane %v949_v40, 7  ;;  %v901_v2 = vadd.f32 %v5444_v27, %v881_v41 }
 0x159   :  { %v845_v54 = vpop.f32.mrf.mxu2 }
 0x15a   :  { %v954_v47 = vor.u32 %v952_v46, %v951_v44  ;;  %v955_v55 = vrot.slane %v951_v44, 4  ;;  %v917_v42 = vmax.f32 %v901_v2, 0.0  ;;  %v1126_v46 = vld [vmem:[#allocation2 + $0x10] sm:$0xf]  ;;  %v1129_v2 = vld [vmem:[#allocation2 + $0x14] sm:$0x1] }
 0x15b   :  { %v686_v49 = vpop.f32.mrf.mxu0  ;;  %v777_v57 = vpop.f32.mrf.mxu1 }
 0x15c   :  { %v1112_v60 = vsel %vm5448_vm2, %v954_v47, %v1111_v51  ;;  %v1118_v63 = vsel %vm5454_vm3, %v955_v55, %v1117_v61  ;;  %v933_v30 = vpack.c.bf16 %v917_v42, %v917_v42  ;;  %v778_v31 = vadd.f32 %v777_v57, %v686_v49 }
 0x15d   :  { %1113 = vst [vmem:[#allocation2] sm:$0xf] %v1112_v60 }
 0x15e   :  { %1119 = vst [vmem:[#allocation2 + $0x4] sm:$0x1] %v1118_v63  ;;  %v957_v3 = vshrl.u32 %v933_v30, 16  ;;  %v882_v1 = vadd.f32 %v845_v54, %v778_v31  ;;  %v960_v8 = vshll.u32 %v933_v30, 16 }
 0x160   :  { %v959_v62 = vrot.slane %v957_v3, 7  ;;  %v902_v5 = vadd.f32 %v5444_v27, %v882_v1 }
 0x161   :  { %v847_v6 = vpop.f32.mrf.mxu2 }
 0x162   :  { %v962_v10 = vor.u32 %v960_v8, %v959_v62  ;;  %v963_v13 = vrot.slane %v959_v62, 4  ;;  %v918_v14 = vmax.f32 %v902_v5, 0.0 }
 0x163   :  { %v688_v23 = vpop.f32.mrf.mxu0  ;;  %v779_v58 = vpop.f32.mrf.mxu1 }
 0x164   :  { %v1121_v16 = vsel %vm5448_vm2, %v962_v10, %v1120_v17  ;;  %v1124_v52 = vsel %vm5454_vm3, %v963_v13, %v1123_v56  ;;  %v934_v18 = vpack.c.bf16 %v918_v14, %v918_v14  ;;  %v780_v20 = vadd.f32 %v779_v58, %v688_v23  ;;  %v1210_v22 = vld [vmem:[#allocation2] sm:$0xf] }
 0x165   :  { %v4201_v59 = vld [vmem:[#allocation2] sm:$0xf]  ;;  %1122 = vst [vmem:[#allocation2 + $0x8] sm:$0xf] %v1121_v16  ;;  %v1211_v24 = vld [vmem:[#allocation2 + $0x4] sm:$0x1] }
 0x166   :  { %v1258_v25 = vsel %vm4954_vm4, %v1210_v22, 0  ;;  %1125 = vst [vmem:[#allocation2 + $0xc] sm:$0x1] %v1124_v52  ;;  %v965_v29 = vshrl.u32 %v934_v18, 16  ;;  %v883_v50 = vadd.f32 %v847_v6, %v780_v20  ;;  %v1259_v32 = vsel %vm4973_vm7, %v1211_v24, 0 }
 0x167   :  { %v1546_v9 = vunpack.c.l.b16 %v1258_v25  ;;  %v1547_v35 = vunpack.c.l.b16 %v1259_v32  ;;  %v4683_v36 = vld [vmem:[#allocation2] sm:$0x10]  ;;  %v968_v40 = vshll.u32 %v934_v18, 16  ;;  %v1132_v20 = vld [vmem:[#allocation2 + $0x18] sm:$0xf] }
 0x168   :  { %v967_v39 = vrot.slane %v965_v29, 7  ;;  %v903_v41 = vadd.f32 %v5444_v27, %v883_v50  ;;  %v4202_v44 = vor.u32 %v4683_v36, %v4201_v59  ;;  %v1135_v22 = vld [vmem:[#allocation2 + $0x1c] sm:$0x1] }
 0x169   :  { %v850_v51 = vpop.f32.mrf.mxu2  ;;  %v1578_v61 = vpack.c.b16 %v1547_v35, %v1546_v9 }
 0x16a   :  { %v970_v54 = vor.u32 %v968_v40, %v967_v39  ;;  %v971_v47 = vrot.slane %v967_v39, 4  ;;  %v919_v55 = vmax.f32 %v903_v41, 0.0  ;;  %v1371_v57 = vshrl.u32 %v4202_v44, 16 }
 0x16b   :  { %v782_v42 = vpop.f32.mrf.mxu1  ;;  %v1594_v49 = vrot.slane %v1578_v61, 1  ;;  %v1373_v60 = vshll.u32 %v4202_v44, 16 }
 0x16c   :  { %v1127_v63 = vsel %vm5448_vm2, %v970_v54, %v1126_v46  ;;  %v1130_v30 = vsel %vm5454_vm3, %v971_v47, %v1129_v2  ;;  %v935_v31 = vpack.c.bf16 %v919_v55, %v919_v55  ;;  %v783_v3 = vadd.f32 %v782_v42, %v5420_v19  ;;  %v4205_v1 = vld [vmem:[#allocation2 + $0x8] sm:$0xf] }
 0x16d   :  { %v1212_v62 = vld [vmem:[#allocation2 + $0x8] sm:$0xf]  ;;  %1128 = vst [vmem:[#allocation2 + $0x10] sm:$0xf] %v1127_v63  ;;  %1610 = vrot.lane.b32.xlu1 %v1594_v49, %s4823_s26  ;;  %v1375_v8 = vrot.slane %v1373_v60, 1 }
 0x16e   :  { %v4684_v5 = vld [vmem:[#allocation2 + $0x8] sm:$0x10]  ;;  %v1260_v17 = vsel %vm4954_vm4, %v1212_v62, 0  ;;  %1131 = vst [vmem:[#allocation2 + $0x14] sm:$0x1] %v1130_v30  ;;  %v973_v56 = vshrl.u32 %v935_v31, 16  ;;  %v884_v6 = vadd.f32 %v850_v51, %v783_v3 }
 0x16f   :  { %v4206_v10 = vor.u32 %v4684_v5, %v4205_v1  ;;  %v1213_v13 = vld [vmem:[#allocation2 + $0xc] sm:$0x1]  ;;  %v1376_v14 = vor.u32 %v1375_v8, %v1371_v57  ;;  %v1548_v23 = vunpack.c.l.b16 %v1260_v17  ;;  %v976_v16 = vshll.u32 %v935_v31, 16  ;;  %v1138_v3 = vld [vmem:[#allocation2 + $0x20] sm:$0xf] }
 0x170   :  { %v1261_v19 = vsel %vm4973_vm7, %v1213_v13, 0  ;;  %v975_v58 = vrot.slane %v973_v56, 7  ;;  %v904_v52 = vadd.f32 %v5444_v27, %v884_v6  ;;  %v1141_v1 = vld [vmem:[#allocation2 + $0x24] sm:$0x1] }
 0x171   :  { %v1380_v18 = vshll.u32 %v4206_v10, 16  ;;  %1482 = vrot.lane.b32.xlu2 %v1376_v14, %s4824_s27  ;;  %v852_v59 = vpop.f32.mrf.mxu2  ;;  %v1549_v24 = vunpack.c.l.b16 %v1261_v19  ;;  %v1378_v9 = vshrl.u32 %v4206_v10, 16 }
 0x172   :  { %v978_v25 = vor.u32 %v976_v16, %v975_v58  ;;  %v979_v29 = vrot.slane %v975_v58, 4  ;;  %v920_v50 = vmax.f32 %v904_v52, 0.0 }
 0x173   :  { %v1382_v32 = vrot.slane %v1380_v18, 1  ;;  %v784_v33 = vpop.f32.mrf.mxu1  ;;  %v1579_v35 = vpack.c.b16 %v1549_v24, %v1548_v23 }
 0x174   :  { %v1133_v36 = vsel %vm5448_vm2, %v978_v25, %v1132_v20  ;;  %v1136_v39 = vsel %vm5454_vm3, %v979_v29, %v1135_v22  ;;  %v936_v40 = vpack.c.bf16 %v920_v50, %v920_v50  ;;  %v785_v41 = vadd.f32 %v784_v33, %v5429_v7  ;;  %v5492_v44 = vld [vmem:[#allocation2 + $0x10] sm:$0xf] }
 0x175   :  { %v4209_v46 = vld [vmem:[#allocation2 + $0x10] sm:$0xf]  ;;  %1134 = vst [vmem:[#allocation2 + $0x18] sm:$0xf] %v1133_v36  ;;  %v1383_v2 = vor.u32 %v1382_v32, %v1378_v9  ;;  %v1595_v51 = vrot.slane %v1579_v35, 1  ;;  %v1262_v54 = vsel %vm4954_vm4, %v5492_v44, 0 }
 0x176   :  { %v1215_v61 = vld [vmem:[#allocation2 + $0x14] sm:$0x1]  ;;  %1137 = vst [vmem:[#allocation2 + $0x1c] sm:$0x1] %v1136_v39  ;;  %v981_v47 = vshrl.u32 %v936_v40, 16  ;;  %v885_v55 = vadd.f32 %v852_v59, %v785_v41  ;;  %v1550_v7 = vunpack.c.l.b16 %v1262_v54  ;;  %v984_v63 = vshll.u32 %v936_v40, 16 }
 0x177   :  { %v1263_v42 = vsel %vm4973_vm7, %v1215_v61, 0  ;;  %1484 = vrot.lane.b32.xlu0 %v1383_v2, %s4824_s27  ;;  %v4685_v57 = vld [vmem:[#allocation2 + $0x10] sm:$0x10]  ;;  %v4715_v9 = vld [vmem:[%s6695_s3 + $0x80] sm:$0xff]  ;;  %v1144_v41 = vld [vmem:[#allocation2 + $0x28] sm:$0xf] }
 0x178   :  { %v1551_v49 = vunpack.c.l.b16 %v1263_v42  ;;  %v983_v60 = vrot.slane %v981_v47, 7  ;;  %v905_v30 = vadd.f32 %v5444_v27, %v885_v55  ;;  %v4210_v31 = vor.u32 %v4685_v57, %v4209_v46  ;;  %v1147_v46 = vld [vmem:[#allocation2 + $0x2c] sm:$0x1]  ;;  %2076 = vmatpush.bf16.msra.mxu1 %v4715_v9 }
 0x179   :  { %1612 = vrot.lane.b32.xlu2 %v1595_v51, %s4823_s26  ;;  %v855_v62 = vpop.f32.mrf.mxu2 }
 0x17a   :  { %v1580_v8 = vpack.c.b16 %v1551_v49, %v1550_v7  ;;  %v986_v5 = vor.u32 %v984_v63, %v983_v60  ;;  %v987_v17 = vrot.slane %v983_v60, 4  ;;  %v921_v56 = vmax.f32 %v905_v30, 0.0 }
 0x17b   :  { %v787_v6 = vpop.f32.mrf.mxu1  ;;  %v1385_v13 = vshrl.u32 %v4210_v31, 16  ;;  %v1387_v14 = vshll.u32 %v4210_v31, 16 }
 0x17c   :  { %v1596_v10 = vrot.slane %v1580_v8, 1  ;;  %v1139_v19 = vsel %vm5448_vm2, %v986_v5, %v1138_v3  ;;  %v1142_v23 = vsel %vm5454_vm3, %v987_v17, %v1141_v1  ;;  %v937_v58 = vpack.c.bf16 %v921_v56, %v921_v56  ;;  %v4213_v52 = vld [vmem:[#allocation2 + $0x18] sm:$0xf] }
 0x17d   :  { %v788_v16 = vadd.f32 %v787_v6, %v5434_v11  ;;  %v5507_v18 = vld [vmem:[#allocation2 + $0x18] sm:$0xf]  ;;  %1140 = vst [vmem:[#allocation2 + $0x20] sm:$0xf] %v1139_v19  ;;  %v1389_v20 = vrot.slane %v1387_v14, 1 }
 0x17e   :  { %1614 = vrot.lane.b32.xlu1 %v1596_v10, %s4823_s26  ;;  %v4686_v22 = vld [vmem:[#allocation2 + $0x18] sm:$0x10]  ;;  %v1264_v59 = vsel %vm4954_vm4, %v5507_v18, 0  ;;  %1143 = vst [vmem:[#allocation2 + $0x24] sm:$0x1] %v1142_v23  ;;  %v989_v24 = vshrl.u32 %v937_v58, 16 }
 0x17f   :  { %v886_v25 = vadd.f32 %v855_v62, %v788_v16  ;;  %v4214_v29 = vor.u32 %v4686_v22, %v4213_v52  ;;  %v1217_v50 = vld [vmem:[#allocation2 + $0x1c] sm:$0x1]  ;;  %v1390_v32 = vor.u32 %v1389_v20, %v1385_v13  ;;  %v1552_v33 = vunpack.c.l.b16 %v1264_v59  ;;  %v1150_v16 = vld [vmem:[#allocation2 + $0x30] sm:$0xf]  ;;  %v1153_v52 = vld [vmem:[#allocation2 + $0x34] sm:$0x1] }
 0x180   :  { %v1265_v11 = vsel %vm4973_vm7, %v1217_v50, 0  ;;  %v991_v35 = vrot.slane %v989_v24, 7  ;;  %v992_v36 = vshll.u32 %v937_v58, 16 }
 0x181   :  { %v906_v39 = vadd.f32 %v5444_v27, %v886_v25  ;;  %v1394_v40 = vshll.u32 %v4214_v29, 16  ;;  %1486 = vrot.lane.b32.xlu0 %v1390_v32, %s4824_s27  ;;  %v857_v2 = vpop.f32.mrf.mxu2  ;;  %v1553_v51 = vunpack.c.l.b16 %v1265_v11  ;;  %v1392_v7 = vshrl.u32 %v4214_v29, 16 }
 0x182   :  { %v994_v61 = vor.u32 %v992_v36, %v991_v35  ;;  %v995_v54 = vrot.slane %v991_v35, 4 }
 0x183   :  { %v922_v47 = vmax.f32 %v906_v39, 0.0  ;;  %v1396_v55 = vrot.slane %v1394_v40, 1  ;;  %v789_v42 = vpop.f32.mrf.mxu1  ;;  %v1581_v49 = vpack.c.b16 %v1553_v51, %v1552_v33 }
 0x184   :  { %v1145_v57 = vsel %vm5448_vm2, %v994_v61, %v1144_v41  ;;  %v1148_v60 = vsel %vm5454_vm3, %v995_v54, %v1147_v46  ;;  %v790_v30 = vadd.f32 %v789_v42, %v5439_v21  ;;  %v4217_v31 = vld [vmem:[#allocation2 + $0x20] sm:$0xf] }
 0x185   :  { %v938_v63 = vpack.c.bf16 %v922_v47, %v922_v47  ;;  %v5525_v3 = vld [vmem:[#allocation2 + $0x20] sm:$0xf]  ;;  %1146 = vst [vmem:[#allocation2 + $0x28] sm:$0xf] %v1145_v57  ;;  %v1397_v1 = vor.u32 %v1396_v55, %v1392_v7  ;;  %v1597_v62 = vrot.slane %v1581_v49, 1 }
 0x186   :  { %v4687_v8 = vld [vmem:[#allocation2 + $0x20] sm:$0x10]  ;;  %v1266_v5 = vsel %vm4954_vm4, %v5525_v3, 0  ;;  %1149 = vst [vmem:[#allocation2 + $0x2c] sm:$0x1] %v1148_v60  ;;  %v887_v56 = vadd.f32 %v857_v2, %v790_v30 }
 0x187   :  { %v997_v17 = vshrl.u32 %v938_v63, 16  ;;  %v4218_v6 = vor.u32 %v4687_v8, %v4217_v31  ;;  %v1219_v10 = vld [vmem:[#allocation2 + $0x24] sm:$0x1]  ;;  %1488 = vrot.lane.b32.xlu2 %v1397_v1, %s4824_s27  ;;  %v1554_v13 = vunpack.c.l.b16 %v1266_v5  ;;  %v1000_v19 = vshll.u32 %v938_v63, 16  ;;  %v1156_v30 = vld [vmem:[#allocation2 + $0x38] sm:$0xf] }
 0x188   :  { %v1267_v21 = vsel %vm4973_vm7, %v1219_v10, 0  ;;  %v907_v23 = vadd.f32 %v5444_v27, %v887_v56  ;;  %v1159_v31 = vld [vmem:[#allocation2 + $0x3c] sm:$0x1] }
 0x189   :  { %v999_v14 = vrot.slane %v997_v17, 7  ;;  %v1401_v58 = vshll.u32 %v4218_v6, 16  ;;  %1616 = vrot.lane.b32.xlu0 %v1597_v62, %s4823_s26  ;;  %v860_v20 = vpop.f32.mrf.mxu2  ;;  %v1555_v22 = vunpack.c.l.b16 %v1267_v21  ;;  %v1399_v32 = vshrl.u32 %v4218_v6, 16 }
 0x18a   :  { %v923_v25 = vmax.f32 %v907_v23, 0.0 }
 0x18b   :  { %v1002_v59 = vor.u32 %v1000_v19, %v999_v14  ;;  %v1003_v24 = vrot.slane %v999_v14, 4  ;;  %v1403_v29 = vrot.slane %v1401_v58, 1  ;;  %v792_v50 = vpop.f32.mrf.mxu1  ;;  %v1582_v11 = vpack.c.b16 %v1555_v22, %v1554_v13 }
 0x18c   :  { %v939_v35 = vpack.c.bf16 %v923_v25, %v923_v25  ;;  %v793_v36 = vadd.f32 %v792_v50, %v5411_v45  ;;  %v5540_v39 = vld [vmem:[#allocation2 + $0x28] sm:$0xf]  ;;  %v4714_v45 = vld [vmem:[%s6695_s3 + $0x78] sm:$0xff] }
 0x18d   :  { %v1151_v33 = vsel %vm5448_vm2, %v1002_v59, %v1150_v16  ;;  %v1154_v9 = vsel %vm5454_vm3, %v1003_v24, %v1153_v52  ;;  %v4221_v40 = vld [vmem:[#allocation2 + $0x28] sm:$0xf]  ;;  %v1404_v41 = vor.u32 %v1403_v29, %v1399_v32  ;;  %v1598_v46 = vrot.slane %v1582_v11, 1  ;;  %v1221_v2 = vld [vmem:[#allocation2 + $0x2c] sm:$0x1]  ;;  %2077 = vmatpush.bf16.msra.mxu1 %v4714_v45 }
 0x18e   :  { %1152 = vst [vmem:[#allocation2 + $0x30] sm:$0xf] %v1151_v33  ;;  %v1268_v51 = vsel %vm4954_vm4, %v5540_v39, 0  ;;  %v1005_v61 = vshrl.u32 %v939_v35, 16  ;;  %v888_v54 = vadd.f32 %v860_v20, %v793_v36  ;;  %v1269_v47 = vsel %vm4973_vm7, %v1221_v2, 0 }
 0x18f   :  { %1155 = vst [vmem:[#allocation2 + $0x34] sm:$0x1] %v1154_v9  ;;  %1490 = vrot.lane.b32.xlu1 %v1404_v41, %s4824_s27  ;;  %1618 = vrot.lane.b32.xlu2 %v1598_v46, %s4823_s26  ;;  %v1556_v55 = vunpack.c.l.b16 %v1268_v51  ;;  %v1557_v42 = vunpack.c.l.b16 %v1269_v47  ;;  %v4688_v7 = vld [vmem:[#allocation2 + $0x28] sm:$0x10]  ;;  %v1008_v57 = vshll.u32 %v939_v35, 16 }
 0x190   :  { %v1007_v49 = vrot.slane %v1005_v61, 7  ;;  %v908_v60 = vadd.f32 %v5444_v27, %v888_v54  ;;  %v4222_v63 = vor.u32 %v4688_v7, %v4221_v40  ;;  %v1162_v36 = vld [vmem:[#allocation2 + $0x40] sm:$0xf]  ;;  %v1165_v40 = vld [vmem:[#allocation2 + $0x44] sm:$0x1] }
 0x191   :  { %v862_v1 = vpop.f32.mrf.mxu2  ;;  %v1583_v62 = vpack.c.b16 %v1557_v42, %v1556_v55 }
 0x192   :  { %v1010_v8 = vor.u32 %v1008_v57, %v1007_v49  ;;  %v1011_v5 = vrot.slane %v1007_v49, 4  ;;  %v924_v17 = vmax.f32 %v908_v60, 0.0  ;;  %v1406_v10 = vshrl.u32 %v4222_v63, 16 }
 0x193   :  { %v794_v56 = vpop.f32.mrf.mxu1  ;;  %v1599_v6 = vrot.slane %v1583_v62, 1  ;;  %v1408_v21 = vshll.u32 %v4222_v63, 16 }
 0x194   :  { %v1157_v13 = vsel %vm5448_vm2, %v1010_v8, %v1156_v30  ;;  %v1160_v14 = vsel %vm5454_vm3, %v1011_v5, %v1159_v31  ;;  %v940_v19 = vpack.c.bf16 %v924_v17, %v924_v17  ;;  %v795_v23 = vadd.f32 %v794_v56, %v5415_v28 }
 0x195   :  { %v4225_v58 = vld [vmem:[#allocation2 + $0x30] sm:$0xf]  ;;  %1158 = vst [vmem:[#allocation2 + $0x38] sm:$0xf] %v1157_v13  ;;  %v1410_v52 = vrot.slane %v1408_v21, 1 }
 0x196   :  { %v5558_v16 = vld [vmem:[#allocation2 + $0x30] sm:$0xf]  ;;  %v4689_v20 = vld [vmem:[#allocation2 + $0x30] sm:$0x10]  ;;  %1161 = vst [vmem:[#allocation2 + $0x3c] sm:$0x1] %v1160_v14  ;;  %v889_v24 = vadd.f32 %v862_v1, %v795_v23 }
 0x197   :  { %v1270_v22 = vsel %vm4954_vm4, %v5558_v16, 0  ;;  %v1013_v59 = vshrl.u32 %v940_v19, 16  ;;  %v4226_v25 = vor.u32 %v4689_v20, %v4225_v58  ;;  %v1223_v29 = vld [vmem:[#allocation2 + $0x34] sm:$0x1]  ;;  %1620 = vrot.lane.b32.xlu1 %v1599_v6, %s4823_s26  ;;  %v1411_v50 = vor.u32 %v1410_v52, %v1406_v10  ;;  %v1171_v23 = vld [vmem:[#allocation2 + $0x4c] sm:$0x1] }
 0x198   :  { %v1271_v28 = vsel %vm4973_vm7, %v1223_v29, 0  ;;  %v1558_v32 = vunpack.c.l.b16 %v1270_v22  ;;  %v1016_v33 = vshll.u32 %v940_v19, 16  ;;  %v909_v9 = vadd.f32 %v5444_v27, %v889_v24  ;;  %v1168_v19 = vld [vmem:[#allocation2 + $0x48] sm:$0xf] }
 0x199   :  { %v1015_v11 = vrot.slane %v1013_v59, 7  ;;  %v1415_v35 = vshll.u32 %v4226_v25, 16  ;;  %1492 = vrot.lane.b32.xlu0 %v1411_v50, %s4824_s27  ;;  %v865_v41 = vpop.f32.mrf.mxu2  ;;  %v1559_v46 = vunpack.c.l.b16 %v1271_v28  ;;  %v1413_v45 = vshrl.u32 %v4226_v25, 16 }
 0x19a   :  { %v925_v61 = vmax.f32 %v909_v9, 0.0 }
 0x19b   :  { %v1018_v2 = vor.u32 %v1016_v33, %v1015_v11  ;;  %v1019_v51 = vrot.slane %v1015_v11, 4  ;;  %v1417_v54 = vrot.slane %v1415_v35, 1  ;;  %v797_v47 = vpop.f32.mrf.mxu1  ;;  %v1584_v55 = vpack.c.b16 %v1559_v46, %v1558_v32 }
 0x19c   :  { %v941_v49 = vpack.c.bf16 %v925_v61, %v925_v61  ;;  %v798_v57 = vadd.f32 %v797_v47, %v5422_v38  ;;  %v4229_v60 = vld [vmem:[#allocation2 + $0x38] sm:$0xf] }
 0x19d   :  { %v1163_v42 = vsel %vm5448_vm2, %v1018_v2, %v1162_v36  ;;  %v1166_v7 = vsel %vm5454_vm3, %v1019_v51, %v1165_v40  ;;  %v5573_v63 = vld [vmem:[#allocation2 + $0x38] sm:$0xf]  ;;  %v1418_v30 = vor.u32 %v1417_v54, %v1413_v45  ;;  %v1600_v31 = vrot.slane %v1584_v55, 1  ;;  %v4690_v1 = vld [vmem:[#allocation2 + $0x38] sm:$0x10] }
 0x19e   :  { %1164 = vst [vmem:[#allocation2 + $0x40] sm:$0xf] %v1163_v42  ;;  %v1272_v62 = vsel %vm4954_vm4, %v5573_v63, 0  ;;  %v1021_v8 = vshrl.u32 %v941_v49, 16  ;;  %v890_v5 = vadd.f32 %v865_v41, %v798_v57  ;;  %v4230_v17 = vor.u32 %v4690_v1, %v4229_v60  ;;  %v1225_v56 = vld [vmem:[#allocation2 + $0x3c] sm:$0x1] }
 0x19f   :  { %1167 = vst [vmem:[#allocation2 + $0x44] sm:$0x1] %v1166_v7  ;;  %1494 = vrot.lane.b32.xlu2 %v1418_v30, %s4824_s27  ;;  %v1273_v38 = vsel %vm4973_vm7, %v1225_v56, 0  ;;  %v1560_v6 = vunpack.c.l.b16 %v1272_v62  ;;  %v1024_v21 = vshll.u32 %v941_v49, 16  ;;  %v1174_v57 = vld [vmem:[#allocation2 + $0x50] sm:$0xf] }
 0x1a0   :  { %v1023_v10 = vrot.slane %v1021_v8, 7  ;;  %v910_v13 = vadd.f32 %v5444_v27, %v890_v5  ;;  %v1422_v14 = vshll.u32 %v4230_v17, 16  ;;  %v1561_v52 = vunpack.c.l.b16 %v1273_v38  ;;  %v1177_v60 = vld [vmem:[#allocation2 + $0x54] sm:$0x1] }
 0x1a1   :  { %1622 = vrot.lane.b32.xlu0 %v1600_v31, %s4823_s26  ;;  %v867_v58 = vpop.f32.mrf.mxu2  ;;  %v1420_v29 = vshrl.u32 %v4230_v17, 16 }
 0x1a2   :  { %v1026_v20 = vor.u32 %v1024_v21, %v1023_v10  ;;  %v1027_v22 = vrot.slane %v1023_v10, 4  ;;  %v926_v59 = vmax.f32 %v910_v13, 0.0  ;;  %v1424_v24 = vrot.slane %v1422_v14, 1 }
 0x1a3   :  { %v799_v25 = vpop.f32.mrf.mxu1  ;;  %v1585_v50 = vpack.c.b16 %v1561_v52, %v1560_v6 }
 0x1a4   :  { %v1169_v28 = vsel %vm5448_vm2, %v1026_v20, %v1168_v19  ;;  %v1172_v32 = vsel %vm5454_vm3, %v1027_v22, %v1171_v23  ;;  %v942_v11 = vpack.c.bf16 %v926_v59, %v926_v59  ;;  %v800_v33 = vadd.f32 %v799_v25, %v5426_v26  ;;  %v4713_v26 = vld [vmem:[%s6695_s3 + $0x70] sm:$0xff] }
 0x1a5   :  { %v5588_v9 = vld [vmem:[#allocation2 + $0x40] sm:$0xf]  ;;  %1170 = vst [vmem:[#allocation2 + $0x48] sm:$0xf] %v1169_v28  ;;  %v1425_v36 = vor.u32 %v1424_v24, %v1420_v29  ;;  %v1601_v40 = vrot.slane %v1585_v50, 1  ;;  %2078 = vmatpush.bf16.msra.mxu1 %v4713_v26  ;;  %v4704_v50 = vld [vmem:[%s6695_s3 + $0x28] sm:$0xff] }
 0x1a6   :  { %v4233_v35 = vld [vmem:[#allocation2 + $0x40] sm:$0xf]  ;;  %v1227_v41 = vld [vmem:[#allocation2 + $0x44] sm:$0x1]  ;;  %v1274_v46 = vsel %vm4954_vm4, %v5588_v9, 0  ;;  %v1029_v2 = vshrl.u32 %v942_v11, 16  ;;  %v891_v51 = vadd.f32 %v867_v58, %v800_v33  ;;  %1969 = vmatpush.bf16.msrb.mxu0 %v4704_v50 }
 0x1a7   :  { %1173 = vst [vmem:[#allocation2 + $0x4c] sm:$0x1] %v1172_v32  ;;  %v1275_v61 = vsel %vm4973_vm7, %v1227_v41, 0  ;;  %1496 = vrot.lane.b32.xlu1 %v1425_v36, %s4824_s27  ;;  %1624 = vrot.lane.b32.xlu2 %v1601_v40, %s4823_s26  ;;  %v1562_v54 = vunpack.c.l.b16 %v1274_v46  ;;  %v4691_v45 = vld [vmem:[#allocation2 + $0x40] sm:$0x10]  ;;  %v1032_v42 = vshll.u32 %v942_v11, 16 }
 0x1a8   :  { %v1563_v47 = vunpack.c.l.b16 %v1275_v61  ;;  %v1031_v55 = vrot.slane %v1029_v2, 7  ;;  %v911_v7 = vadd.f32 %v5444_v27, %v891_v51  ;;  %v4234_v49 = vor.u32 %v4691_v45, %v4233_v35  ;;  %v1180_v35 = vld [vmem:[#allocation2 + $0x58] sm:$0xf]  ;;  %v1183_v36 = vld [vmem:[#allocation2 + $0x5c] sm:$0x1]  ;;  %v4703_v45 = vld [vmem:[%s6695_s3 + $0x20] sm:$0xff] }
 0x1a9   :  { %v870_v30 = vpop.f32.mrf.mxu2  ;;  %v4709_v50 = vld [vmem:[%s6695_s3 + $0x50] sm:$0xff] }
 0x1aa   :  { %v1586_v31 = vpack.c.b16 %v1563_v47, %v1562_v54  ;;  %v1034_v1 = vor.u32 %v1032_v42, %v1031_v55  ;;  %v1035_v62 = vrot.slane %v1031_v55, 4  ;;  %v927_v8 = vmax.f32 %v911_v7, 0.0  ;;  %1970 = vmatpush.bf16.msrb.mxu0 %v4703_v45 }
 0x1ab   :  { %v802_v5 = vpop.f32.mrf.mxu1  ;;  %v1427_v56 = vshrl.u32 %v4234_v49, 16  ;;  %v1429_v38 = vshll.u32 %v4234_v49, 16 }
 0x1ac   :  { %v1602_v17 = vrot.slane %v1586_v31, 1  ;;  %v1175_v6 = vsel %vm5448_vm2, %v1034_v1, %v1174_v57  ;;  %v1178_v10 = vsel %vm5454_vm3, %v1035_v62, %v1177_v60  ;;  %v943_v21 = vpack.c.bf16 %v927_v8, %v927_v8  ;;  %v4237_v14 = vld [vmem:[#allocation2 + $0x48] sm:$0xf] }
 0x1ad   :  { %v803_v13 = vadd.f32 %v802_v5, %v5432_v34  ;;  %v5606_v19 = vld [vmem:[#allocation2 + $0x48] sm:$0xf]  ;;  %1176 = vst [vmem:[#allocation2 + $0x50] sm:$0xf] %v1175_v6  ;;  %v1431_v23 = vrot.slane %v1429_v38, 1 }
 0x1ae   :  { %v4692_v58 = vld [vmem:[#allocation2 + $0x48] sm:$0x10]  ;;  %v1276_v52 = vsel %vm4954_vm4, %v5606_v19, 0  ;;  %1179 = vst [vmem:[#allocation2 + $0x54] sm:$0x1] %v1178_v10  ;;  %v1037_v20 = vshrl.u32 %v943_v21, 16 }
 0x1af   :  { %v892_v22 = vadd.f32 %v870_v30, %v803_v13  ;;  %v4238_v59 = vor.u32 %v4692_v58, %v4237_v14  ;;  %v1229_v24 = vld [vmem:[#allocation2 + $0x4c] sm:$0x1]  ;;  %1626 = vrot.lane.b32.xlu2 %v1602_v17, %s4823_s26  ;;  %v1432_v25 = vor.u32 %v1431_v23, %v1427_v56  ;;  %v1564_v29 = vunpack.c.l.b16 %v1276_v52  ;;  %v4702_v10 = vld [vmem:[%s6695_s3 + $0x18] sm:$0xff]  ;;  %v716_v52 = vpop.f32.mrf.mxu3 }
 0x1b0   :  { %v1277_v34 = vsel %vm4973_vm7, %v1229_v24, 0  ;;  %v1039_v28 = vrot.slane %v1037_v20, 7  ;;  %v1040_v32 = vshll.u32 %v943_v21, 16  ;;  %v4710_v58 = vld [vmem:[%s6695_s3 + $0x58] sm:$0xff]  ;;  %v1186_v20 = vld [vmem:[#allocation2 + $0x60] sm:$0xf]  ;;  %1971 = vmatpush.bf16.msrb.mxu0 %v4702_v10 }
 0x1b1   :  { %v912_v11 = vadd.f32 %v5444_v27, %v892_v22  ;;  %v1436_v33 = vshll.u32 %v4238_v59, 16  ;;  %1498 = vrot.lane.b32.xlu0 %v1432_v25, %s4824_s27  ;;  %v872_v40 = vpop.f32.mrf.mxu2  ;;  %v1565_v41 = vunpack.c.l.b16 %v1277_v34  ;;  %v1434_v54 = vshrl.u32 %v4238_v59, 16  ;;  %v1189_v22 = vld [vmem:[#allocation2 + $0x64] sm:$0x1]  ;;  %v4701_v24 = vld [vmem:[%s6695_s3 + $0x10] sm:$0xff]  ;;  %1852 = vmatpush.bf16.msrb.mxu3 %v4710_v58 }
 0x1b2   :  { %v1042_v46 = vor.u32 %v1040_v32, %v1039_v28  ;;  %v1043_v2 = vrot.slane %v1039_v28, 4 }
 0x1b3   :  { %v928_v51 = vmax.f32 %v912_v11, 0.0  ;;  %v1438_v61 = vrot.slane %v1436_v33, 1  ;;  %v804_v26 = vpop.f32.mrf.mxu1  ;;  %v1587_v47 = vpack.c.b16 %v1565_v41, %v1564_v29 }
 0x1b4   :  { %v1181_v55 = vsel %vm5448_vm2, %v1042_v46, %v1180_v35  ;;  %v1184_v42 = vsel %vm5454_vm3, %v1043_v2, %v1183_v36  ;;  %v805_v49 = vadd.f32 %v804_v26, %v5437_v12  ;;  %v5627_v57 = vld [vmem:[#allocation2 + $0x50] sm:$0xf]  ;;  %v4712_v12 = vld [vmem:[%s6695_s3 + $0x68] sm:$0xff]  ;;  %1972 = vmatpush.bf16.msrb.mxu0 %v4701_v24 }
 0x1b5   :  { %v944_v7 = vpack.c.bf16 %v928_v51, %v928_v51  ;;  %v4241_v60 = vld [vmem:[#allocation2 + $0x50] sm:$0xf]  ;;  %1182 = vst [vmem:[#allocation2 + $0x58] sm:$0xf] %v1181_v55  ;;  %v1439_v30 = vor.u32 %v1438_v61, %v1434_v54  ;;  %v1603_v31 = vrot.slane %v1587_v47, 1  ;;  %v1278_v62 = vsel %vm4954_vm4, %v5627_v57, 0  ;;  %2079 = vmatpush.bf16.msra.mxu1 %v4712_v12  ;;  %1853 = vmatpush.bf16.msrb.mxu3 %v4709_v50 }
 0x1b6   :  { %v1231_v1 = vld [vmem:[#allocation2 + $0x54] sm:$0x1]  ;;  %1185 = vst [vmem:[#allocation2 + $0x5c] sm:$0x1] %v1184_v42  ;;  %v893_v5 = vadd.f32 %v872_v40, %v805_v49  ;;  %v1566_v56 = vunpack.c.l.b16 %v1278_v62  ;;  %v4700_v61 = vld [vmem:[%s6695_s3 + $0x8] sm:$0xff] }
 0x1b7   :  { %v1045_v8 = vshrl.u32 %v944_v7, 16  ;;  %v1279_v17 = vsel %vm4973_vm7, %v1231_v1, 0  ;;  %1500 = vrot.lane.b32.xlu1 %v1439_v30, %s4824_s27  ;;  %v4693_v6 = vld [vmem:[#allocation2 + $0x50] sm:$0x10]  ;;  %v1048_v13 = vshll.u32 %v944_v7, 16 }
 0x1b8   :  { %v1567_v38 = vunpack.c.l.b16 %v1279_v17  ;;  %v913_v14 = vadd.f32 %v5444_v27, %v893_v5  ;;  %v4242_v23 = vor.u32 %v4693_v6, %v4241_v60  ;;  %v1192_v5 = vld [vmem:[#allocation2 + $0x68] sm:$0xf]  ;;  %v1195_v17 = vld [vmem:[#allocation2 + $0x6c] sm:$0x1]  ;;  %1973 = vmatpush.bf16.msrb.mxu0 %v4700_v61  ;;  %v4706_v61 = vld [vmem:[%s6695_s3 + $0x38] sm:$0xff] }
 0x1b9   :  { %v1047_v21 = vrot.slane %v1045_v8, 7  ;;  %1628 = vrot.lane.b32.xlu0 %v1603_v31, %s4823_s26  ;;  %v875_v28 = vpop.f32.mrf.mxu2 }
 0x1ba   :  { %v1588_v59 = vpack.c.b16 %v1567_v38, %v1566_v56  ;;  %v929_v29 = vmax.f32 %v913_v14, 0.0  ;;  %v1441_v33 = vshrl.u32 %v4242_v23, 16  ;;  %v1443_v35 = vshll.u32 %v4242_v23, 16  ;;  %v4708_v56 = vld [vmem:[%s6695_s3 + $0x48] sm:$0xff] }
 0x1bb   :  { %v1050_v25 = vor.u32 %v1048_v13, %v1047_v21  ;;  %v1051_v34 = vrot.slane %v1047_v21, 4  ;;  %v807_v32 = vpop.f32.mrf.mxu1  ;;  %v718_v21 = vpop.f32.mrf.mxu3  ;;  %1854 = vmatpush.bf16.msrb.mxu3 %v4708_v56 }
 0x1bc   :  { %v1604_v11 = vrot.slane %v1588_v59, 1  ;;  %v945_v41 = vpack.c.bf16 %v929_v29, %v929_v29  ;;  %v808_v46 = vadd.f32 %v807_v32, %v716_v52  ;;  %v5656_v2 = vld [vmem:[#allocation2 + $0x58] sm:$0xf]  ;;  %v1445_v26 = vrot.slane %v1443_v35, 1  ;;  %v4711_v52 = vld [vmem:[%s6695_s3 + $0x60] sm:$0xff] }
 0x1bd   :  { %v1187_v36 = vsel %vm5448_vm2, %v1050_v25, %v1186_v20  ;;  %v1190_v40 = vsel %vm5454_vm3, %v1051_v34, %v1189_v22  ;;  %v4245_v51 = vld [vmem:[#allocation2 + $0x58] sm:$0xf]  ;;  %v1233_v54 = vld [vmem:[#allocation2 + $0x5c] sm:$0x1]  ;;  %v1280_v47 = vsel %vm4954_vm4, %v5656_v2, 0  ;;  %v4707_v20 = vld [vmem:[%s6695_s3 + $0x40] sm:$0xff]  ;;  %2080 = vmatpush.bf16.msra.mxu1 %v4711_v52 }
 0x1be   :  { %1188 = vst [vmem:[#allocation2 + $0x60] sm:$0xf] %v1187_v36  ;;  %1630 = vrot.lane.b32.xlu2 %v1604_v11, %s4823_s26  ;;  %v1053_v45 = vshrl.u32 %v945_v41, 16  ;;  %v894_v55 = vadd.f32 %v875_v28, %v808_v46  ;;  %v1281_v42 = vsel %vm4973_vm7, %v1233_v54, 0  ;;  %v1446_v7 = vor.u32 %v1445_v26, %v1441_v33  ;;  %v4694_v30 = vld [vmem:[#allocation2 + $0x58] sm:$0x10] }
 0x1bf   :  { %1191 = vst [vmem:[#allocation2 + $0x64] sm:$0x1] %v1190_v40  ;;  %v1568_v49 = vunpack.c.l.b16 %v1280_v47  ;;  %v1569_v60 = vunpack.c.l.b16 %v1281_v42  ;;  %v1056_v1 = vshll.u32 %v945_v41, 16  ;;  %v4246_v8 = vor.u32 %v4694_v30, %v4245_v51  ;;  %1855 = vmatpush.bf16.msrb.mxu3 %v4707_v20  ;;  %v4812_v47 = vld [vmem:[%s6694_s2] ss:$0 sm:$0xff]  ;;  %v4705_v20 = vld [vmem:[%s6695_s3 + $0x30] sm:$0xff] }
 0x1c0   :  { %v1055_v31 = vrot.slane %v1053_v45, 7  ;;  %v914_v62 = vadd.f32 %v5444_v27, %v894_v55  ;;  %1502 = vrot.lane.b32.xlu1 %v1446_v7, %s4824_s27  ;;  %v4699_v27 = vld [vmem:[%s6695_s3] sm:$0xff]  ;;  %v1198_v42 = vld [vmem:[#allocation2 + $0x70] sm:$0xf]  ;;  %v1201_v7 = vld [vmem:[#allocation2 + $0x74] sm:$0x1] }
 0x1c1   :  { %v1589_v12 = vpack.c.b16 %v1569_v60, %v1568_v49  ;;  %v1448_v23 = vshrl.u32 %v4246_v8, 16  ;;  %v1450_v58 = vshll.u32 %v4246_v8, 16  ;;  %v877_v50 = vpop.f32.mrf.mxu2  ;;  %1974 = vmatpush.bf16.msrb.mxu0 %v4699_v27 }
 0x1c2   :  { %v1058_v38 = vor.u32 %v1056_v1, %v1055_v31  ;;  %v1059_v6 = vrot.slane %v1055_v31, 4  ;;  %v930_v10 = vmax.f32 %v914_v62, 0.0 }
 0x1c3   :  { %v809_v13 = vpop.f32.mrf.mxu1  ;;  %v1605_v14 = vrot.slane %v1589_v12, 1  ;;  %v1452_v28 = vrot.slane %v1450_v58, 1  ;;  %1856 = vmatpush.bf16.msrb.mxu3 %v4706_v61 }
 0x1c4   :  { %v1193_v22 = vsel %vm5448_vm2, %v1058_v38, %v1192_v5  ;;  %v1196_v59 = vsel %vm5454_vm3, %v1059_v6, %v1195_v17  ;;  %v946_v24 = vpack.c.bf16 %v930_v10, %v930_v10  ;;  %v810_v25 = vadd.f32 %v809_v13, %v718_v21 }
 0x1c5   :  { %v4249_v34 = vld [vmem:[#allocation2 + $0x60] sm:$0xf]  ;;  %1194 = vst [vmem:[#allocation2 + $0x68] sm:$0xf] %v1193_v22  ;;  %v1453_v41 = vor.u32 %v1452_v28, %v1448_v23 }
 0x1c6   :  { %v5685_v29 = vld [vmem:[#allocation2 + $0x60] sm:$0xf]  ;;  %v4695_v32 = vld [vmem:[#allocation2 + $0x60] sm:$0x10]  ;;  %1197 = vst [vmem:[#allocation2 + $0x6c] sm:$0x1] %v1196_v59  ;;  %v895_v35 = vadd.f32 %v877_v50, %v810_v25 }
 0x1c7   :  { %v1282_v11 = vsel %vm4954_vm4, %v5685_v29, 0  ;;  %v1061_v33 = vshrl.u32 %v946_v24, 16  ;;  %v4250_v36 = vor.u32 %v4695_v32, %v4249_v34  ;;  %v1235_v40 = vld [vmem:[#allocation2 + $0x64] sm:$0x1]  ;;  %v1064_v54 = vshll.u32 %v946_v24, 16  ;;  %1504 = vrot.lane.b32.xlu0 %v1453_v41, %s4824_s27  ;;  %1857 = vmatpush.bf16.msrb.mxu3 %v4705_v20 }
 0x1c8   :  { %v1283_v46 = vsel %vm4973_vm7, %v1235_v40, 0  ;;  %v1570_v51 = vunpack.c.l.b16 %v1282_v11  ;;  %v915_v45 = vadd.f32 %v4812_v47, %v895_v35  ;;  %1632 = vrot.lane.b32.xlu1 %v1605_v14, %s4823_s26  ;;  %v1204_v34 = vld [vmem:[#allocation2 + $0x78] sm:$0xf]  ;;  %v1207_v50 = vld [vmem:[#allocation2 + $0x7c] sm:$0x1] }
 0x1c9   :  { %v1063_v26 = vrot.slane %v1061_v33, 7  ;;  %v1457_v55 = vshll.u32 %v4250_v36, 16  ;;  %v1571_v49 = vunpack.c.l.b16 %v1283_v46  ;;  %v1455_v62 = vshrl.u32 %v4250_v36, 16 }
 0x1ca   :  { %v931_v31 = vmax.f32 %v915_v45, 0.0 }
 0x1cb   :  { %v1066_v60 = vor.u32 %v1064_v54, %v1063_v26  ;;  %v1067_v30 = vrot.slane %v1063_v26, 4  ;;  %v1459_v1 = vrot.slane %v1457_v55, 1  ;;  %v1590_v8 = vpack.c.b16 %v1571_v49, %v1570_v51 }
 0x1cc   :  { %v947_v12 = vpack.c.bf16 %v931_v31, %v931_v31  ;;  %v4253_v56 = vld [vmem:[#allocation2 + $0x68] sm:$0xf]  ;;  %v1483_v31 = vpop.permute.xlu2 %1482 }
 0x1cd   :  { %v1199_v5 = vsel %vm5448_vm2, %v1066_v60, %v1198_v42  ;;  %v1202_v17 = vsel %vm5454_vm3, %v1067_v30, %v1201_v7  ;;  %v5704_v38 = vld [vmem:[#allocation2 + $0x68] sm:$0xf]  ;;  %v1460_v6 = vor.u32 %v1459_v1, %v1455_v62  ;;  %v1606_v10 = vrot.slane %v1590_v8, 1  ;;  %v4696_v21 = vld [vmem:[#allocation2 + $0x68] sm:$0x10] }
 0x1ce   :  { %1200 = vst [vmem:[#allocation2 + $0x70] sm:$0xf] %v1199_v5  ;;  %v1284_v13 = vsel %vm4954_vm4, %v5704_v38, 0  ;;  %v1069_v14 = vshrl.u32 %v947_v12, 16  ;;  %v4254_v23 = vor.u32 %v4696_v21, %v4253_v56  ;;  %v1237_v58 = vld [vmem:[#allocation2 + $0x6c] sm:$0x1] }
 0x1cf   :  { %1203 = vst [vmem:[#allocation2 + $0x74] sm:$0x1] %v1202_v17  ;;  %v1572_v27 = vunpack.c.l.b16 %v1284_v13  ;;  %1506 = vrot.lane.b32.xlu2 %v1460_v6, %s4824_s27  ;;  %v1285_v52 = vsel %vm4973_vm7, %v1237_v58, 0  ;;  %v1072_v59 = vshll.u32 %v947_v12, 16  ;;  %1634 = vrot.lane.b32.xlu0 %v1606_v10, %s4823_s26  ;;  %v4813_v56 = vld [vmem:[#allocation2] sm:$0xf] }
 0x1d0   :  { %v1071_v22 = vrot.slane %v1069_v14, 7  ;;  %v1464_v24 = vshll.u32 %v4254_v23, 16  ;;  %v1573_v25 = vunpack.c.l.b16 %v1285_v52  ;;  %v1462_v28 = vshrl.u32 %v4254_v23, 16 }
 0x1d1   :  { %v1242_v6 = vsel %vm5271_vm10, %v4813_v56, 0  ;;  %v1247_v56 = vsel %vm5271_vm10, %v5540_v39, 0 }
 0x1d2   :  { %v1074_v32 = vor.u32 %v1072_v59, %v1071_v22  ;;  %v1075_v11 = vrot.slane %v1071_v22, 4  ;;  %v1466_v33 = vrot.slane %v1464_v24, 1  ;;  %v1591_v35 = vpack.c.b16 %v1573_v25, %v1572_v27 }
 0x1d3   :  { %v1645_v14 = vsel %vm1642_vm5, %v1242_v6, %v1483_v31 }
 0x1d4   :  { %v1205_v36 = vsel %vm5448_vm2, %v1074_v32, %v1204_v34  ;;  %v1208_v40 = vsel %vm5454_vm3, %v1075_v11, %v1207_v50  ;;  %v1467_v41 = vor.u32 %v1466_v33, %v1462_v28  ;;  %v1607_v46 = vrot.slane %v1591_v35, 1  ;;  %v4814_v32 = vld [vmem:[#allocation2 + $0x8] sm:$0xf]  ;;  %v1613_v33 = vpop.permute.xlu2 %1612 }
 0x1d5   :  { %v5720_v51 = vld [vmem:[#allocation2 + $0x70] sm:$0xf]  ;;  %1206 = vst [vmem:[#allocation2 + $0x78] sm:$0xf] %v1205_v36  ;;  %v1243_v11 = vsel %vm5271_vm10, %v4814_v32, 0 }
 0x1d6   :  { %v4257_v61 = vld [vmem:[#allocation2 + $0x70] sm:$0xf]  ;;  %v1239_v26 = vld [vmem:[#allocation2 + $0x74] sm:$0x1]  ;;  %v1286_v54 = vsel %vm4954_vm4, %v5720_v51, 0  ;;  %1508 = vrot.lane.b32.xlu1 %v1467_v41, %s4824_s27 }
 0x1d7   :  { %1209 = vst [vmem:[#allocation2 + $0x7c] sm:$0x1] %v1208_v40  ;;  %v1287_v48 = vsel %vm4973_vm7, %v1239_v26, 0  ;;  %v1574_v47 = vunpack.c.l.b16 %v1286_v54  ;;  %v4697_v53 = vld [vmem:[#allocation2 + $0x70] sm:$0x10]  ;;  %1636 = vrot.lane.b32.xlu2 %v1607_v46, %s4823_s26 }
 0x1d8   :  { %v1575_v45 = vunpack.c.l.b16 %v1287_v48  ;;  %v4258_v55 = vor.u32 %v4697_v53, %v4257_v61  ;;  %v1244_v61 = vsel %vm5271_vm10, %v5492_v44, 0 }
 0x1da   :  { %v1592_v42 = vpack.c.b16 %v1575_v45, %v1574_v47  ;;  %v1471_v7 = vshll.u32 %v4258_v55, 16  ;;  %v1469_v60 = vshrl.u32 %v4258_v55, 16  ;;  %v1245_v55 = vsel %vm5271_vm10, %v5507_v18, 0 }
 0x1dc   :  { %v1608_v49 = vrot.slane %v1592_v42, 1  ;;  %v1473_v30 = vrot.slane %v1471_v7, 1  ;;  %v4261_v1 = vld [vmem:[#allocation2 + $0x78] sm:$0xf] }
 0x1dd   :  { %v5729_v62 = vld [vmem:[#allocation2 + $0x78] sm:$0xf] }
 0x1de   :  { %v1474_v8 = vor.u32 %v1473_v30, %v1469_v60  ;;  %v4698_v5 = vld [vmem:[#allocation2 + $0x78] sm:$0x10]  ;;  %v1288_v12 = vsel %vm4954_vm4, %v5729_v62, 0  ;;  %1638 = vrot.lane.b32.xlu1 %v1608_v49, %s4823_s26  ;;  %v1246_v30 = vsel %vm5271_vm10, %v5525_v3, 0 }
 0x1df   :  { %v1241_v17 = vld [vmem:[#allocation2 + $0x7c] sm:$0x1]  ;;  %v4262_v10 = vor.u32 %v4698_v5, %v4261_v1  ;;  %v1576_v13 = vunpack.c.l.b16 %v1288_v12  ;;  %v1611_v23 = vpop.permute.xlu1 %1610 }
 0x1e0   :  { %v1289_v21 = vsel %vm4973_vm7, %v1241_v17, 0  ;;  %1510 = vrot.lane.b32.xlu0 %v1474_v8, %s4824_s27  ;;  %v1693_v27 = vsel %vm1691_vm6, %v1645_v14, %v1611_v23  ;;  %v1248_v23 = vsel %vm5271_vm10, %v5558_v16, 0 }
 0x1e1   :  { %v1577_v58 = vunpack.c.l.b16 %v1289_v21  ;;  %v1478_v52 = vshll.u32 %v4262_v10, 16  ;;  %v1765_v20 = vunpack.c.l.b16 %v1693_v27  ;;  %v1476_v59 = vshrl.u32 %v4262_v10, 16  ;;  %v1489_v53 = vpop.permute.xlu2 %1488 }
 0x1e2   :  { %v1654_v42 = vsel %vm1642_vm5, %v1245_v55, %v1489_v53 }
 0x1e3   :  { %v1593_v22 = vpack.c.b16 %v1577_v58, %v1576_v13  ;;  %v1480_v24 = vrot.slane %v1478_v52, 1  ;;  %v1899_v25 = vpack.c.b16 %v1765_v20, %v4924_v15 }
 0x1e5   :  { %v1609_v34 = vrot.slane %v1593_v22, 1  ;;  %v1481_v50 = vor.u32 %v1480_v24, %v1476_v59  ;;  %4331 = vmatmul.msk.bf16.vlgmr.msrb.gmra.mxu0 %vm1825_vm8, %v1899_v25  ;;  %v1249_v22 = vsel %vm5271_vm10, %v5573_v63, 0 }
 0x1e7   :  { %1512 = vrot.lane.b32.xlu2 %v1481_v50, %s4824_s27 }
 0x1e8   :  { %1640 = vrot.lane.b32.xlu0 %v1609_v34, %s4823_s26 }
 0x1e9   :  { %v1485_v28 = vpop.permute.xlu0 %1484  ;;  %v1619_v1 = vpop.permute.xlu2 %1618 }
 0x1ea   :  { %v1648_v35 = vsel %vm1642_vm5, %v1243_v11, %v1485_v28  ;;  %v1250_v28 = vsel %vm5271_vm10, %v5588_v9, 0 }
 0x1eb   :  { %v1695_v36 = vsel %vm1691_vm6, %v1648_v35, %v1613_v33 }
 0x1ec   :  { %v1766_v40 = vunpack.c.l.b16 %v1695_v36 }
 0x1ee   :  { %v1781_v41 = vpack.c.b16 %v1766_v40, %v1765_v20 }
 0x1f0   :  { %4299 = vmatmul.msk.bf16.vlgmr.msrb.gmra.mxu3 %vm1825_vm8, %v1781_v41  ;;  %v1615_v26 = vpop.permute.xlu1 %1614  ;;  %v1251_v41 = vsel %vm5271_vm10, %v5606_v19, 0 }
 0x1f3   :  { %v1487_v46 = vpop.permute.xlu0 %1486 }
 0x1f4   :  { %v1651_v54 = vsel %vm1642_vm5, %v1244_v61, %v1487_v46 }
 0x1f5   :  { %v1697_v48 = vsel %vm1691_vm6, %v1651_v54, %v1615_v26 }
 0x1f6   :  { %v1767_v47 = vunpack.c.l.b16 %v1697_v48 }
 0x1f8   :  { %v1900_v45 = vpack.c.b16 %v1767_v47, %v1766_v40 }
 0x1f9   :  { %v1495_v13 = vpop.permute.xlu2 %1494 }
 0x1fa   :  { %4332 = vmatmul.msk.bf16.gmra.mxu0 %vm1825_vm8, %v1900_v45  ;;  %4375 = vmatmul.msk.bf16.vlgmr.msra.gmra.mxu1 %vm1825_vm8, %v1900_v45  ;;  %v1663_v58 = vsel %vm1642_vm5, %v1248_v23, %v1495_v13 }
 0x1fb   :  { %v1617_v7 = vpop.permute.xlu0 %1616 }
 0x1fc   :  { %v1699_v44 = vsel %vm1691_vm6, %v1654_v42, %v1617_v7 }
 0x1fd   :  { %v1768_v49 = vunpack.c.l.b16 %v1699_v44 }
 0x1ff   :  { %v1782_v60 = vpack.c.b16 %v1768_v49, %v1767_v47  ;;  %v1252_v47 = vsel %vm5271_vm10, %v5627_v57, 0 }
 0x201   :  { %4300 = vmatmul.msk.bf16.gmra.mxu3 %vm1825_vm8, %v1782_v60  ;;  %v1491_v31 = vpop.permute.xlu1 %1490  ;;  %v1625_v24 = vpop.permute.xlu2 %1624 }
 0x202   :  { %v1657_v18 = vsel %vm1642_vm5, %v1246_v30, %v1491_v31 }
 0x203   :  { %v1701_v8 = vsel %vm1691_vm6, %v1657_v18, %v1619_v1 }
 0x204   :  { %v1769_v5 = vunpack.c.l.b16 %v1701_v8  ;;  %v1254_v8 = vsel %vm5271_vm10, %v5685_v29, 0 }
 0x206   :  { %v1901_v17 = vpack.c.b16 %v1769_v5, %v1768_v49  ;;  %v1253_v49 = vsel %vm5271_vm10, %v5656_v2, 0 }
 0x209   :  { %v1621_v12 = vpop.permute.xlu1 %1620  ;;  %v1627_v63 = vpop.permute.xlu2 %1626 }
 0x20a   :  { %4333 = vmatmul.msk.bf16.gmra.mxu0 %vm1825_vm8, %v1901_v17  ;;  %4376 = vmatmul.msk.bf16.gmra.mxu1 %vm1825_vm8, %v1901_v17 }
 0x20b   :  { %v1493_v6 = vpop.permute.xlu0 %1492 }
 0x20c   :  { %v1660_v3 = vsel %vm1642_vm5, %v1247_v56, %v1493_v6  ;;  %v1255_v6 = vsel %vm5271_vm10, %v5704_v38, 0 }
 0x20d   :  { %v1703_v10 = vsel %vm1691_vm6, %v1660_v3, %v1621_v12 }
 0x20e   :  { %v1770_v21 = vunpack.c.l.b16 %v1703_v10 }
 0x210   :  { %v1783_v14 = vpack.c.b16 %v1770_v21, %v1769_v5 }
 0x212   :  { %4301 = vmatmul.msk.bf16.gmra.mxu3 %vm1825_vm8, %v1783_v14 }
 0x213   :  { %v1623_v27 = vpop.permute.xlu0 %1622 }
 0x214   :  { %v1705_v52 = vsel %vm1691_vm6, %v1663_v58, %v1623_v27  ;;  %v1256_v58 = vsel %vm5271_vm10, %v5720_v51, 0 }
 0x215   :  { %v1771_v39 = vunpack.c.l.b16 %v1705_v52 }
 0x217   :  { %v1902_v20 = vpack.c.b16 %v1771_v39, %v1770_v21 }
 0x218   :  { %v1631_v19 = vpop.permute.xlu2 %1630 }
 0x219   :  { %v1497_v59 = vpop.permute.xlu1 %1496 }
 0x21a   :  { %4334 = vmatmul.msk.bf16.gmra.mxu0 %vm1825_vm8, %v1902_v20  ;;  %4377 = vmatmul.msk.bf16.gmra.mxu1 %vm1825_vm8, %v1902_v20  ;;  %v1666_v16 = vsel %vm1642_vm5, %v1249_v22, %v1497_v59  ;;  %v1257_v59 = vsel %vm5271_vm10, %v5729_v62, 0  ;;  %v4744_v62 = vld [vmem:[%s6697_s5 + $0x58] sm:$0xff] }
 0x21b   :  { %v1707_v25 = vsel %vm1691_vm6, %v1666_v16, %v1625_v24  ;;  %3386 = vmatpush.bf16.msrb.mxu1 %v4744_v62 }
 0x21c   :  { %v1772_v34 = vunpack.c.l.b16 %v1707_v25 }
 0x21e   :  { %v1784_v50 = vpack.c.b16 %v1772_v34, %v1771_v39  ;;  %v2029_v36 = vpack.c.b16 %v4924_v15, %v1772_v34 }
 0x222   :  { %4302 = vmatmul.msk.bf16.gmra.mxu3 %vm1825_vm8, %v1784_v50 }
 0x223   :  { %v1499_v32 = vpop.permute.xlu0 %1498 }
 0x224   :  { %v1669_v11 = vsel %vm1642_vm5, %v1250_v28, %v1499_v32  ;;  %v4743_v32 = vld [vmem:[%s6697_s5 + $0x50] sm:$0xff] }
 0x225   :  { %v1709_v33 = vsel %vm1691_vm6, %v1669_v11, %v1627_v63  ;;  %3387 = vmatpush.bf16.msrb.mxu1 %v4743_v32  ;;  %v4756_v11 = vld [vmem:[%s6697_s5 + $0xb8] sm:$0xff] }
 0x226   :  { %v1773_v35 = vunpack.c.l.b16 %v1709_v33  ;;  %v4742_v33 = vld [vmem:[%s6697_s5 + $0x48] sm:$0xff]  ;;  %3168 = vmatpush.bf16.msra.mxu3 %v4756_v11 }
 0x228   :  { %v1903_v40 = vpack.c.b16 %v1773_v35, %v4924_v15 }
 0x229   :  { %v1501_v46 = vpop.permute.xlu1 %1500  ;;  %v1507_v1 = vpop.permute.xlu2 %1506  ;;  %3388 = vmatpush.bf16.msrb.mxu1 %v4742_v33 }
 0x22a   :  { %4335 = vmatmul.msk.bf16.gmra.mxu0 %vm1825_vm8, %v1903_v40  ;;  %4378 = vmatmul.msk.bf16.gmra.mxu1 %vm1825_vm8, %v2029_v36  ;;  %v1672_v9 = vsel %vm1642_vm5, %v1251_v41, %v1501_v46  ;;  %v1681_v5 = vsel %vm1642_vm5, %v1254_v8, %v1507_v1  ;;  %v5861_v40 = vld [vmem:[%s6696_s4] ss:$0 sm:$0xff]  ;;  %v4755_v41 = vld [vmem:[%s6697_s5 + $0xb0] sm:$0xff] }
 0x22b   :  { %v1629_v61 = vpop.permute.xlu0 %1628  ;;  %v4741_v46 = vld [vmem:[%s6697_s5 + $0x40] sm:$0xff]  ;;  %3169 = vmatpush.bf16.msra.mxu3 %v4755_v41 }
 0x22c   :  { %v1711_v26 = vsel %vm1691_vm6, %v1672_v9, %v1629_v61  ;;  %v4765_v8 = vld [vmem:[%s6697_s5 + $0x100] sm:$0xff] }
 0x22d   :  { %v1774_v54 = vunpack.c.l.b16 %v1711_v26  ;;  %3389 = vmatpush.bf16.msrb.mxu1 %v4741_v46 }
 0x22f   :  { %v1785_v48 = vpack.c.b16 %v1774_v54, %v1773_v35 }
 0x231   :  { %v1637_v10 = vpop.permute.xlu2 %1636 }
 0x232   :  { %4303 = vmatmul.msk.bf16.gmra.mxu3 %vm1825_vm8, %v1785_v48  ;;  %v1503_v53 = vpop.permute.xlu1 %1502 }
 0x233   :  { %v1675_v45 = vsel %vm1642_vm5, %v1252_v47, %v1503_v53 }
 0x234   :  { %v1713_v55 = vsel %vm1691_vm6, %v1675_v45, %v1631_v19  ;;  %v4754_v19 = vld [vmem:[%s6697_s5 + $0xa8] sm:$0xff] }
 0x235   :  { %v1775_v42 = vunpack.c.l.b16 %v1713_v55  ;;  %3170 = vmatpush.bf16.msra.mxu3 %v4754_v19 }
 0x237   :  { %v1904_v7 = vpack.c.b16 %v1775_v42, %v1774_v54 }
 0x239   :  { %v1505_v60 = vpop.permute.xlu0 %1504 }
 0x23a   :  { %4336 = vmatmul.msk.bf16.gmra.mxu0 %vm1825_vm8, %v1904_v7  ;;  %4379 = vmatmul.msk.bf16.gmra.mxu1 %vm1825_vm8, %v1904_v7  ;;  %v1633_v44 = vpop.permute.xlu1 %1632  ;;  %v1678_v57 = vsel %vm1642_vm5, %v1253_v49, %v1505_v60  ;;  %v4752_v49 = vld [vmem:[%s6697_s5 + $0x98] sm:$0xff]  ;;  %v4753_v60 = vld [vmem:[%s6697_s5 + $0xa0] sm:$0xff] }
 0x23b   :  { %v1715_v30 = vsel %vm1691_vm6, %v1678_v57, %v1633_v44  ;;  %3115 = vmatpush.bf16.msra.mxu2 %v4752_v49  ;;  %3171 = vmatpush.bf16.msra.mxu3 %v4753_v60 }
 0x23c   :  { %v1776_v31 = vunpack.c.l.b16 %v1715_v30 }
 0x23e   :  { %v1786_v18 = vpack.c.b16 %v1776_v31, %v1775_v42 }
 0x241   :  { %v1635_v17 = vpop.permute.xlu0 %1634  ;;  %v1513_v20 = vpop.permute.xlu2 %1512 }
 0x242   :  { %4304 = vmatmul.msk.bf16.gmra.mxu3 %vm1825_vm8, %v1786_v18  ;;  %v1717_v12 = vsel %vm1691_vm6, %v1681_v5, %v1635_v17  ;;  %v1690_v24 = vsel %vm1642_vm5, %v1257_v59, %v1513_v20  ;;  %v2352_v18 = vld [vmem:[#allocation3] sm:$0xf]  ;;  %v2357_v5 = vld [vmem:[#allocation3 + $0x4] sm:$0x1] }
 0x243   :  { %v1777_v2 = vunpack.c.l.b16 %v1717_v12 }
 0x245   :  { %v1905_v56 = vpack.c.b16 %v1777_v2, %v1776_v31 }
 0x248   :  { %v1509_v3 = vpop.permute.xlu1 %1508 }
 0x249   :  { %v1684_v21 = vsel %vm1642_vm5, %v1255_v6, %v1509_v3 }
 0x24a   :  { %4337 = vmatmul.msk.bf16.gmra.mxu0 %vm1825_vm8, %v1905_v56  ;;  %4380 = vmatmul.msk.bf16.gmra.mxu1 %vm1825_vm8, %v1905_v56  ;;  %v1719_v29 = vsel %vm1691_vm6, %v1684_v21, %v1637_v10 }
 0x24b   :  { %v1778_v13 = vunpack.c.l.b16 %v1719_v29 }
 0x24d   :  { %v1787_v14 = vpack.c.b16 %v1778_v13, %v1777_v2 }
 0x250   :  { %v1639_v23 = vpop.permute.xlu1 %1638 }
 0x252   :  { %v1511_v27 = vpop.permute.xlu0 %1510  ;;  %4305 = vmatmul.msk.bf16.gmra.mxu3 %vm1825_vm8, %v1787_v14 }
 0x253   :  { %v1687_v38 = vsel %vm1642_vm5, %v1256_v58, %v1511_v27 }
 0x254   :  { %v1721_v52 = vsel %vm1691_vm6, %v1687_v38, %v1639_v23 }
 0x255   :  { %v1779_v39 = vunpack.c.l.b16 %v1721_v52  ;;  %v2360_v52 = vld [vmem:[#allocation3 + $0x8] sm:$0xf] }
 0x257   :  { %v1906_v22 = vpack.c.b16 %v1779_v39, %v1778_v13 }
 0x25a   :  { %v1641_v16 = vpop.permute.xlu0 %1640  ;;  %4338 = vmatmul.msk.bf16.gmra.mxu0 %vm1825_vm8, %v1906_v22  ;;  %4381 = vmatmul.msk.bf16.gmra.mxu1 %vm1825_vm8, %v1906_v22 }
 0x25b   :  { %v1723_v51 = vsel %vm1691_vm6, %v1690_v24, %v1641_v16 }
 0x25c   :  { %v1780_v25 = vunpack.c.l.b16 %v1723_v51 }
 0x25e   :  { %v1788_v34 = vpack.c.b16 %v1780_v25, %v1779_v39  ;;  %v2030_v28 = vpack.c.b16 %v4924_v15, %v1780_v25  ;;  %v2363_v39 = vld [vmem:[#allocation3 + $0xc] sm:$0x1] }
 0x262   :  { %4306 = vmatmul.msk.bf16.gmra.mxu3 %vm1825_vm8, %v1788_v34  ;;  %v1976_v50 = vpop.f32.mrf.mxu0 }
 0x26a   :  { %4382 = vmatmul.msk.bf16.gmra.mxu1 %vm1825_vm8, %v2030_v28  ;;  %v1978_v63 = vpop.f32.mrf.mxu0 }
 0x273   :  { %v1859_v35 = vpop.f32.mrf.mxu3 }
 0x274   :  { %v1977_v36 = vadd.f32 %v1976_v50, %v1859_v35 }
 0x277   :  { %v1981_v9 = vpop.f32.mrf.mxu0  ;;  %v2082_v61 = vpop.f32.mrf.mxu1 }
 0x278   :  { %v2122_v26 = vadd.f32 %v2082_v61, %v1977_v36 }
 0x27a   :  { %v2142_v54 = vadd.f32 %v5861_v40, %v2122_v26 }
 0x27b   :  { %v1861_v48 = vpop.f32.mrf.mxu3 }
 0x27c   :  { %v2158_v47 = vmax.f32 %v2142_v54, 0.0  ;;  %v1979_v53 = vadd.f32 %v1978_v63, %v1861_v48  ;;  %v2366_v48 = vld [vmem:[#allocation3 + $0x10] sm:$0xf] }
 0x27e   :  { %v2174_v45 = vpack.c.bf16 %v2158_v47, %v2158_v47  ;;  %v2369_v47 = vld [vmem:[#allocation3 + $0x14] sm:$0x1] }
 0x27f   :  { %v1983_v55 = vpop.f32.mrf.mxu0  ;;  %v2084_v42 = vpop.f32.mrf.mxu1 }
 0x280   :  { %v2191_v7 = vshrl.u32 %v2174_v45, 16  ;;  %v2123_v44 = vadd.f32 %v2084_v42, %v1979_v53  ;;  %v2194_v30 = vshll.u32 %v2174_v45, 16 }
 0x282   :  { %v2193_v57 = vrot.slane %v2191_v7, 7  ;;  %v2143_v1 = vadd.f32 %v5861_v40, %v2123_v44 }
 0x284   :  { %v2196_v17 = vor.u32 %v2194_v30, %v2193_v57  ;;  %v2197_v12 = vrot.slane %v2193_v57, 4  ;;  %v2159_v2 = vmax.f32 %v2143_v1, 0.0  ;;  %v1864_v56 = vpop.f32.mrf.mxu3 }
 0x285   :  { %v1982_v6 = vadd.f32 %v1981_v9, %v1864_v56 }
 0x286   :  { %v2353_v3 = vsel %vm5880_vm12, %v2196_v17, %v2352_v18  ;;  %v2358_v10 = vsel %vm5886_vm13, %v2197_v12, %v2357_v5  ;;  %v2175_v21 = vpack.c.bf16 %v2159_v2, %v2159_v2 }
 0x287   :  { %2354 = vst [vmem:[#allocation3] sm:$0xf] %v2353_v3  ;;  %v1986_v29 = vpop.f32.mrf.mxu0  ;;  %v2087_v13 = vpop.f32.mrf.mxu1 }
 0x288   :  { %2359 = vst [vmem:[#allocation3 + $0x4] sm:$0x1] %v2358_v10  ;;  %v2199_v14 = vshrl.u32 %v2175_v21, 16  ;;  %v2124_v23 = vadd.f32 %v2087_v13, %v1982_v6  ;;  %v2202_v27 = vshll.u32 %v2175_v21, 16 }
 0x28a   :  { %v2201_v58 = vrot.slane %v2199_v14, 7  ;;  %v2144_v38 = vadd.f32 %v5861_v40, %v2124_v23 }
 0x28c   :  { %v2204_v20 = vor.u32 %v2202_v27, %v2201_v58  ;;  %v2205_v22 = vrot.slane %v2201_v58, 4  ;;  %v2160_v59 = vmax.f32 %v2144_v38, 0.0  ;;  %v1866_v24 = vpop.f32.mrf.mxu3  ;;  %v4751_v38 = vld [vmem:[%s6697_s5 + $0x90] sm:$0xff] }
 0x28d   :  { %v1984_v16 = vadd.f32 %v1983_v55, %v1866_v24  ;;  %v2375_v24 = vld [vmem:[#allocation3 + $0x1c] sm:$0x1]  ;;  %3116 = vmatpush.bf16.msra.mxu2 %v4751_v38 }
 0x28e   :  { %v2361_v51 = vsel %vm5880_vm12, %v2204_v20, %v2360_v52  ;;  %v2364_v25 = vsel %vm5886_vm13, %v2205_v22, %v2363_v39  ;;  %v2176_v34 = vpack.c.bf16 %v2160_v59, %v2160_v59  ;;  %v4385_v50 = vld [vmem:[#allocation3] sm:$0xf]  ;;  %v2372_v59 = vld [vmem:[#allocation3 + $0x18] sm:$0xf] }
 0x28f   :  { %v2450_v28 = vld [vmem:[#allocation3] sm:$0xf]  ;;  %2362 = vst [vmem:[#allocation3 + $0x8] sm:$0xf] %v2361_v51  ;;  %v5899_v62 = vpop.f32.mrf.mxu0  ;;  %v2089_v32 = vpop.f32.mrf.mxu1  ;;  %v4717_v63 = vld [vmem:[#allocation3] sm:$0x10] }
 0x290   :  { %v2451_v11 = vld [vmem:[#allocation3 + $0x4] sm:$0x1]  ;;  %2365 = vst [vmem:[#allocation3 + $0xc] sm:$0x1] %v2364_v25  ;;  %v2207_v33 = vshrl.u32 %v2176_v34, 16  ;;  %v2125_v35 = vadd.f32 %v2089_v32, %v1984_v16  ;;  %v4386_v36 = vor.u32 %v4717_v63, %v4385_v50  ;;  %v2498_v41 = vsel %vm4954_vm4, %v2450_v28, 0 }
 0x291   :  { %v2499_v46 = vsel %vm4973_vm7, %v2451_v11, 0  ;;  %v2210_v61 = vshll.u32 %v2176_v34, 16  ;;  %v2786_v53 = vunpack.c.l.b16 %v2498_v41 }
 0x292   :  { %v2209_v9 = vrot.slane %v2207_v33, 7  ;;  %v2145_v26 = vadd.f32 %v5861_v40, %v2125_v35  ;;  %v2613_v54 = vshll.u32 %v4386_v36, 16  ;;  %v2787_v19 = vunpack.c.l.b16 %v2499_v46 }
 0x293   :  { %v2611_v49 = vshrl.u32 %v4386_v36, 16 }
 0x294   :  { %v2212_v45 = vor.u32 %v2210_v61, %v2209_v9  ;;  %v2213_v55 = vrot.slane %v2209_v9, 4  ;;  %v2161_v42 = vmax.f32 %v2145_v26, 0.0  ;;  %v2615_v7 = vrot.slane %v2613_v54, 1 }
 0x295   :  { %v1869_v44 = vpop.f32.mrf.mxu3  ;;  %v2818_v60 = vpack.c.b16 %v2787_v19, %v2786_v53 }
 0x296   :  { %v2367_v57 = vsel %vm5880_vm12, %v2212_v45, %v2366_v48  ;;  %v2370_v30 = vsel %vm5886_vm13, %v2213_v55, %v2369_v47  ;;  %v2177_v1 = vpack.c.bf16 %v2161_v42, %v2161_v42  ;;  %v1987_v18 = vadd.f32 %v1986_v29, %v1869_v44  ;;  %v4389_v5 = vld [vmem:[#allocation3 + $0x8] sm:$0xf] }
 0x297   :  { %v2452_v17 = vld [vmem:[#allocation3 + $0x8] sm:$0xf]  ;;  %2368 = vst [vmem:[#allocation3 + $0x10] sm:$0xf] %v2367_v57  ;;  %v2616_v12 = vor.u32 %v2615_v7, %v2611_v49  ;;  %v5910_v2 = vpop.f32.mrf.mxu0  ;;  %v2092_v56 = vpop.f32.mrf.mxu1  ;;  %v2834_v6 = vrot.slane %v2818_v60, 1 }
 0x298   :  { %v4718_v3 = vld [vmem:[#allocation3 + $0x8] sm:$0x10]  ;;  %v2500_v10 = vsel %vm4954_vm4, %v2452_v17, 0  ;;  %2371 = vst [vmem:[#allocation3 + $0x14] sm:$0x1] %v2370_v30  ;;  %v2215_v21 = vshrl.u32 %v2177_v1, 16  ;;  %v2126_v13 = vadd.f32 %v2092_v56, %v1987_v18 }
 0x299   :  { %v4390_v14 = vor.u32 %v4718_v3, %v4389_v5  ;;  %v2453_v23 = vld [vmem:[#allocation3 + $0xc] sm:$0x1]  ;;  %2722 = vrot.lane.b32.xlu1 %v2616_v12, %s4823_s26  ;;  %v2913_v29 = vunpack.c.l.b16 %v2834_v6  ;;  %v2788_v27 = vunpack.c.l.b16 %v2500_v10  ;;  %v2218_v39 = vshll.u32 %v2177_v1, 16  ;;  %v2378_v1 = vld [vmem:[#allocation3 + $0x20] sm:$0xf] }
 0x29a   :  { %v2501_v58 = vsel %vm4973_vm7, %v2453_v23, 0  ;;  %v2217_v52 = vrot.slane %v2215_v21, 7  ;;  %v2146_v20 = vadd.f32 %v5861_v40, %v2126_v13  ;;  %v2381_v18 = vld [vmem:[#allocation3 + $0x24] sm:$0x1] }
 0x29b   :  { %v2620_v22 = vshll.u32 %v4390_v14, 16  ;;  %v3214_v16 = vpack.c.b16 %v2913_v29, %v4924_v15  ;;  %v2789_v51 = vunpack.c.l.b16 %v2501_v58  ;;  %v2618_v63 = vshrl.u32 %v4390_v14, 16 }
 0x29c   :  { %v2220_v25 = vor.u32 %v2218_v39, %v2217_v52  ;;  %v2221_v34 = vrot.slane %v2217_v52, 4  ;;  %v2162_v50 = vmax.f32 %v2146_v20, 0.0 }
 0x29d   :  { %v2622_v28 = vrot.slane %v2620_v22, 1  ;;  %4575 = vmatmul.msk.bf16.vlgmr.msrb.gmra.mxu1 %vm1691_vm6, %v3214_v16  ;;  %v1871_v32 = vpop.f32.mrf.mxu3  ;;  %v2819_v11 = vpack.c.b16 %v2789_v51, %v2788_v27 }
 0x29e   :  { %v2373_v33 = vsel %vm5880_vm12, %v2220_v25, %v2372_v59  ;;  %v2376_v35 = vsel %vm5886_vm13, %v2221_v34, %v2375_v24  ;;  %v2178_v36 = vpack.c.bf16 %v2162_v50, %v2162_v50  ;;  %v1989_v41 = vadd.f32 %v5899_v62, %v1871_v32  ;;  %v4393_v46 = vld [vmem:[#allocation3 + $0x10] sm:$0xf]  ;;  %v4750_v32 = vld [vmem:[%s6697_s5 + $0x88] sm:$0xff] }
 0x29f   :  { %v2454_v9 = vld [vmem:[#allocation3 + $0x10] sm:$0xf]  ;;  %2374 = vst [vmem:[#allocation3 + $0x18] sm:$0xf] %v2373_v33  ;;  %v2623_v61 = vor.u32 %v2622_v28, %v2618_v63  ;;  %v5928_v26 = vpop.f32.mrf.mxu0  ;;  %v2094_v54 = vpop.f32.mrf.mxu1  ;;  %v2835_v48 = vrot.slane %v2819_v11, 1  ;;  %3117 = vmatpush.bf16.msra.mxu2 %v4750_v32 }
 0x2a0   :  { %v4719_v47 = vld [vmem:[#allocation3 + $0x10] sm:$0x10]  ;;  %v2502_v53 = vsel %vm4954_vm4, %v2454_v9, 0  ;;  %2377 = vst [vmem:[#allocation3 + $0x1c] sm:$0x1] %v2376_v35  ;;  %v2223_v19 = vshrl.u32 %v2178_v36, 16  ;;  %v2127_v45 = vadd.f32 %v2094_v54, %v1989_v41 }
 0x2a1   :  { %v4394_v55 = vor.u32 %v4719_v47, %v4393_v46  ;;  %v2455_v42 = vld [vmem:[#allocation3 + $0x14] sm:$0x1]  ;;  %2724 = vrot.lane.b32.xlu2 %v2623_v61, %s4823_s26  ;;  %v2915_v62 = vunpack.c.l.b16 %v2835_v48  ;;  %v2790_v44 = vunpack.c.l.b16 %v2502_v53  ;;  %v2226_v60 = vshll.u32 %v2178_v36, 16  ;;  %v2384_v36 = vld [vmem:[#allocation3 + $0x28] sm:$0xf] }
 0x2a2   :  { %v2503_v7 = vsel %vm4973_vm7, %v2455_v42, 0  ;;  %v2225_v49 = vrot.slane %v2223_v19, 7  ;;  %v2147_v57 = vadd.f32 %v5861_v40, %v2127_v45  ;;  %v2387_v41 = vld [vmem:[#allocation3 + $0x2c] sm:$0x1] }
 0x2a3   :  { %v2627_v30 = vshll.u32 %v4394_v55, 16  ;;  %v2996_v5 = vpack.c.b16 %v2915_v62, %v2913_v29  ;;  %v2791_v17 = vunpack.c.l.b16 %v2503_v7  ;;  %v2625_v21 = vshrl.u32 %v4394_v55, 16 }
 0x2a4   :  { %v2228_v12 = vor.u32 %v2226_v60, %v2225_v49  ;;  %v2229_v56 = vrot.slane %v2225_v49, 4  ;;  %v2163_v6 = vmax.f32 %v2147_v57, 0.0 }
 0x2a5   :  { %v2629_v3 = vrot.slane %v2627_v30, 1  ;;  %4519 = vmatmul.msk.bf16.vlgmr.msra.gmra.mxu3 %vm1691_vm6, %v2996_v5  ;;  %v1874_v10 = vpop.f32.mrf.mxu3  ;;  %v2820_v13 = vpack.c.b16 %v2791_v17, %v2790_v44 }
 0x2a6   :  { %v2379_v14 = vsel %vm5880_vm12, %v2228_v12, %v2378_v1  ;;  %v2382_v23 = vsel %vm5886_vm13, %v2229_v56, %v2381_v18  ;;  %v2179_v58 = vpack.c.bf16 %v2163_v6, %v2163_v6  ;;  %v1992_v27 = vadd.f32 %v5910_v2, %v1874_v10  ;;  %v4397_v29 = vld [vmem:[#allocation3 + $0x18] sm:$0xf] }
 0x2a7   :  { %v2456_v38 = vld [vmem:[#allocation3 + $0x18] sm:$0xf]  ;;  %2380 = vst [vmem:[#allocation3 + $0x20] sm:$0xf] %v2379_v14  ;;  %v5942_v52 = vpop.f32.mrf.mxu0  ;;  %v2097_v39 = vpop.f32.mrf.mxu1  ;;  %v2630_v20 = vor.u32 %v2629_v3, %v2625_v21  ;;  %v2836_v22 = vrot.slane %v2820_v13, 1 }
 0x2a8   :  { %v4720_v59 = vld [vmem:[#allocation3 + $0x18] sm:$0x10]  ;;  %v2504_v24 = vsel %vm4954_vm4, %v2456_v38, 0  ;;  %2383 = vst [vmem:[#allocation3 + $0x24] sm:$0x1] %v2382_v23  ;;  %v2231_v16 = vshrl.u32 %v2179_v58, 16  ;;  %v2128_v51 = vadd.f32 %v2097_v39, %v1992_v27 }
 0x2a9   :  { %v4398_v25 = vor.u32 %v4720_v59, %v4397_v29  ;;  %v2457_v34 = vld [vmem:[#allocation3 + $0x1c] sm:$0x1]  ;;  %2726 = vrot.lane.b32.xlu0 %v2630_v20, %s4823_s26  ;;  %v2917_v2 = vunpack.c.l.b16 %v2836_v22  ;;  %v2792_v28 = vunpack.c.l.b16 %v2504_v24  ;;  %v2234_v11 = vshll.u32 %v2179_v58, 16  ;;  %v2390_v58 = vld [vmem:[#allocation3 + $0x30] sm:$0xf] }
 0x2aa   :  { %v2505_v50 = vsel %vm4973_vm7, %v2457_v34, 0  ;;  %v2233_v63 = vrot.slane %v2231_v16, 7  ;;  %v2148_v33 = vadd.f32 %v5861_v40, %v2128_v51  ;;  %v2393_v27 = vld [vmem:[#allocation3 + $0x34] sm:$0x1] }
 0x2ab   :  { %v2634_v35 = vshll.u32 %v4398_v25, 16  ;;  %v5953_v46 = vpack.c.b16 %v2917_v2, %v2915_v62  ;;  %v2793_v9 = vunpack.c.l.b16 %v2505_v50  ;;  %v2632_v19 = vshrl.u32 %v4398_v25, 16 }
 0x2ac   :  { %v2236_v61 = vor.u32 %v2234_v11, %v2233_v63  ;;  %v2237_v54 = vrot.slane %v2233_v63, 4  ;;  %v2164_v48 = vmax.f32 %v2148_v33, 0.0 }
 0x2ad   :  { %v2636_v47 = vrot.slane %v2634_v35, 1  ;;  %4576 = vmatmul.msk.bf16.gmra.mxu1 %vm1691_vm6, %v5953_v46  ;;  %v1876_v53 = vpop.f32.mrf.mxu3  ;;  %v2821_v45 = vpack.c.b16 %v2793_v9, %v2792_v28 }
 0x2ae   :  { %v2385_v55 = vsel %vm5880_vm12, %v2236_v61, %v2384_v36  ;;  %v2388_v42 = vsel %vm5886_vm13, %v2237_v54, %v2387_v41  ;;  %v2180_v62 = vpack.c.bf16 %v2164_v48, %v2164_v48  ;;  %v1994_v7 = vadd.f32 %v5928_v26, %v1876_v53  ;;  %v4401_v44 = vld [vmem:[#allocation3 + $0x20] sm:$0xf] }
 0x2af   :  { %v5962_v49 = vld [vmem:[#allocation3 + $0x20] sm:$0xf]  ;;  %2386 = vst [vmem:[#allocation3 + $0x28] sm:$0xf] %v2385_v55  ;;  %v2099_v60 = vpop.f32.mrf.mxu1  ;;  %v2637_v57 = vor.u32 %v2636_v47, %v2632_v19  ;;  %v2837_v30 = vrot.slane %v2821_v45, 1  ;;  %v5967_v6 = vpop.f32.mrf.mxu0 }
 0x2b0   :  { %v4721_v1 = vld [vmem:[#allocation3 + $0x20] sm:$0x10]  ;;  %v2506_v18 = vsel %vm4954_vm4, %v5962_v49, 0  ;;  %2389 = vst [vmem:[#allocation3 + $0x2c] sm:$0x1] %v2388_v42  ;;  %v2239_v5 = vshrl.u32 %v2180_v62, 16  ;;  %v2129_v17 = vadd.f32 %v2099_v60, %v1994_v7 }
 0x2b1   :  { %v4402_v12 = vor.u32 %v4721_v1, %v4401_v44  ;;  %v2459_v56 = vld [vmem:[#allocation3 + $0x24] sm:$0x1]  ;;  %2728 = vrot.lane.b32.xlu1 %v2637_v57, %s4823_s26  ;;  %v2919_v26 = vunpack.c.l.b16 %v2837_v30  ;;  %v2794_v10 = vunpack.c.l.b16 %v2506_v18  ;;  %v2242_v13 = vshll.u32 %v2180_v62, 16  ;;  %v2396_v62 = vld [vmem:[#allocation3 + $0x38] sm:$0xf] }
 0x2b2   :  { %v2507_v3 = vsel %vm4973_vm7, %v2459_v56, 0  ;;  %v2241_v21 = vrot.slane %v2239_v5, 7  ;;  %v2149_v14 = vadd.f32 %v5861_v40, %v2129_v17  ;;  %v4749_v53 = vld [vmem:[%s6697_s5 + $0x80] sm:$0xff]  ;;  %v2399_v7 = vld [vmem:[#allocation3 + $0x3c] sm:$0x1] }
 0x2b3   :  { %v2641_v23 = vshll.u32 %v4402_v12, 16  ;;  %v2998_v29 = vpack.c.b16 %v2919_v26, %v2917_v2  ;;  %v2795_v38 = vunpack.c.l.b16 %v2507_v3  ;;  %v2639_v16 = vshrl.u32 %v4402_v12, 16  ;;  %3118 = vmatpush.bf16.msra.mxu2 %v4749_v53 }
 0x2b4   :  { %v2244_v39 = vor.u32 %v2242_v13, %v2241_v21  ;;  %v2245_v20 = vrot.slane %v2241_v21, 4  ;;  %v2165_v22 = vmax.f32 %v2149_v14, 0.0 }
 0x2b5   :  { %v2643_v59 = vrot.slane %v2641_v23, 1  ;;  %4520 = vmatmul.msk.bf16.gmra.mxu3 %vm1691_vm6, %v2998_v29  ;;  %v1879_v24 = vpop.f32.mrf.mxu3  ;;  %v2822_v51 = vpack.c.b16 %v2795_v38, %v2794_v10 }
 0x2b6   :  { %v2391_v25 = vsel %vm5880_vm12, %v2244_v39, %v2390_v58  ;;  %v2394_v34 = vsel %vm5886_vm13, %v2245_v20, %v2393_v27  ;;  %v2181_v50 = vpack.c.bf16 %v2165_v22, %v2165_v22  ;;  %v1997_v28 = vadd.f32 %v5942_v52, %v1879_v24  ;;  %v4405_v2 = vld [vmem:[#allocation3 + $0x28] sm:$0xf] }
 0x2b7   :  { %v5979_v32 = vld [vmem:[#allocation3 + $0x28] sm:$0xf]  ;;  %2392 = vst [vmem:[#allocation3 + $0x30] sm:$0xf] %v2391_v25  ;;  %v2102_v63 = vpop.f32.mrf.mxu1  ;;  %v2644_v11 = vor.u32 %v2643_v59, %v2639_v16  ;;  %v2838_v33 = vrot.slane %v2822_v51, 1  ;;  %v2001_v44 = vpop.f32.mrf.mxu0 }
 0x2b8   :  { %v4722_v35 = vld [vmem:[#allocation3 + $0x28] sm:$0x10]  ;;  %v2508_v36 = vsel %vm4954_vm4, %v5979_v32, 0  ;;  %2395 = vst [vmem:[#allocation3 + $0x34] sm:$0x1] %v2394_v34  ;;  %v2247_v41 = vshrl.u32 %v2181_v50, 16  ;;  %v2130_v9 = vadd.f32 %v2102_v63, %v1997_v28 }
 0x2b9   :  { %v4406_v61 = vor.u32 %v4722_v35, %v4405_v2  ;;  %v2461_v54 = vld [vmem:[#allocation3 + $0x2c] sm:$0x1]  ;;  %2730 = vrot.lane.b32.xlu2 %v2644_v11, %s4823_s26  ;;  %v2921_v52 = vunpack.c.l.b16 %v2838_v33  ;;  %v2796_v47 = vunpack.c.l.b16 %v2508_v36  ;;  %v2250_v45 = vshll.u32 %v2181_v50, 16  ;;  %v2402_v28 = vld [vmem:[#allocation3 + $0x40] sm:$0xf] }
 0x2ba   :  { %v2509_v48 = vsel %vm4973_vm7, %v2461_v54, 0  ;;  %v2249_v19 = vrot.slane %v2247_v41, 7  ;;  %v2150_v55 = vadd.f32 %v5861_v40, %v2130_v9  ;;  %v2405_v2 = vld [vmem:[#allocation3 + $0x44] sm:$0x1] }
 0x2bb   :  { %v2648_v42 = vshll.u32 %v4406_v61, 16  ;;  %v5991_v60 = vpack.c.b16 %v2921_v52, %v2919_v26  ;;  %v2797_v57 = vunpack.c.l.b16 %v2509_v48  ;;  %v2646_v12 = vshrl.u32 %v4406_v61, 16 }
 0x2bc   :  { %v2252_v30 = vor.u32 %v2250_v45, %v2249_v19  ;;  %v2253_v1 = vrot.slane %v2249_v19, 4  ;;  %v2166_v18 = vmax.f32 %v2150_v55, 0.0 }
 0x2bd   :  { %v2650_v5 = vrot.slane %v2648_v42, 1  ;;  %4577 = vmatmul.msk.bf16.gmra.mxu1 %vm1691_vm6, %v5991_v60  ;;  %v1881_v17 = vpop.f32.mrf.mxu3  ;;  %v2823_v56 = vpack.c.b16 %v2797_v57, %v2796_v47 }
 0x2be   :  { %v2397_v3 = vsel %vm5880_vm12, %v2252_v30, %v2396_v62  ;;  %v2400_v10 = vsel %vm5886_vm13, %v2253_v1, %v2399_v7  ;;  %v2182_v26 = vpack.c.bf16 %v2166_v18, %v2166_v18  ;;  %v1999_v21 = vadd.f32 %v5967_v6, %v1881_v17  ;;  %v4409_v13 = vld [vmem:[#allocation3 + $0x30] sm:$0xf] }
 0x2bf   :  { %v6000_v14 = vld [vmem:[#allocation3 + $0x30] sm:$0xf]  ;;  %2398 = vst [vmem:[#allocation3 + $0x38] sm:$0xf] %v2397_v3  ;;  %v2104_v23 = vpop.f32.mrf.mxu1  ;;  %v2651_v58 = vor.u32 %v2650_v5, %v2646_v12  ;;  %v2839_v27 = vrot.slane %v2823_v56, 1  ;;  %v2003_v9 = vpop.f32.mrf.mxu0  ;;  %v4748_v3 = vld [vmem:[%s6697_s5 + $0x78] sm:$0xff] }
 0x2c0   :  { %v4723_v29 = vld [vmem:[#allocation3 + $0x30] sm:$0x10]  ;;  %v2510_v38 = vsel %vm4954_vm4, %v6000_v14, 0  ;;  %2401 = vst [vmem:[#allocation3 + $0x3c] sm:$0x1] %v2400_v10  ;;  %v2255_v39 = vshrl.u32 %v2182_v26, 16  ;;  %v2131_v20 = vadd.f32 %v2104_v23, %v1999_v21  ;;  %3119 = vmatpush.bf16.msra.mxu2 %v4748_v3 }
 0x2c1   :  { %v4410_v22 = vor.u32 %v4723_v29, %v4409_v13  ;;  %v2463_v59 = vld [vmem:[#allocation3 + $0x34] sm:$0x1]  ;;  %2732 = vrot.lane.b32.xlu0 %v2651_v58, %s4823_s26  ;;  %v2923_v6 = vunpack.c.l.b16 %v2839_v27  ;;  %v2798_v16 = vunpack.c.l.b16 %v2510_v38  ;;  %v2258_v25 = vshll.u32 %v2182_v26, 16  ;;  %v2408_v23 = vld [vmem:[#allocation3 + $0x48] sm:$0xf] }
 0x2c2   :  { %v2511_v24 = vsel %vm4973_vm7, %v2463_v59, 0  ;;  %v2257_v51 = vrot.slane %v2255_v39, 7  ;;  %v2151_v34 = vadd.f32 %v5861_v40, %v2131_v20  ;;  %v2411_v58 = vld [vmem:[#allocation3 + $0x4c] sm:$0x1] }
 0x2c3   :  { %v2655_v50 = vshll.u32 %v4410_v22, 16  ;;  %v3000_v63 = vpack.c.b16 %v2923_v6, %v2921_v52  ;;  %v2799_v11 = vunpack.c.l.b16 %v2511_v24  ;;  %v2653_v54 = vshrl.u32 %v4410_v22, 16 }
 0x2c4   :  { %v2260_v33 = vor.u32 %v2258_v25, %v2257_v51  ;;  %v2261_v35 = vrot.slane %v2257_v51, 4  ;;  %v2167_v36 = vmax.f32 %v2151_v34, 0.0 }
 0x2c5   :  { %v2657_v41 = vrot.slane %v2655_v50, 1  ;;  %4521 = vmatmul.msk.bf16.gmra.mxu3 %vm1691_vm6, %v3000_v63  ;;  %v1884_v61 = vpop.f32.mrf.mxu3  ;;  %v2824_v48 = vpack.c.b16 %v2799_v11, %v2798_v16 }
 0x2c6   :  { %v2403_v47 = vsel %vm5880_vm12, %v2260_v33, %v2402_v28  ;;  %v2406_v53 = vsel %vm5886_vm13, %v2261_v35, %v2405_v2  ;;  %v2183_v19 = vpack.c.bf16 %v2167_v36, %v2167_v36  ;;  %v2002_v45 = vadd.f32 %v2001_v44, %v1884_v61  ;;  %v4413_v52 = vld [vmem:[#allocation3 + $0x38] sm:$0xf] }
 0x2c7   :  { %v6014_v55 = vld [vmem:[#allocation3 + $0x38] sm:$0xf]  ;;  %2404 = vst [vmem:[#allocation3 + $0x40] sm:$0xf] %v2403_v47  ;;  %v2107_v42 = vpop.f32.mrf.mxu1  ;;  %v2658_v62 = vor.u32 %v2657_v41, %v2653_v54  ;;  %v2840_v7 = vrot.slane %v2824_v48, 1  ;;  %v2006_v2 = vpop.f32.mrf.mxu0 }
 0x2c8   :  { %v4724_v57 = vld [vmem:[#allocation3 + $0x38] sm:$0x10]  ;;  %v2512_v30 = vsel %vm4954_vm4, %v6014_v55, 0  ;;  %2407 = vst [vmem:[#allocation3 + $0x44] sm:$0x1] %v2406_v53  ;;  %v2263_v1 = vshrl.u32 %v2183_v19, 16  ;;  %v2132_v18 = vadd.f32 %v2107_v42, %v2002_v45 }
 0x2c9   :  { %v4414_v5 = vor.u32 %v4724_v57, %v4413_v52  ;;  %v2465_v17 = vld [vmem:[#allocation3 + $0x3c] sm:$0x1]  ;;  %2734 = vrot.lane.b32.xlu1 %v2658_v62, %s4823_s26  ;;  %v2925_v44 = vunpack.c.l.b16 %v2840_v7  ;;  %v2800_v56 = vunpack.c.l.b16 %v2512_v30  ;;  %v2266_v26 = vshll.u32 %v2183_v19, 16  ;;  %v2414_v7 = vld [vmem:[#allocation3 + $0x50] sm:$0xf] }
 0x2ca   :  { %v2513_v12 = vsel %vm4973_vm7, %v2465_v17, 0  ;;  %v2265_v10 = vrot.slane %v2263_v1, 7  ;;  %v2152_v21 = vadd.f32 %v5861_v40, %v2132_v18  ;;  %v4740_v19 = vld [vmem:[%s6697_s5 + $0x38] sm:$0xff]  ;;  %v2417_v57 = vld [vmem:[#allocation3 + $0x54] sm:$0x1] }
 0x2cb   :  { %v2662_v13 = vshll.u32 %v4414_v5, 16  ;;  %v6026_v27 = vpack.c.b16 %v2925_v44, %v2923_v6  ;;  %v2801_v29 = vunpack.c.l.b16 %v2513_v12  ;;  %v2660_v24 = vshrl.u32 %v4414_v5, 16  ;;  %3333 = vmatpush.bf16.msra.mxu0 %v4740_v19 }
 0x2cc   :  { %v2268_v38 = vor.u32 %v2266_v26, %v2265_v10  ;;  %v2269_v39 = vrot.slane %v2265_v10, 4  ;;  %v2168_v20 = vmax.f32 %v2152_v21, 0.0  ;;  %v4739_v26 = vld [vmem:[%s6697_s5 + $0x30] sm:$0xff] }
 0x2cd   :  { %v2664_v22 = vrot.slane %v2662_v13, 1  ;;  %4578 = vmatmul.msk.bf16.gmra.mxu1 %vm1691_vm6, %v6026_v27  ;;  %v1886_v59 = vpop.f32.mrf.mxu3  ;;  %v2825_v16 = vpack.c.b16 %v2801_v29, %v2800_v56 }
 0x2ce   :  { %v2409_v51 = vsel %vm5880_vm12, %v2268_v38, %v2408_v23  ;;  %v2412_v25 = vsel %vm5886_vm13, %v2269_v39, %v2411_v58  ;;  %v2184_v6 = vpack.c.bf16 %v2168_v20, %v2168_v20  ;;  %v2004_v34 = vadd.f32 %v2003_v9, %v1886_v59  ;;  %v4417_v50 = vld [vmem:[#allocation3 + $0x40] sm:$0xf] }
 0x2cf   :  { %v6034_v28 = vld [vmem:[#allocation3 + $0x40] sm:$0xf]  ;;  %2410 = vst [vmem:[#allocation3 + $0x48] sm:$0xf] %v2409_v51  ;;  %v2109_v63 = vpop.f32.mrf.mxu1  ;;  %v2665_v11 = vor.u32 %v2664_v22, %v2660_v24  ;;  %v6036_v33 = vrot.slane %v2825_v16, 1  ;;  %3334 = vmatpush.bf16.msra.mxu0 %v4739_v26 }
 0x2d0   :  { %v4725_v35 = vld [vmem:[#allocation3 + $0x40] sm:$0x10]  ;;  %v2514_v36 = vsel %vm4954_vm4, %v6034_v28, 0  ;;  %2413 = vst [vmem:[#allocation3 + $0x4c] sm:$0x1] %v2412_v25  ;;  %v2271_v41 = vshrl.u32 %v2184_v6, 16  ;;  %v2133_v61 = vadd.f32 %v2109_v63, %v2004_v34 }
 0x2d1   :  { %v4418_v54 = vor.u32 %v4725_v35, %v4417_v50  ;;  %v2467_v48 = vld [vmem:[#allocation3 + $0x44] sm:$0x1]  ;;  %2736 = vrot.lane.b32.xlu2 %v2665_v11, %s4823_s26  ;;  %v2967_v9 = vunpack.c.l.b16 %v6036_v33  ;;  %v2802_v53 = vunpack.c.l.b16 %v2514_v36  ;;  %v2274_v52 = vshll.u32 %v2184_v6, 16  ;;  %v2008_v6 = vpop.f32.mrf.mxu0  ;;  %v4747_v63 = vld [vmem:[%s6697_s5 + $0x70] sm:$0xff]  ;;  %v4738_v11 = vld [vmem:[%s6697_s5 + $0x28] sm:$0xff] }
 0x2d2   :  { %v2515_v47 = vsel %vm4973_vm7, %v2467_v48, 0  ;;  %v2273_v45 = vrot.slane %v2271_v41, 7  ;;  %v2153_v42 = vadd.f32 %v5861_v40, %v2133_v61  ;;  %v2423_v48 = vld [vmem:[#allocation3 + $0x5c] sm:$0x1]  ;;  %3120 = vmatpush.bf16.msra.mxu2 %v4747_v63  ;;  %v2429_v63 = vld [vmem:[#allocation3 + $0x64] sm:$0x1] }
 0x2d3   :  { %v2669_v62 = vshll.u32 %v4418_v54, 16  ;;  %v3002_v30 = vpack.c.b16 %v2967_v9, %v2925_v44  ;;  %v2803_v1 = vunpack.c.l.b16 %v2515_v47  ;;  %v2667_v3 = vshrl.u32 %v4418_v54, 16  ;;  %v2420_v54 = vld [vmem:[#allocation3 + $0x58] sm:$0xf]  ;;  %3335 = vmatpush.bf16.msra.mxu0 %v4738_v11 }
 0x2d4   :  { %v2276_v18 = vor.u32 %v2274_v52, %v2273_v45  ;;  %v2277_v5 = vrot.slane %v2273_v45, 4  ;;  %v2169_v17 = vmax.f32 %v2153_v42, 0.0 }
 0x2d5   :  { %v2671_v12 = vrot.slane %v2669_v62, 1  ;;  %4522 = vmatmul.msk.bf16.gmra.mxu3 %vm1691_vm6, %v3002_v30  ;;  %v1889_v56 = vpop.f32.mrf.mxu3  ;;  %v2826_v10 = vpack.c.b16 %v2803_v1, %v2802_v53  ;;  %v4737_v30 = vld [vmem:[%s6697_s5 + $0x20] sm:$0xff] }
 0x2d6   :  { %v2415_v21 = vsel %vm5880_vm12, %v2276_v18, %v2414_v7  ;;  %v2418_v44 = vsel %vm5886_vm13, %v2277_v5, %v2417_v57  ;;  %v2185_v13 = vpack.c.bf16 %v2169_v17, %v2169_v17  ;;  %v2007_v23 = vadd.f32 %v2006_v2, %v1889_v56  ;;  %v4421_v58 = vld [vmem:[#allocation3 + $0x48] sm:$0xf] }
 0x2d7   :  { %v6059_v29 = vld [vmem:[#allocation3 + $0x48] sm:$0xf]  ;;  %2416 = vst [vmem:[#allocation3 + $0x50] sm:$0xf] %v2415_v21  ;;  %v2112_v38 = vpop.f32.mrf.mxu1  ;;  %v2672_v39 = vor.u32 %v2671_v12, %v2667_v3  ;;  %v6061_v20 = vrot.slane %v2826_v10, 1  ;;  %3336 = vmatpush.bf16.msra.mxu0 %v4737_v30 }
 0x2d8   :  { %v4726_v22 = vld [vmem:[#allocation3 + $0x48] sm:$0x10]  ;;  %v2516_v59 = vsel %vm4954_vm4, %v6059_v29, 0  ;;  %2419 = vst [vmem:[#allocation3 + $0x54] sm:$0x1] %v2418_v44  ;;  %v2279_v24 = vshrl.u32 %v2185_v13, 16  ;;  %v2134_v16 = vadd.f32 %v2112_v38, %v2007_v23 }
 0x2d9   :  { %v4422_v51 = vor.u32 %v4726_v22, %v4421_v58  ;;  %v2469_v25 = vld [vmem:[#allocation3 + $0x4c] sm:$0x1]  ;;  %2738 = vrot.lane.b32.xlu0 %v2672_v39, %s4823_s26  ;;  %v2927_v34 = vunpack.c.l.b16 %v6061_v20  ;;  %v2804_v2 = vunpack.c.l.b16 %v2516_v59  ;;  %v2282_v36 = vshll.u32 %v2185_v13, 16 }
 0x2da   :  { %v2517_v50 = vsel %vm4973_vm7, %v2469_v25, 0  ;;  %v2281_v35 = vrot.slane %v2279_v24, 7  ;;  %v2154_v41 = vadd.f32 %v5861_v40, %v2134_v16  ;;  %v4746_v59 = vld [vmem:[%s6697_s5 + $0x68] sm:$0xff]  ;;  %v4736_v24 = vld [vmem:[%s6697_s5 + $0x18] sm:$0xff] }
 0x2db   :  { %v2676_v61 = vshll.u32 %v4422_v51, 16  ;;  %v3222_v47 = vpack.c.b16 %v2927_v34, %v4924_v15  ;;  %v2805_v53 = vunpack.c.l.b16 %v2517_v50  ;;  %v2674_v7 = vshrl.u32 %v4422_v51, 16  ;;  %v2011_v50 = vpop.f32.mrf.mxu0  ;;  %3121 = vmatpush.bf16.msra.mxu2 %v4746_v59  ;;  %3337 = vmatpush.bf16.msra.mxu0 %v4736_v24  ;;  %v2432_v59 = vld [vmem:[#allocation3 + $0x68] sm:$0xf]  ;;  %v2435_v24 = vld [vmem:[#allocation3 + $0x6c] sm:$0x1] }
 0x2dc   :  { %v2284_v19 = vor.u32 %v2282_v36, %v2281_v35  ;;  %v2285_v45 = vrot.slane %v2281_v35, 4  ;;  %v2170_v52 = vmax.f32 %v2154_v41, 0.0 }
 0x2dd   :  { %v2678_v42 = vrot.slane %v2676_v61, 1  ;;  %4579 = vmatmul.msk.bf16.gmra.mxu1 %vm1691_vm6, %v3222_v47  ;;  %v1891_v62 = vpop.f32.mrf.mxu3  ;;  %v2827_v57 = vpack.c.b16 %v2805_v53, %v2804_v2  ;;  %v2426_v2 = vld [vmem:[#allocation3 + $0x60] sm:$0xf] }
 0x2de   :  { %v2421_v1 = vsel %vm5880_vm12, %v2284_v19, %v2420_v54  ;;  %v2424_v18 = vsel %vm5886_vm13, %v2285_v45, %v2423_v48  ;;  %v2186_v5 = vpack.c.bf16 %v2170_v52, %v2170_v52  ;;  %v2009_v17 = vadd.f32 %v2008_v6, %v1891_v62  ;;  %v4425_v12 = vld [vmem:[#allocation3 + $0x50] sm:$0xf] }
 0x2df   :  { %v6086_v56 = vld [vmem:[#allocation3 + $0x50] sm:$0xf]  ;;  %2422 = vst [vmem:[#allocation3 + $0x58] sm:$0xf] %v2421_v1  ;;  %v2114_v3 = vpop.f32.mrf.mxu1  ;;  %v2679_v10 = vor.u32 %v2678_v42, %v2674_v7  ;;  %v6088_v26 = vrot.slane %v2827_v57, 1 }
 0x2e0   :  { %v4727_v21 = vld [vmem:[#allocation3 + $0x50] sm:$0x10]  ;;  %v2518_v44 = vsel %vm4954_vm4, %v6086_v56, 0  ;;  %2425 = vst [vmem:[#allocation3 + $0x5c] sm:$0x1] %v2424_v18  ;;  %v2287_v13 = vshrl.u32 %v2186_v5, 16  ;;  %v2135_v23 = vadd.f32 %v2114_v3, %v2009_v17 }
 0x2e1   :  { %v4426_v58 = vor.u32 %v4727_v21, %v4425_v12  ;;  %v2471_v38 = vld [vmem:[#allocation3 + $0x54] sm:$0x1]  ;;  %2740 = vrot.lane.b32.xlu1 %v2679_v10, %s4823_s26  ;;  %v2929_v39 = vunpack.c.l.b16 %v6088_v26  ;;  %v2806_v22 = vunpack.c.l.b16 %v2518_v44  ;;  %v2290_v51 = vshll.u32 %v2186_v5, 16 }
 0x2e2   :  { %v2519_v20 = vsel %vm4973_vm7, %v2471_v38, 0  ;;  %v2289_v16 = vrot.slane %v2287_v13, 7  ;;  %v2155_v25 = vadd.f32 %v5861_v40, %v2135_v23  ;;  %v4735_v40 = vld [vmem:[%s6697_s5 + $0x10] sm:$0xff]  ;;  %v4734_v13 = vld [vmem:[%s6697_s5 + $0x8] sm:$0xff]  ;;  %v4815_v38 = vld [vmem:[%s6696_s4] ss:$0 sm:$0xff] }
 0x2e3   :  { %v2683_v6 = vshll.u32 %v4426_v58, 16  ;;  %v3004_v11 = vpack.c.b16 %v2929_v39, %v2927_v34  ;;  %v2807_v35 = vunpack.c.l.b16 %v2519_v20  ;;  %v2681_v47 = vshrl.u32 %v4426_v58, 16  ;;  %v4745_v34 = vld [vmem:[%s6697_s5 + $0x60] sm:$0xff]  ;;  %3338 = vmatpush.bf16.msra.mxu0 %v4735_v40 }
 0x2e4   :  { %v2292_v36 = vor.u32 %v2290_v51, %v2289_v16  ;;  %v2293_v41 = vrot.slane %v2289_v16, 4  ;;  %v2171_v61 = vmax.f32 %v2155_v25, 0.0  ;;  %3122 = vmatpush.bf16.msra.mxu2 %v4745_v34 }
 0x2e5   :  { %v2685_v54 = vrot.slane %v2683_v6, 1  ;;  %4523 = vmatmul.msk.bf16.gmra.mxu3 %vm1691_vm6, %v3004_v11  ;;  %v1894_v48 = vpop.f32.mrf.mxu3  ;;  %v2828_v53 = vpack.c.b16 %v2807_v35, %v2806_v22 }
 0x2e6   :  { %v2427_v19 = vsel %vm5880_vm12, %v2292_v36, %v2426_v2  ;;  %v2430_v45 = vsel %vm5886_vm13, %v2293_v41, %v2429_v63  ;;  %v2187_v52 = vpack.c.bf16 %v2171_v61, %v2171_v61  ;;  %v2012_v42 = vadd.f32 %v2011_v50, %v1894_v48  ;;  %v4429_v62 = vld [vmem:[#allocation3 + $0x58] sm:$0xf]  ;;  %v2013_v63 = vpop.f32.mrf.mxu0  ;;  %v4733_v41 = vld [vmem:[%s6697_s5] sm:$0xff] }
 0x2e7   :  { %v6115_v7 = vld [vmem:[#allocation3 + $0x58] sm:$0xf]  ;;  %2428 = vst [vmem:[#allocation3 + $0x60] sm:$0xf] %v2427_v19  ;;  %v2117_v57 = vpop.f32.mrf.mxu1  ;;  %v2686_v30 = vor.u32 %v2685_v54, %v2681_v47  ;;  %v6117_v1 = vrot.slane %v2828_v53, 1  ;;  %3339 = vmatpush.bf16.msra.mxu0 %v4734_v13 }
 0x2e8   :  { %v4728_v18 = vld [vmem:[#allocation3 + $0x58] sm:$0x10]  ;;  %v2520_v5 = vsel %vm4954_vm4, %v6115_v7, 0  ;;  %2431 = vst [vmem:[#allocation3 + $0x64] sm:$0x1] %v2430_v45  ;;  %v2295_v17 = vshrl.u32 %v2187_v52, 16  ;;  %v2136_v12 = vadd.f32 %v2117_v57, %v2012_v42 }
 0x2e9   :  { %v4430_v3 = vor.u32 %v4728_v18, %v4429_v62  ;;  %v2473_v10 = vld [vmem:[#allocation3 + $0x5c] sm:$0x1]  ;;  %2742 = vrot.lane.b32.xlu2 %v2686_v30, %s4823_s26  ;;  %v2931_v26 = vunpack.c.l.b16 %v6117_v1  ;;  %v2808_v44 = vunpack.c.l.b16 %v2520_v5  ;;  %v2298_v58 = vshll.u32 %v2187_v52, 16 }
 0x2ea   :  { %v2521_v21 = vsel %vm4973_vm7, %v2473_v10, 0  ;;  %v2297_v23 = vrot.slane %v2295_v17, 7  ;;  %v2156_v20 = vadd.f32 %v4815_v38, %v2136_v12 }
 0x2eb   :  { %v2690_v22 = vshll.u32 %v4430_v3, 16  ;;  %v6132_v16 = vpack.c.b16 %v2931_v26, %v2929_v39  ;;  %v2809_v51 = vunpack.c.l.b16 %v2521_v21  ;;  %v2688_v35 = vshrl.u32 %v4430_v3, 16  ;;  %3340 = vmatpush.bf16.msra.mxu0 %v4733_v41  ;;  %v2438_v21 = vld [vmem:[#allocation3 + $0x70] sm:$0xf] }
 0x2ec   :  { %v2300_v25 = vor.u32 %v2298_v58, %v2297_v23  ;;  %v2301_v6 = vrot.slane %v2297_v23, 4  ;;  %v2172_v50 = vmax.f32 %v2156_v20, 0.0 }
 0x2ed   :  { %v2692_v2 = vrot.slane %v2690_v22, 1  ;;  %4580 = vmatmul.msk.bf16.gmra.mxu1 %vm1691_vm6, %v6132_v16  ;;  %v1896_v11 = vpop.f32.mrf.mxu3  ;;  %v2829_v36 = vpack.c.b16 %v2809_v51, %v2808_v44  ;;  %v2441_v44 = vld [vmem:[#allocation3 + $0x74] sm:$0x1]  ;;  %v4768_v51 = vld [vmem:[%s6697_s5 + $0x118] sm:$0xff] }
 0x2ee   :  { %v2433_v39 = vsel %vm5880_vm12, %v2300_v25, %v2432_v59  ;;  %v2436_v61 = vsel %vm5886_vm13, %v2301_v6, %v2435_v24  ;;  %v2188_v54 = vpack.c.bf16 %v2172_v50, %v2172_v50  ;;  %v2014_v48 = vadd.f32 %v2013_v63, %v1896_v11  ;;  %v4433_v47 = vld [vmem:[#allocation3 + $0x60] sm:$0xf]  ;;  %3593 = vmatpush.bf16.msrb.mxu3 %v4768_v51 }
 0x2ef   :  { %v6143_v53 = vld [vmem:[#allocation3 + $0x60] sm:$0xf]  ;;  %2434 = vst [vmem:[#allocation3 + $0x68] sm:$0xf] %v2433_v39  ;;  %v2119_v40 = vpop.f32.mrf.mxu1  ;;  %v2693_v34 = vor.u32 %v2692_v2, %v2688_v35  ;;  %v2845_v19 = vrot.slane %v2829_v36, 1 }
 0x2f0   :  { %v4729_v45 = vld [vmem:[#allocation3 + $0x60] sm:$0x10]  ;;  %v2522_v52 = vsel %vm4954_vm4, %v6143_v53, 0  ;;  %2437 = vst [vmem:[#allocation3 + $0x6c] sm:$0x1] %v2436_v61  ;;  %v2303_v42 = vshrl.u32 %v2188_v54, 16  ;;  %v2137_v62 = vadd.f32 %v2119_v40, %v2014_v48 }
 0x2f1   :  { %v4434_v57 = vor.u32 %v4729_v45, %v4433_v47  ;;  %v2475_v30 = vld [vmem:[#allocation3 + $0x64] sm:$0x1]  ;;  %2744 = vrot.lane.b32.xlu0 %v2693_v34, %s4823_s26  ;;  %v2933_v1 = vunpack.c.l.b16 %v2845_v19  ;;  %v2810_v5 = vunpack.c.l.b16 %v2522_v52  ;;  %v2306_v12 = vshll.u32 %v2188_v54, 16  ;;  %v4767_v40 = vld [vmem:[%s6697_s5 + $0x110] sm:$0xff] }
 0x2f2   :  { %v2523_v18 = vsel %vm4973_vm7, %v2475_v30, 0  ;;  %v2305_v17 = vrot.slane %v2303_v42, 7  ;;  %v2157_v3 = vadd.f32 %v4815_v38, %v2137_v62  ;;  %v4764_v42 = vld [vmem:[%s6697_s5 + $0xf8] sm:$0xff]  ;;  %3594 = vmatpush.bf16.msrb.mxu3 %v4767_v40 }
 0x2f3   :  { %v2697_v10 = vshll.u32 %v4434_v57, 16  ;;  %v3006_v13 = vpack.c.b16 %v2933_v1, %v2931_v26  ;;  %v2695_v23 = vshrl.u32 %v4434_v57, 16  ;;  %v2811_v58 = vunpack.c.l.b16 %v2523_v18  ;;  %v2444_v62 = vld [vmem:[#allocation3 + $0x78] sm:$0xf]  ;;  %v2447_v57 = vld [vmem:[#allocation3 + $0x7c] sm:$0x1]  ;;  %3540 = vmatpush.bf16.msrb.mxu2 %v4764_v42 }
 0x2f4   :  { %v2308_v20 = vor.u32 %v2306_v12, %v2305_v17  ;;  %v2309_v22 = vrot.slane %v2305_v17, 4  ;;  %v2173_v59 = vmax.f32 %v2157_v3, 0.0  ;;  %v4766_v3 = vld [vmem:[%s6697_s5 + $0x108] sm:$0xff] }
 0x2f5   :  { %v2699_v24 = vrot.slane %v2697_v10, 1  ;;  %4524 = vmatmul.msk.bf16.gmra.mxu3 %vm1691_vm6, %v3006_v13  ;;  %v2830_v25 = vpack.c.b16 %v2811_v58, %v2810_v5 }
 0x2f6   :  { %v2439_v38 = vsel %vm5880_vm12, %v2308_v20, %v2438_v21  ;;  %v2442_v6 = vsel %vm5886_vm13, %v2309_v22, %v2441_v44  ;;  %v2189_v26 = vpack.c.bf16 %v2173_v59, %v2173_v59  ;;  %v4437_v2 = vld [vmem:[#allocation3 + $0x68] sm:$0xf]  ;;  %3595 = vmatpush.bf16.msrb.mxu3 %v4766_v3 }
 0x2f7   :  { %v2700_v50 = vor.u32 %v2699_v24, %v2695_v23  ;;  %v6159_v63 = vld [vmem:[#allocation3 + $0x68] sm:$0xf]  ;;  %2440 = vst [vmem:[#allocation3 + $0x70] sm:$0xf] %v2439_v38  ;;  %v2846_v11 = vrot.slane %v2830_v25, 1  ;;  %3541 = vmatpush.bf16.msrb.mxu2 %v4763_v37 }
 0x2f8   :  { %v4730_v35 = vld [vmem:[#allocation3 + $0x68] sm:$0x10]  ;;  %v2524_v36 = vsel %vm4954_vm4, %v6159_v63, 0  ;;  %2443 = vst [vmem:[#allocation3 + $0x74] sm:$0x1] %v2442_v6  ;;  %v2311_v41 = vshrl.u32 %v2189_v26, 16 }
 0x2f9   :  { %2746 = vrot.lane.b32.xlu1 %v2700_v50, %s4823_s26  ;;  %v4438_v39 = vor.u32 %v4730_v35, %v4437_v2  ;;  %v2477_v61 = vld [vmem:[#allocation3 + $0x6c] sm:$0x1]  ;;  %v2935_v54 = vunpack.c.l.b16 %v2846_v11  ;;  %v2812_v47 = vunpack.c.l.b16 %v2524_v36  ;;  %v2314_v19 = vshll.u32 %v2189_v26, 16 }
 0x2fa   :  { %v2525_v48 = vsel %vm4973_vm7, %v2477_v61, 0  ;;  %v2313_v34 = vrot.slane %v2311_v41, 7  ;;  %3596 = vmatpush.bf16.msrb.mxu3 %v4765_v8  ;;  %v4762_v8 = vld [vmem:[%s6697_s5 + $0xe8] sm:$0xff] }
 0x2fb   :  { %v2704_v45 = vshll.u32 %v4438_v39, 16  ;;  %v2813_v52 = vunpack.c.l.b16 %v2525_v48  ;;  %v6173_v30 = vpack.c.b16 %v2935_v54, %v2933_v1  ;;  %v2702_v17 = vshrl.u32 %v4438_v39, 16  ;;  %v2725_v61 = vpop.permute.xlu2 %2724  ;;  %3542 = vmatpush.bf16.msrb.mxu2 %v4762_v8 }
 0x2fc   :  { %v2316_v18 = vor.u32 %v2314_v19, %v2313_v34  ;;  %v2317_v5 = vrot.slane %v2313_v34, 4  ;;  %v3457_v8 = vpack.c.b16 %v4924_v15, %v2967_v9 }
 0x2fd   :  { %v2706_v12 = vrot.slane %v2704_v45, 1  ;;  %4581 = vmatmul.msk.bf16.gmra.mxu1 %vm1691_vm6, %v6173_v30  ;;  %v2831_v10 = vpack.c.b16 %v2813_v52, %v2812_v47  ;;  %v4816_v52 = vld [vmem:[#allocation3 + $0x8] sm:$0xf] }
 0x2fe   :  { %v2445_v21 = vsel %vm5880_vm12, %v2316_v18, %v2444_v62  ;;  %v2448_v1 = vsel %vm5886_vm13, %v2317_v5, %v2447_v57  ;;  %v4441_v13 = vld [vmem:[#allocation3 + $0x70] sm:$0xf]  ;;  %v2483_v42 = vsel %vm5271_vm10, %v4816_v52, 0 }
 0x2ff   :  { %v2707_v44 = vor.u32 %v2706_v12, %v2702_v17  ;;  %v6184_v23 = vld [vmem:[#allocation3 + $0x70] sm:$0xf]  ;;  %2446 = vst [vmem:[#allocation3 + $0x78] sm:$0xf] %v2445_v21  ;;  %v2847_v58 = vrot.slane %v2831_v10, 1  ;;  %v2855_v57 = vsel %vm1691_vm6, %v2483_v42, %v2725_v61 }
 0x300   :  { %v4731_v20 = vld [vmem:[#allocation3 + $0x70] sm:$0x10]  ;;  %v2526_v22 = vsel %vm4954_vm4, %v6184_v23, 0  ;;  %2449 = vst [vmem:[#allocation3 + $0x7c] sm:$0x1] %v2448_v1 }
 0x301   :  { %2748 = vrot.lane.b32.xlu2 %v2707_v44, %s4823_s26  ;;  %v4442_v31 = vor.u32 %v4731_v20, %v4441_v13  ;;  %v2479_v59 = vld [vmem:[#allocation3 + $0x74] sm:$0x1]  ;;  %v2814_v24 = vunpack.c.l.b16 %v2526_v22  ;;  %v2937_v51 = vunpack.c.l.b16 %v2847_v58  ;;  %v4817_v12 = vld [vmem:[#allocation3] sm:$0xf]  ;;  %v2914_v44 = vunpack.c.l.b16 %v2855_v57 }
 0x302   :  { %v2527_v25 = vsel %vm4973_vm7, %v2479_v59, 0  ;;  %v2482_v43 = vsel %vm5271_vm10, %v4817_v12, 0  ;;  %v2489_v57 = vsel %vm5271_vm10, %v6014_v55, 0 }
 0x303   :  { %v2711_v38 = vshll.u32 %v4442_v31, 16  ;;  %v2815_v6 = vunpack.c.l.b16 %v2527_v25  ;;  %v3008_v26 = vpack.c.b16 %v2937_v51, %v2935_v54  ;;  %v2709_v50 = vshrl.u32 %v4442_v31, 16  ;;  %v4818_v25 = vld [vmem:[#allocation3 + $0x10] sm:$0xf] }
 0x305   :  { %v2713_v2 = vrot.slane %v2711_v38, 1  ;;  %v2832_v11 = vpack.c.b16 %v2815_v6, %v2814_v24  ;;  %4525 = vmatmul.msk.bf16.gmra.mxu3 %vm1691_vm6, %v3008_v26  ;;  %v2484_v38 = vsel %vm5271_vm10, %v4818_v25, 0 }
 0x306   :  { %v4445_v41 = vld [vmem:[#allocation3 + $0x78] sm:$0xf] }
 0x307   :  { %v2714_v35 = vor.u32 %v2713_v2, %v2709_v50  ;;  %v2848_v36 = vrot.slane %v2832_v11, 1  ;;  %v6196_v39 = vld [vmem:[#allocation3 + $0x78] sm:$0xf]  ;;  %v4732_v48 = vld [vmem:[#allocation3 + $0x78] sm:$0x10]  ;;  %v2486_v11 = vsel %vm5271_vm10, %v5962_v49, 0 }
 0x308   :  { %v2481_v47 = vld [vmem:[#allocation3 + $0x7c] sm:$0x1]  ;;  %v2528_v40 = vsel %vm4954_vm4, %v6196_v39, 0  ;;  %v4446_v34 = vor.u32 %v4732_v48, %v4445_v41  ;;  %v4819_v41 = vld [vmem:[#allocation3 + $0x18] sm:$0xf]  ;;  %v4761_v49 = vld [vmem:[%s6697_s5 + $0xe0] sm:$0xff] }
 0x309   :  { %2750 = vrot.lane.b32.xlu0 %v2714_v35, %s4823_s26  ;;  %v2939_v54 = vunpack.c.l.b16 %v2848_v36  ;;  %v2529_v19 = vsel %vm4973_vm7, %v2481_v47, 0  ;;  %v2816_v45 = vunpack.c.l.b16 %v2528_v40  ;;  %v2485_v61 = vsel %vm5271_vm10, %v4819_v41, 0  ;;  %3543 = vmatpush.bf16.msrb.mxu2 %v4761_v49 }
 0x30a   :  { %v2817_v62 = vunpack.c.l.b16 %v2529_v19  ;;  %v2718_v5 = vshll.u32 %v4446_v34, 16  ;;  %v2716_v21 = vshrl.u32 %v4446_v34, 16  ;;  %vm4064_vm4 = vcmask 1041409  }
 0x30b   :  { %v6207_v18 = vpack.c.b16 %v2939_v54, %v2937_v51  ;;  %v2723_v17 = vpop.permute.xlu1 %2722  ;;  %vm4089_vm7 = vcmask 1024  }
 0x30c   :  { %v2833_v3 = vpack.c.b16 %v2817_v62, %v2816_v45  ;;  %v2852_v10 = vsel %vm1691_vm6, %v2482_v43, %v2723_v17  ;;  %v2720_v1 = vrot.slane %v2718_v5, 1  ;;  %v2487_v45 = vsel %vm5271_vm10, %v5979_v32, 0  ;;  %v4760_v32 = vld [vmem:[%s6697_s5 + $0xd8] sm:$0xff] }
 0x30d   :  { %v2912_v13 = vunpack.c.l.b16 %v2852_v10  ;;  %4582 = vmatmul.msk.bf16.gmra.mxu1 %vm1691_vm6, %v6207_v18  ;;  %v2488_v17 = vsel %vm5271_vm10, %v6000_v14, 0  ;;  %3544 = vmatpush.bf16.msrb.mxu2 %v4760_v32  ;;  %v4759_v14 = vld [vmem:[%s6697_s5 + $0xd0] sm:$0xff]  ;;  %v3705_v32 = vld [vmem:[%s6698_s7 + $0x78] sm:$0xff] }
 0x30e   :  { %v6217_v58 = vrot.slane %v2833_v3, 1  ;;  %v2721_v20 = vor.u32 %v2720_v1, %v2716_v21  ;;  %v2490_v21 = vsel %vm5271_vm10, %v6034_v28, 0  ;;  %v2491_v28 = vsel %vm5271_vm10, %v6059_v29, 0  ;;  %v4758_v29 = vld [vmem:[%s6697_s5 + $0xc8] sm:$0xff]  ;;  %3710 = vmatpush.msrb.mxu0 %v3705_v32 }
 0x30f   :  { %v2995_v22 = vpack.c.b16 %v2914_v44, %v2912_v13  ;;  %v3213_v31 = vpack.c.b16 %v2912_v13, %v4924_v15 }
 0x310   :  { %v2969_v59 = vunpack.c.l.b16 %v6217_v58  ;;  %2752 = vrot.lane.b32.xlu1 %v2721_v20, %s4823_s26  ;;  %3711 = vmatpush.msrb.mxu0 %v3704_v0 }
 0x311   :  { %3123 = vmatmul.bf16.vlgmr.msra.gmra.mxu2 %v2995_v22  ;;  %3341 = vmatmul.bf16.vlgmr.msra.gmra.mxu0 %v3213_v31 }
 0x312   :  { %v3010_v24 = vpack.c.b16 %v2969_v59, %v2939_v54  ;;  %3545 = vmatpush.bf16.msrb.mxu2 %v4759_v14 }
 0x313   :  { %v2731_v50 = vpop.permute.xlu2 %2730 }
 0x314   :  { %v2864_v35 = vsel %vm1691_vm6, %v2486_v11, %v2731_v50  ;;  %v2493_v50 = vsel %vm5271_vm10, %v6115_v7, 0  ;;  %v2494_v7 = vsel %vm5271_vm10, %v6143_v53, 0 }
 0x315   :  { %4526 = vmatmul.msk.bf16.gmra.mxu3 %vm1691_vm6, %v3010_v24  ;;  %v2920_v47 = vunpack.c.l.b16 %v2864_v35 }
 0x316   :  { %3546 = vmatpush.bf16.msrb.mxu2 %v4758_v29 }
 0x31b   :  { %v2727_v51 = vpop.permute.xlu0 %2726 }
 0x31c   :  { %v2858_v6 = vsel %vm1691_vm6, %v2484_v38, %v2727_v51 }
 0x31d   :  { %v2916_v26 = vunpack.c.l.b16 %v2858_v6 }
 0x31f   :  { %v6231_v2 = vpack.c.b16 %v2916_v26, %v2914_v44 }
 0x321   :  { %3346 = vmatmul.bf16.gmra.mxu0 %v6231_v2 }
 0x323   :  { %v2729_v36 = vpop.permute.xlu1 %2728 }
 0x324   :  { %v2861_v48 = vsel %vm1691_vm6, %v2485_v61, %v2729_v36  ;;  %v2495_v61 = vsel %vm5271_vm10, %v6159_v63, 0 }
 0x325   :  { %v2918_v40 = vunpack.c.l.b16 %v2861_v48  ;;  %4655 = vmatmul.msk.bf16.vlgmr.msrb.gmra.mxu3 %vm1691_vm6, %v5953_v46 }
 0x327   :  { %v2997_v54 = vpack.c.b16 %v2918_v40, %v2916_v26  ;;  %v6243_v34 = vpack.c.b16 %v2920_v47, %v2918_v40  ;;  %v4757_v40 = vld [vmem:[%s6697_s5 + $0xc0] sm:$0xff] }
 0x328   :  { %v6283_v13 = vpop.f32.mrf.mxu3  ;;  %3547 = vmatpush.bf16.msrb.mxu2 %v4757_v40 }
 0x329   :  { %3128 = vmatmul.bf16.gmra.mxu2 %v2997_v54 }
 0x32b   :  { %v2737_v46 = vpop.permute.xlu2 %2736 }
 0x32c   :  { %v6259_v5 = vsel %vm1691_vm6, %v2489_v57, %v2737_v46 }
 0x32d   :  { %v2966_v12 = vunpack.c.l.b16 %v6259_v5 }
 0x330   :  { %v6300_v26 = vpop.f32.mrf.mxu3 }
 0x331   :  { %3351 = vmatmul.bf16.gmra.mxu0 %v6243_v34 }
 0x333   :  { %v2733_v19 = vpop.permute.xlu0 %2732 }
 0x334   :  { %v2867_v52 = vsel %vm1691_vm6, %v2487_v45, %v2733_v19 }
 0x335   :  { %v2922_v42 = vunpack.c.l.b16 %v2867_v52  ;;  %4656 = vmatmul.msk.bf16.gmra.mxu3 %vm1691_vm6, %v5991_v60 }
 0x337   :  { %v2999_v62 = vpack.c.b16 %v2922_v42, %v2920_v47 }
 0x338   :  { %v6306_v33 = vpop.f32.mrf.mxu3 }
 0x339   :  { %3133 = vmatmul.bf16.gmra.mxu2 %v2999_v62 }
 0x33b   :  { %v2735_v37 = vpop.permute.xlu1 %2734 }
 0x33c   :  { %v2870_v60 = vsel %vm1691_vm6, %v2488_v17, %v2735_v37  ;;  %v2497_v17 = vsel %vm5271_vm10, %v6196_v39, 0  ;;  %v3459_v39 = vpack.c.b16 %v4924_v15, %v2969_v59  ;;  %v3701_v59 = vld [vmem:[%s6698_s7 + $0x58] sm:$0xff] }
 0x33d   :  { %v2924_v43 = vunpack.c.l.b16 %v2870_v60 }
 0x33f   :  { %v6269_v55 = vpack.c.b16 %v2924_v43, %v2922_v42  ;;  %v3001_v3 = vpack.c.b16 %v2966_v12, %v2924_v43  ;;  %v2496_v42 = vsel %vm5271_vm10, %v6184_v23, 0 }
 0x340   :  { %v6325_v19 = vpop.f32.mrf.mxu3 }
 0x341   :  { %3356 = vmatmul.bf16.gmra.mxu0 %v6269_v55 }
 0x343   :  { %v2743_v20 = vpop.permute.xlu2 %2742 }
 0x345   :  { %4657 = vmatmul.msk.bf16.gmra.mxu3 %vm1691_vm6, %v6026_v27  ;;  %v2492_v27 = vsel %vm5271_vm10, %v6086_v56, 0 }
 0x346   :  { %v2882_v31 = vsel %vm1691_vm6, %v2492_v27, %v2743_v20 }
 0x347   :  { %v2930_v25 = vunpack.c.l.b16 %v2882_v31  ;;  %v3698_v31 = vld [vmem:[%s6698_s7 + $0x40] sm:$0xff] }
 0x348   :  { %v6332_v53 = vpop.f32.mrf.mxu3 }
 0x349   :  { %3138 = vmatmul.bf16.gmra.mxu2 %v3001_v3 }
 0x34b   :  { %v2739_v10 = vpop.permute.xlu0 %2738 }
 0x34c   :  { %v2876_v1 = vsel %vm1691_vm6, %v2490_v21, %v2739_v10  ;;  %v3702_v21 = vld [vmem:[%s6698_s7 + $0x60] sm:$0xff] }
 0x34d   :  { %v2926_v44 = vunpack.c.l.b16 %v2876_v1 }
 0x34f   :  { %v3221_v22 = vpack.c.b16 %v2926_v44, %v4924_v15 }
 0x350   :  { %v6343_v37 = vpop.f32.mrf.mxu3 }
 0x351   :  { %3361 = vmatmul.bf16.gmra.mxu0 %v3221_v22  ;;  %v3699_v22 = vld [vmem:[%s6698_s7 + $0x48] sm:$0xff] }
 0x353   :  { %v2741_v24 = vpop.permute.xlu1 %2740 }
 0x354   :  { %v2879_v51 = vsel %vm1691_vm6, %v2491_v28, %v2741_v24 }
 0x355   :  { %v2928_v38 = vunpack.c.l.b16 %v2879_v51  ;;  %4658 = vmatmul.msk.bf16.gmra.mxu3 %vm1691_vm6, %v3457_v8  ;;  %v3456_v8 = vpack.c.b16 %v4924_v15, %v2966_v12  ;;  %v3697_v51 = vld [vmem:[%s6698_s7 + $0x38] sm:$0xff]  ;;  %v3695_v12 = vld [vmem:[%s6698_s7 + $0x28] sm:$0xff] }
 0x357   :  { %v3003_v6 = vpack.c.b16 %v2928_v38, %v2926_v44  ;;  %v6298_v56 = vpack.c.b16 %v2930_v25, %v2928_v38  ;;  %v3696_v38 = vld [vmem:[%s6698_s7 + $0x30] sm:$0xff] }
 0x358   :  { %v6357_v3 = vpop.f32.mrf.mxu3 }
 0x359   :  { %3143 = vmatmul.bf16.gmra.mxu2 %v3003_v6 }
 0x35b   :  { %v2749_v36 = vpop.permute.xlu2 %2748 }
 0x35c   :  { %v2891_v48 = vsel %vm1691_vm6, %v2495_v61, %v2749_v36 }
 0x35d   :  { %v2936_v54 = vunpack.c.l.b16 %v2891_v48 }
 0x360   :  { %v6365_v14 = vpop.f32.mrf.mxu3 }
 0x361   :  { %3366 = vmatmul.bf16.gmra.mxu0 %v6298_v56 }
 0x363   :  { %v2745_v9 = vpop.permute.xlu0 %2744 }
 0x364   :  { %v2885_v11 = vsel %vm1691_vm6, %v2493_v50, %v2745_v9  ;;  %v3694_v9 = vld [vmem:[%s6698_s7 + $0x20] sm:$0xff] }
 0x365   :  { %v2932_v35 = vunpack.c.l.b16 %v2885_v11  ;;  %4659 = vmatmul.msk.bf16.gmra.mxu3 %vm1691_vm6, %v6132_v16 }
 0x367   :  { %v3005_v41 = vpack.c.b16 %v2932_v35, %v2930_v25 }
 0x368   :  { %v6385_v44 = vpop.f32.mrf.mxu3 }
 0x369   :  { %3148 = vmatmul.bf16.gmra.mxu2 %v3005_v41  ;;  %v3692_v41 = vld [vmem:[%s6698_s7 + $0x10] sm:$0xff] }
 0x36b   :  { %v2747_v47 = vpop.permute.xlu1 %2746 }
 0x36c   :  { %v2888_v16 = vsel %vm1691_vm6, %v2494_v7, %v2747_v47  ;;  %v3691_v47 = vld [vmem:[%s6698_s7 + $0x8] sm:$0xff] }
 0x36d   :  { %v2934_v49 = vunpack.c.l.b16 %v2888_v16  ;;  %v3391_v16 = vpop.f32.mrf.mxu1 }
 0x36f   :  { %v6327_v63 = vpack.c.b16 %v2934_v49, %v2932_v35  ;;  %v3007_v45 = vpack.c.b16 %v2936_v54, %v2934_v49  ;;  %v3693_v35 = vld [vmem:[%s6698_s7 + $0x18] sm:$0xff]  ;;  %v3690_v49 = vld [vmem:[%s6698_s7] sm:$0xff] }
 0x370   :  { %v6395_v27 = vpop.f32.mrf.mxu3 }
 0x371   :  { %3371 = vmatmul.bf16.gmra.mxu0 %v6327_v63 }
 0x375   :  { %4660 = vmatmul.msk.bf16.gmra.mxu3 %vm1691_vm6, %v6173_v30 }
 0x378   :  { %v6403_v24 = vpop.f32.mrf.mxu3 }
 0x379   :  { %3153 = vmatmul.bf16.gmra.mxu2 %v3007_v45 }
 0x37b   :  { %v2751_v52 = vpop.permute.xlu0 %2750 }
 0x37c   :  { %v2894_v46 = vsel %vm1691_vm6, %v2496_v42, %v2751_v52  ;;  %v3393_v52 = vpop.f32.mrf.mxu1 }
 0x37d   :  { %v2938_v62 = vunpack.c.l.b16 %v2894_v46 }
 0x37f   :  { %v6338_v57 = vpack.c.b16 %v2938_v62, %v2936_v54 }
 0x381   :  { %3376 = vmatmul.bf16.gmra.mxu0 %v6338_v57 }
 0x382   :  { %v2753_v30 = vpop.permute.xlu1 %2752 }
 0x383   :  { %v6350_v23 = vsel %vm1691_vm6, %v2497_v17, %v2753_v30 }
 0x384   :  { %v2968_v60 = vunpack.c.l.b16 %v6350_v23  ;;  %v3396_v32 = vpop.f32.mrf.mxu1 }
 0x385   :  { %4661 = vmatmul.msk.bf16.gmra.mxu3 %vm1691_vm6, %v6207_v18  ;;  %v3703_v18 = vld [vmem:[%s6698_s7 + $0x68] sm:$0xff] }
 0x386   :  { %v3009_v43 = vpack.c.b16 %v2968_v60, %v2938_v62  ;;  %3712 = vmatpush.msrb.mxu0 %v3703_v18  ;;  %v3458_v42 = vpack.c.b16 %v4924_v15, %v2968_v60 }
 0x388   :  { %3713 = vmatpush.msrb.mxu0 %v3702_v21 }
 0x389   :  { %3158 = vmatmul.bf16.gmra.mxu2 %v3009_v43 }
 0x38a   :  { %3714 = vmatpush.msrb.mxu0 %v3701_v59 }
 0x38c   :  { %v3398_v18 = vpop.f32.mrf.mxu1 }
 0x38e   :  { %v3342_v7 = vpop.f32.mrf.mxu0 }
 0x394   :  { %v6372_v10 = vpop.f32.mrf.mxu2 }
 0x395   :  { %4662 = vmatmul.msk.bf16.gmra.mxu3 %vm1691_vm6, %v3459_v39  ;;  %v3174_v43 = vadd.f32 %v6283_v13, %v6372_v10 }
 0x397   :  { %v3343_v39 = vadd.f32 %v3342_v7, %v3174_v43 }
 0x399   :  { %3548 = vmatmul.bf16.vlgmr.msrb.gmra.mxu2 %v6231_v2  ;;  %v3700_v2 = vld [vmem:[%s6698_s7 + $0x50] sm:$0xff]  ;;  %v3392_v23 = vadd.f32 %v3391_v16, %v3343_v39 }
 0x39a   :  { %3715 = vmatpush.msrb.mxu0 %v3700_v2  ;;  %v6477_v2 = vld [vmem:[%s6699_s6] ss:$0 sm:$0xff] }
 0x39c   :  { %v6377_v58 = vpop.f32.mrf.mxu2  ;;  %3716 = vmatpush.msrb.mxu0 %v3699_v22 }
 0x39d   :  { %v3176_v15 = vadd.f32 %v6300_v26, %v6377_v58 }
 0x39e   :  { %3717 = vmatpush.msrb.mxu0 %v3698_v31 }
 0x3a0   :  { %3718 = vmatpush.msrb.mxu0 %v3697_v51 }
 0x3a2   :  { %3719 = vmatpush.msrb.mxu0 %v3696_v38  ;;  %v3401_v38 = vpop.f32.mrf.mxu1 }
 0x3a4   :  { %3720 = vmatpush.msrb.mxu0 %v3695_v12 }
 0x3a6   :  { %3721 = vmatpush.msrb.mxu0 %v3694_v9 }
 0x3a8   :  { %3722 = vmatpush.msrb.mxu0 %v3693_v35 }
 0x3a9   :  { %3553 = vmatmul.bf16.gmra.mxu2 %v6243_v34 }
 0x3aa   :  { %3723 = vmatpush.msrb.mxu0 %v3692_v41  ;;  %v3403_v43 = vpop.f32.mrf.mxu1 }
 0x3ac   :  { %v6383_v1 = vpop.f32.mrf.mxu2  ;;  %3724 = vmatpush.msrb.mxu0 %v3691_v47 }
 0x3ad   :  { %v3179_v12 = vadd.f32 %v6306_v33, %v6383_v1 }
 0x3ae   :  { %3725 = vmatpush.msrb.mxu0 %v3690_v49 }
 0x3b4   :  { %v6390_v20 = vpop.f32.mrf.mxu2 }
 0x3b5   :  { %v3181_v49 = vadd.f32 %v6325_v19, %v6390_v20  ;;  %v3406_v19 = vpop.f32.mrf.mxu1 }
 0x3b9   :  { %3558 = vmatmul.bf16.gmra.mxu2 %v6269_v55  ;;  %v6413_v55 = vpop.f32.mrf.mxu3 }
 0x3bc   :  { %v6398_v34 = vpop.f32.mrf.mxu2 }
 0x3c1   :  { %v6422_v5 = vpop.f32.mrf.mxu3 }
 0x3c4   :  { %v6405_v28 = vpop.f32.mrf.mxu2 }
 0x3c9   :  { %3563 = vmatmul.bf16.gmra.mxu2 %v3456_v8  ;;  %v6433_v50 = vpop.f32.mrf.mxu3 }
 0x3cc   :  { %v6415_v25 = vpop.f32.mrf.mxu2 }
 0x3d1   :  { %v6441_v36 = vpop.f32.mrf.mxu3 }
 0x3d4   :  { %v6420_v6 = vpop.f32.mrf.mxu2 }
 0x3d9   :  { %3568 = vmatmul.bf16.gmra.mxu2 %v6298_v56  ;;  %v6448_v61 = vpop.f32.mrf.mxu3 }
 0x3dc   :  { %v6428_v29 = vpop.f32.mrf.mxu2 }
 0x3e1   :  { %v3598_v54 = vpop.f32.mrf.mxu3 }
 0x3e4   :  { %v6435_v11 = vpop.f32.mrf.mxu2 }
 0x3e9   :  { %3573 = vmatmul.bf16.gmra.mxu2 %v6327_v63  ;;  %v3344_v63 = vpop.f32.mrf.mxu0  ;;  %v3600_v46 = vpop.f32.mrf.mxu3 }
 0x3ea   :  { %v3345_v31 = vadd.f32 %v3344_v63, %v3176_v15 }
 0x3ec   :  { %v6443_v56 = vpop.f32.mrf.mxu2  ;;  %v3394_v9 = vadd.f32 %v3393_v52, %v3345_v31 }
 0x3f1   :  { %v3603_v30 = vpop.f32.mrf.mxu3 }
 0x3f4   :  { %v6450_v48 = vpop.f32.mrf.mxu2 }
 0x3f9   :  { %3578 = vmatmul.bf16.gmra.mxu2 %v6338_v57  ;;  %v3347_v57 = vpop.f32.mrf.mxu0  ;;  %v3605_v21 = vpop.f32.mrf.mxu3 }
 0x3fa   :  { %v3348_v41 = vadd.f32 %v3347_v57, %v3179_v12  ;;  %v3184_v57 = vadd.f32 %v6332_v53, %v6398_v34 }
 0x3fc   :  { %v6456_v40 = vpop.f32.mrf.mxu2  ;;  %v3397_v63 = vadd.f32 %v3396_v32, %v3348_v41 }
 0x401   :  { %v3349_v0 = vpop.f32.mrf.mxu0  ;;  %v3608_v58 = vpop.f32.mrf.mxu3 }
 0x402   :  { %v3350_v1 = vadd.f32 %v3349_v0, %v3181_v49  ;;  %v3186_v0 = vadd.f32 %v6343_v37, %v6405_v28  ;;  %v3191_v49 = vadd.f32 %v6365_v14, %v6420_v6 }
 0x404   :  { %v6461_v45 = vpop.f32.mrf.mxu2  ;;  %v3399_v15 = vadd.f32 %v3398_v18, %v3350_v1 }
 0x409   :  { %3583 = vmatmul.bf16.gmra.mxu2 %v3458_v42  ;;  %v3352_v13 = vpop.f32.mrf.mxu0  ;;  %v3610_v33 = vpop.f32.mrf.mxu3 }
 0x40a   :  { %v3353_v20 = vadd.f32 %v3352_v13, %v3184_v57 }
 0x40c   :  { %v6466_v62 = vpop.f32.mrf.mxu2 }
 0x411   :  { %v3354_v16 = vpop.f32.mrf.mxu0 }
 0x412   :  { %v3355_v34 = vadd.f32 %v3354_v16, %v3186_v0 }
 0x414   :  { %v6468_v17 = vpop.f32.mrf.mxu2  ;;  %v3404_v41 = vadd.f32 %v3403_v43, %v3355_v34 }
 0x41c   :  { %v3549_v59 = vpop.f32.mrf.mxu2 }
 0x41d   :  { %v3599_v60 = vadd.f32 %v3598_v54, %v3549_v59 }
 0x41f   :  { %v3638_v22 = vadd.f32 %v3599_v60, %v3392_v23  ;;  %v3357_v60 = vpop.f32.mrf.mxu0 }
 0x421   :  { %v3658_v8 = vadd.f32 %v6477_v2, %v3638_v22 }
 0x423   :  { %v3674_v10 = vmax.f32 %v3658_v8, 0.0 }
 0x424   :  { %v3551_v51 = vpop.f32.mrf.mxu2 }
 0x425   :  { %v3601_v26 = vadd.f32 %v3600_v46, %v3551_v51  ;;  %3726 = vmatmul.f32.vlgmr.msrb.gmra.mxu0 %v3674_v10  ;;  %v3402_v10 = vadd.f32 %v3401_v38, %v3353_v20  ;;  %v3196_v20 = vadd.f32 %v6395_v27, %v6435_v11 }
 0x427   :  { %v3639_v35 = vadd.f32 %v3601_v26, %v3394_v9  ;;  %v3359_v53 = vpop.f32.mrf.mxu0 }
 0x429   :  { %v3659_v47 = vadd.f32 %v6477_v2, %v3639_v35  ;;  %v3189_v35 = vadd.f32 %v6357_v3, %v6415_v25  ;;  %v3360_v3 = vadd.f32 %v3359_v53, %v3191_v49  ;;  %v3199_v53 = vadd.f32 %v6403_v24, %v6443_v56 }
 0x42a   :  { %v3204_v49 = vadd.f32 %v6422_v5, %v6456_v40 }
 0x42b   :  { %v3675_v7 = vmax.f32 %v3659_v47, 0.0  ;;  %v3358_v37 = vadd.f32 %v3357_v60, %v3189_v35 }
 0x42c   :  { %v3554_v54 = vpop.f32.mrf.mxu2 }
 0x42d   :  { %v3604_v42 = vadd.f32 %v3603_v30, %v3554_v54  ;;  %3729 = vmatmul.f32.gmra.mxu0 %v3675_v7  ;;  %v3613_v30 = vpop.f32.mrf.mxu3 }
 0x42f   :  { %v3640_v39 = vadd.f32 %v3604_v42, %v3397_v63  ;;  %v3362_v38 = vpop.f32.mrf.mxu0  ;;  %v3407_v63 = vadd.f32 %v3406_v19, %v3358_v37 }
 0x431   :  { %v3660_v52 = vadd.f32 %v6477_v2, %v3640_v39 }
 0x433   :  { %v3676_v46 = vmax.f32 %v3660_v52, 0.0 }
 0x434   :  { %v3556_v59 = vpop.f32.mrf.mxu2 }
 0x435   :  { %v3606_v23 = vadd.f32 %v3605_v21, %v3556_v59  ;;  %3732 = vmatmul.f32.gmra.mxu0 %v3676_v46  ;;  %v3408_v21 = vpop.f32.mrf.mxu1  ;;  %v3615_v26 = vpop.f32.mrf.mxu3  ;;  %v3194_v46 = vadd.f32 %v6385_v44, %v6428_v29 }
 0x436   :  { %v3409_v59 = vadd.f32 %v3408_v21, %v3360_v3 }
 0x437   :  { %v3641_v22 = vadd.f32 %v3606_v23, %v3399_v15  ;;  %v3363_v6 = vadd.f32 %v3362_v38, %v3194_v46 }
 0x439   :  { %v3661_v32 = vadd.f32 %v6477_v2, %v3641_v22 }
 0x43b   :  { %v3677_v31 = vmax.f32 %v3661_v32, 0.0 }
 0x43c   :  { %v3559_v8 = vpop.f32.mrf.mxu2 }
 0x43d   :  { %v3609_v51 = vadd.f32 %v3608_v58, %v3559_v8  ;;  %3735 = vmatmul.f32.gmra.mxu0 %v3677_v31  ;;  %v3411_v16 = vpop.f32.mrf.mxu1  ;;  %v3618_v39 = vpop.f32.mrf.mxu3 }
 0x43e   :  { %v3412_v32 = vadd.f32 %v3411_v16, %v3363_v6  ;;  %v3209_v6 = vadd.f32 %v6441_v36, %v6466_v62 }
 0x43f   :  { %v3642_v12 = vadd.f32 %v3609_v51, %v3402_v10 }
 0x441   :  { %v3662_v18 = vadd.f32 %v6477_v2, %v3642_v12 }
 0x443   :  { %v3678_v9 = vmax.f32 %v3662_v18, 0.0 }
 0x444   :  { %v3561_v13 = vpop.f32.mrf.mxu2 }
 0x445   :  { %v3611_v47 = vadd.f32 %v3610_v33, %v3561_v13  ;;  %3738 = vmatmul.f32.gmra.mxu0 %v3678_v9  ;;  %v3364_v33 = vpop.f32.mrf.mxu0  ;;  %v3413_v15 = vpop.f32.mrf.mxu1 }
 0x446   :  { %v3620_v14 = vpop.f32.mrf.mxu3  ;;  %v3365_v29 = vadd.f32 %v3364_v33, %v3196_v20  ;;  %v3206_v33 = vadd.f32 %v6433_v50, %v6461_v45 }
 0x447   :  { %v3643_v7 = vadd.f32 %v3611_v47, %v3404_v41  ;;  %v3201_v47 = vadd.f32 %v6413_v55, %v6450_v48 }
 0x448   :  { %v3414_v34 = vadd.f32 %v3413_v15, %v3365_v29 }
 0x449   :  { %v3663_v28 = vadd.f32 %v6477_v2, %v3643_v7 }
 0x44b   :  { %v3679_v58 = vmax.f32 %v3663_v28, 0.0 }
 0x44c   :  { %v3564_v54 = vpop.f32.mrf.mxu2 }
 0x44d   :  { %v3614_v42 = vadd.f32 %v3613_v30, %v3564_v54  ;;  %3741 = vmatmul.f32.gmra.mxu0 %v3679_v58  ;;  %v3367_v31 = vpop.f32.mrf.mxu0  ;;  %v3416_v44 = vpop.f32.mrf.mxu1 }
 0x44e   :  { %v3623_v10 = vpop.f32.mrf.mxu3  ;;  %v3368_v11 = vadd.f32 %v3367_v31, %v3199_v53 }
 0x44f   :  { %v3644_v1 = vadd.f32 %v3614_v42, %v3407_v63 }
 0x450   :  { %v3417_v7 = vadd.f32 %v3416_v44, %v3368_v11  ;;  %v3211_v44 = vadd.f32 %v6448_v61, %v6468_v17  ;;  %v6526_v61 = vld [vmem:[%s6700_s8] ss:$0 sm:$0xff] }
 0x451   :  { %v3664_v25 = vadd.f32 %v6477_v2, %v3644_v1 }
 0x453   :  { %v3680_v43 = vmax.f32 %v3664_v25, 0.0 }
 0x454   :  { %v3566_v52 = vpop.f32.mrf.mxu2 }
 0x455   :  { %v3616_v57 = vadd.f32 %v3615_v26, %v3566_v52  ;;  %3744 = vmatmul.f32.gmra.mxu0 %v3680_v43  ;;  %v3369_v27 = vpop.f32.mrf.mxu0  ;;  %v3418_v26 = vpop.f32.mrf.mxu1 }
 0x456   :  { %v3625_v35 = vpop.f32.mrf.mxu3  ;;  %v3370_v24 = vadd.f32 %v3369_v27, %v3201_v47 }
 0x457   :  { %v3645_v23 = vadd.f32 %v3616_v57, %v3409_v59 }
 0x458   :  { %v3419_v63 = vadd.f32 %v3418_v26, %v3370_v24 }
 0x459   :  { %v3665_v60 = vadd.f32 %v6477_v2, %v3645_v23 }
 0x45b   :  { %v3681_v22 = vmax.f32 %v3665_v60, 0.0 }
 0x45c   :  { %v3569_v19 = vpop.f32.mrf.mxu2 }
 0x45d   :  { %v3619_v30 = vadd.f32 %v3618_v39, %v3569_v19  ;;  %3747 = vmatmul.f32.gmra.mxu0 %v3681_v22  ;;  %v3372_v38 = vpop.f32.mrf.mxu0  ;;  %v3421_v16 = vpop.f32.mrf.mxu1 }
 0x45e   :  { %v3628_v39 = vpop.f32.mrf.mxu3  ;;  %v3373_v55 = vadd.f32 %v3372_v38, %v3204_v49 }
 0x45f   :  { %v3646_v8 = vadd.f32 %v3619_v30, %v3412_v32 }
 0x460   :  { %v3422_v52 = vadd.f32 %v3421_v16, %v3373_v55 }
 0x461   :  { %v3666_v0 = vadd.f32 %v6477_v2, %v3646_v8 }
 0x463   :  { %v3682_v51 = vmax.f32 %v3666_v0, 0.0 }
 0x464   :  { %v3571_v12 = vpop.f32.mrf.mxu2 }
 0x465   :  { %v3621_v18 = vadd.f32 %v3620_v14, %v3571_v12  ;;  %3750 = vmatmul.f32.gmra.mxu0 %v3682_v51  ;;  %v3374_v25 = vpop.f32.mrf.mxu0  ;;  %v3423_v59 = vpop.f32.mrf.mxu1 }
 0x466   :  { %v3630_v5 = vpop.f32.mrf.mxu3  ;;  %v3375_v40 = vadd.f32 %v3374_v25, %v3206_v33 }
 0x467   :  { %v3647_v21 = vadd.f32 %v3621_v18, %v3414_v34 }
 0x468   :  { %v3424_v60 = vadd.f32 %v3423_v59, %v3375_v40 }
 0x469   :  { %v3667_v9 = vadd.f32 %v6477_v2, %v3647_v21 }
 0x46b   :  { %v3683_v13 = vmax.f32 %v3667_v9, 0.0 }
 0x46c   :  { %v3574_v41 = vpop.f32.mrf.mxu2 }
 0x46d   :  { %v3624_v37 = vadd.f32 %v3623_v10, %v3574_v41  ;;  %3753 = vmatmul.f32.gmra.mxu0 %v3683_v13  ;;  %v3377_v19 = vpop.f32.mrf.mxu0  ;;  %v3426_v50 = vpop.f32.mrf.mxu1 }
 0x46e   :  { %v3378_v45 = vadd.f32 %v3377_v19, %v3209_v6  ;;  %v3633_v30 = vpop.f32.mrf.mxu3 }
 0x46f   :  { %v3648_v28 = vadd.f32 %v3624_v37, %v3417_v7  ;;  %v4825_v37 = vmov 1  }
 0x470   :  { %v3427_v29 = vadd.f32 %v3426_v50, %v3378_v45 }
 0x471   :  { %v3668_v56 = vadd.f32 %v6477_v2, %v3648_v28 }
 0x473   :  { %v3684_v58 = vmax.f32 %v3668_v56, 0.0 }
 0x474   :  { %v3576_v54 = vpop.f32.mrf.mxu2 }
 0x475   :  { %v3626_v42 = vadd.f32 %v3625_v35, %v3576_v54  ;;  %3756 = vmatmul.f32.gmra.mxu0 %v3684_v58  ;;  %v3379_v36 = vpop.f32.mrf.mxu0  ;;  %v3428_v12 = vpop.f32.mrf.mxu1 }
 0x476   :  { %v3380_v62 = vadd.f32 %v3379_v36, %v3211_v44  ;;  %v3635_v34 = vpop.f32.mrf.mxu3 }
 0x477   :  { %v3649_v1 = vadd.f32 %v3626_v42, %v3419_v63 }
 0x478   :  { %v3429_v21 = vadd.f32 %v3428_v12, %v3380_v62 }
 0x479   :  { %v3669_v48 = vadd.f32 %v6477_v2, %v3649_v1 }
 0x47b   :  { %v3685_v3 = vmax.f32 %v3669_v48, 0.0 }
 0x47c   :  { %v3579_v43 = vpop.f32.mrf.mxu2 }
 0x47d   :  { %v3629_v46 = vadd.f32 %v3628_v39, %v3579_v43  ;;  %3759 = vmatmul.f32.gmra.mxu0 %v3685_v3 }
 0x47f   :  { %v3650_v57 = vadd.f32 %v3629_v46, %v3422_v52 }
 0x481   :  { %v3670_v15 = vadd.f32 %v6477_v2, %v3650_v57 }
 0x483   :  { %v3686_v23 = vmax.f32 %v3670_v15, 0.0 }
 0x484   :  { %v3581_v14 = vpop.f32.mrf.mxu2 }
 0x485   :  { %v3631_v22 = vadd.f32 %v3630_v5, %v3581_v14  ;;  %3762 = vmatmul.f32.gmra.mxu0 %v3686_v23 }
 0x487   :  { %v3651_v20 = vadd.f32 %v3631_v22, %v3424_v60 }
 0x489   :  { %v3671_v32 = vadd.f32 %v6477_v2, %v3651_v20 }
 0x48b   :  { %v3687_v31 = vmax.f32 %v3671_v32, 0.0  ;;  %v4056_v32 = vld [vmem:[%s6701_s12 + $0x38] sm:$0xff] }
 0x48c   :  { %v3584_v8 = vpop.f32.mrf.mxu2  ;;  %4076 = vmatpush.msra.mxu1 %v4056_v32 }
 0x48d   :  { %v3634_v0 = vadd.f32 %v3633_v30, %v3584_v8  ;;  %3765 = vmatmul.f32.gmra.mxu0 %v3687_v31  ;;  %v6565_v30 = vld [vmem:[%s6702_s9 + $0x8] sm:$0xff] }
 0x48e   :  { %v6570_v31 = vld [vmem:[%s6703_s10 + $0x8] sm:$0xff] }
 0x48f   :  { %v3652_v10 = vadd.f32 %v3634_v0, %v3427_v29 }
 0x491   :  { %v3672_v51 = vadd.f32 %v6477_v2, %v3652_v10 }
 0x493   :  { %v3688_v53 = vmax.f32 %v3672_v51, 0.0 }
 0x494   :  { %v3586_v18 = vpop.f32.mrf.mxu2 }
 0x495   :  { %v3636_v27 = vadd.f32 %v3635_v34, %v3586_v18  ;;  %3768 = vmatmul.f32.gmra.mxu0 %v3688_v53 }
 0x497   :  { %v3653_v11 = vadd.f32 %v3636_v27, %v3429_v21  ;;  %v6584_v27 = vld [vmem:[%s6702_s9] sm:$0xff] }
 0x499   :  { %v3673_v9 = vadd.f32 %v6477_v2, %v3653_v11  ;;  %v3895_v11 = vld [vmem:[%s6703_s10] sm:$0xff] }
 0x49b   :  { %v3689_v26 = vmax.f32 %v3673_v9, 0.0 }
 0x49d   :  { %3771 = vmatmul.f32.gmra.mxu0 %v3689_v26  ;;  %v4055_v26 = vld [vmem:[%s6701_s12 + $0x30] sm:$0xff] }
 0x49e   :  { %4077 = vmatpush.msra.mxu1 %v4055_v26 }
 0x4a2   :  { %v3727_v17 = vpop.f32.mrf.mxu0 }
 0x4a3   :  { %v3728_v13 = vadd.f32 %v6526_v61, %v3727_v17 }
 0x4a5   :  { %v3775_v35 = vmax.f32 %v3728_v13, 0.0 }
 0x4a7   :  { %3801 = vperm.xlu1 %4778, %v3775_v35  }
 0x4aa   :  { %v3730_v41 = vpop.f32.mrf.mxu0 }
 0x4ab   :  { %v3731_v47 = vadd.f32 %v6526_v61, %v3730_v41 }
 0x4ad   :  { %v3776_v7 = vmax.f32 %v3731_v47, 0.0 }
 0x4af   :  { %4779 = vset.pattern.permute.xlu1 %v4825_v37  ;;  %3806 = vperm.xlu2 %4780, %v3776_v7  }
 0x4b0   :  { %3904 = vperm.xlu1 %4779, %v3775_v35  }
 0x4b2   :  { %v3733_v2 = vpop.f32.mrf.mxu0 }
 0x4b3   :  { %v3734_v28 = vadd.f32 %v6526_v61, %v3733_v2  ;;  %v3794_v2 = vld [vmem:[%s6702_s9 + $0x18] sm:$0xff] }
 0x4b5   :  { %v3777_v24 = vmax.f32 %v3734_v28, 0.0 }
 0x4b7   :  { %4781 = vset.pattern.permute.xlu2 %v4825_v37 }
 0x4b8   :  { %4782 = vset.pattern.permute.xlu1 %v4820_v4  ;;  %3908 = vperm.xlu2 %4781, %v3776_v7   ;;  %v4054_v7 = vld [vmem:[%s6701_s12 + $0x28] sm:$0xff] }
 0x4b9   :  { %3811 = vperm.xlu1 %4782, %v3777_v24   ;;  %4078 = vmatpush.msra.mxu1 %v4054_v7 }
 0x4ba   :  { %v3736_v56 = vpop.f32.mrf.mxu0 }
 0x4bb   :  { %v3737_v38 = vadd.f32 %v6526_v61, %v3736_v56 }
 0x4bd   :  { %v3778_v58 = vmax.f32 %v3737_v38, 0.0  ;;  %v3897_v38 = vld [vmem:[%s6703_s10 + $0x10] sm:$0xff] }
 0x4bf   :  { %3816 = vperm.xlu0 %4784, %v3778_v58  }
 0x4c0   :  { %3916 = vperm.xlu2 %4781, %v3778_v58  }
 0x4c1   :  { %4783 = vset.pattern.permute.xlu1 %v4825_v37 }
 0x4c2   :  { %3912 = vperm.xlu1 %4783, %v3777_v24   ;;  %v3739_v54 = vpop.f32.mrf.mxu0  ;;  %v3898_v24 = vld [vmem:[%s6703_s10 + $0x18] sm:$0xff] }
 0x4c3   :  { %v3740_v16 = vadd.f32 %v6526_v61, %v3739_v54 }
 0x4c5   :  { %v3779_v49 = vmax.f32 %v3740_v16, 0.0 }
 0x4c8   :  { %4785 = vset.pattern.permute.xlu2 %v4820_v4 }
 0x4c9   :  { %3821 = vperm.xlu2 %4785, %v3779_v49  }
 0x4ca   :  { %3920 = vperm.xlu1 %4783, %v3779_v49   ;;  %v3742_v63 = vpop.f32.mrf.mxu0 }
 0x4cb   :  { %v3743_v42 = vadd.f32 %v6526_v61, %v3742_v63 }
 0x4cd   :  { %v3780_v39 = vmax.f32 %v3743_v42, 0.0 }
 0x4cf   :  { %3826 = vperm.xlu0 %4784, %v3780_v39  }
 0x4d1   :  { %4786 = vset.pattern.permute.xlu2 %v4825_v37 }
 0x4d2   :  { %3924 = vperm.xlu2 %4786, %v3780_v39   ;;  %v3745_v1 = vpop.f32.mrf.mxu0  ;;  %4787 = vset.pattern.permute.xlu1 %v4820_v4 }
 0x4d3   :  { %v3746_v55 = vadd.f32 %v6526_v61, %v3745_v1 }
 0x4d5   :  { %v3781_v48 = vmax.f32 %v3746_v55, 0.0 }
 0x4d7   :  { %3831 = vperm.xlu1 %4787, %v3781_v48  }
 0x4da   :  { %v6542_v3 = vpop.f32.mrf.mxu0  ;;  %4789 = vset.pattern.permute.xlu2 %v4820_v4 }
 0x4db   :  { %v3749_v53 = vadd.f32 %v6526_v61, %v6542_v3 }
 0x4dd   :  { %v3782_v21 = vmax.f32 %v3749_v53, 0.0  ;;  %v4050_v53 = vld [vmem:[%s6701_s12 + $0x8] sm:$0xff] }
 0x4df   :  { %4788 = vset.pattern.permute.xlu1 %v4825_v37 }
 0x4e0   :  { %3928 = vperm.xlu1 %4788, %v3781_v48  }
 0x4e2   :  { %v3751_v25 = vpop.f32.mrf.mxu0 }
 0x4e3   :  { %v3752_v43 = vadd.f32 %v6526_v61, %v3751_v25 }
 0x4e5   :  { %v3783_v33 = vmax.f32 %v3752_v43, 0.0  ;;  %v4053_v43 = vld [vmem:[%s6701_s12 + $0x20] sm:$0xff] }
 0x4e6   :  { %4079 = vmatpush.msra.mxu1 %v4053_v43  ;;  %v3797_v43 = vld [vmem:[%s6702_s9 + $0x30] sm:$0xff] }
 0x4e7   :  { %3841 = vperm.xlu2 %4789, %v3783_v33  }
 0x4e8   :  { %3936 = vperm.xlu1 %4788, %v3783_v33  }
 0x4ea   :  { %v3754_v52 = vpop.f32.mrf.mxu0 }
 0x4eb   :  { %v3755_v46 = vadd.f32 %v6526_v61, %v3754_v52  ;;  %v4052_v52 = vld [vmem:[%s6701_s12 + $0x18] sm:$0xff] }
 0x4ec   :  { %4080 = vmatpush.msra.mxu1 %v4052_v52 }
 0x4ed   :  { %v3784_v59 = vmax.f32 %v3755_v46, 0.0 }
 0x4ef   :  { %4790 = vset.pattern.permute.xlu2 %v4825_v37  ;;  %3846 = vperm.xlu0 %4784, %v3784_v59  }
 0x4f0   :  { %3940 = vperm.xlu2 %4790, %v3784_v59   ;;  %4794 = vset.pattern.permute.xlu1 %v4820_v4 }
 0x4f2   :  { %v3757_v57 = vpop.f32.mrf.mxu0 }
 0x4f3   :  { %v3758_v5 = vadd.f32 %v6526_v61, %v3757_v57 }
 0x4f5   :  { %v3785_v40 = vmax.f32 %v3758_v5, 0.0  ;;  %v4051_v5 = vld [vmem:[%s6701_s12 + $0x10] sm:$0xff] }
 0x4f6   :  { %4081 = vmatpush.msra.mxu1 %v4051_v5 }
 0x4f7   :  { %3851 = vperm.xlu0 %4784, %v3785_v40  }
 0x4f8   :  { %4792 = vset.pattern.permute.xlu2 %v4820_v4  ;;  %4082 = vmatpush.msra.mxu1 %v4050_v53 }
 0x4fa   :  { %v3760_v15 = vpop.f32.mrf.mxu0 }
 0x4fb   :  { %v3761_v23 = vadd.f32 %v6526_v61, %v3760_v15 }
 0x4fd   :  { %v3786_v14 = vmax.f32 %v3761_v23, 0.0 }
 0x4ff   :  { %4791 = vset.pattern.permute.xlu0 %v4825_v37  ;;  %3856 = vperm.xlu2 %4792, %v3786_v14  }
 0x500   :  { %3944 = vperm.xlu0 %4791, %v3785_v40  }
 0x502   :  { %v3763_v6 = vpop.f32.mrf.mxu0 }
 0x503   :  { %v3764_v60 = vadd.f32 %v6526_v61, %v3763_v6 }
 0x505   :  { %v3787_v22 = vmax.f32 %v3764_v60, 0.0 }
 0x507   :  { %4793 = vset.pattern.permute.xlu2 %v4825_v37  ;;  %3861 = vperm.xlu1 %4794, %v3787_v22  }
 0x508   :  { %3948 = vperm.xlu2 %4793, %v3786_v14   ;;  %4796 = vset.pattern.permute.xlu0 %v4820_v4 }
 0x509   :  { %v3807_v19 = vpop.permute.xlu2 %3806 }
 0x50a   :  { %v3766_v20 = vpop.f32.mrf.mxu0  ;;  %v3880_v29 = vmul.f32 %v3807_v19, %v6565_v30 }
 0x50b   :  { %v3767_v50 = vadd.f32 %v6526_v61, %v3766_v20 }
 0x50d   :  { %v3788_v45 = vmax.f32 %v3767_v50, 0.0 }
 0x50f   :  { %4795 = vset.pattern.permute.xlu1 %v4825_v37  ;;  %3866 = vperm.xlu0 %4796, %v3788_v45  }
 0x510   :  { %3952 = vperm.xlu1 %4795, %v3787_v22   ;;  %3956 = vperm.xlu2 %4793, %v3788_v45  }
 0x512   :  { %v3909_v8 = vpop.permute.xlu2 %3908  ;;  %v3769_v44 = vpop.f32.mrf.mxu0 }
 0x513   :  { %v3968_v0 = vmul.f32 %v3909_v8, %v6570_v31  ;;  %v3770_v10 = vadd.f32 %v6526_v61, %v3769_v44 }
 0x515   :  { %v3984_v36 = vadd.f32 %v3968_v0, %v3880_v29  ;;  %v3789_v62 = vmax.f32 %v3770_v10, 0.0 }
 0x517   :  { %4798 = vset.pattern.permute.xlu0 %v4825_v37 }
 0x518   :  { %4797 = vset.pattern.permute.xlu1 %v4820_v4  ;;  %3960 = vperm.xlu0 %4798, %v3789_v62  }
 0x519   :  { %v3802_v51 = vpop.permute.xlu1 %3801  ;;  %3871 = vperm.xlu1 %4797, %v3789_v62   ;;  %4799 = vset.pattern.permute.xlu2 %v4820_v4 }
 0x51a   :  { %v3772_v12 = vpop.f32.mrf.mxu0  ;;  %v3917_v56 = vpop.permute.xlu2 %3916 }
 0x51b   :  { %v3773_v34 = vadd.f32 %v6526_v61, %v3772_v12  ;;  %v3879_v61 = vmul.f32 %v3802_v51, %v6584_v27  ;;  %v3970_v16 = vmul.f32 %v3917_v56, %v3898_v24 }
 0x51d   :  { %v3790_v18 = vmax.f32 %v3773_v34, 0.0 }
 0x51f   :  { %3876 = vperm.xlu2 %4799, %v3790_v18  }
 0x520   :  { %4801 = vset.pattern.permute.xlu0 %v4820_v4  ;;  %v4000_v4 = vsel %vm1691_vm6, %v3984_v36, 0.0 }
 0x521   :  { %3836 = vperm.xlu0 %4801, %v3782_v21   ;;  %4802 = vset.pattern.permute.xlu1 %v4825_v37 }
 0x522   :  { %v3905_v9 = vpop.permute.xlu1 %3904  ;;  %3932 = vperm.xlu1 %4802, %v3782_v21   ;;  %v3899_v21 = vld [vmem:[%s6703_s10 + $0x20] sm:$0xff] }
 0x523   :  { %v3967_v17 = vmul.f32 %v3905_v9, %v3895_v11  ;;  %v6618_v25 = vpop.permute.xlu2 %3821 }
 0x525   :  { %v3983_v13 = vadd.f32 %v3967_v17, %v3879_v61 }
 0x527   :  { %v3999_v35 = vsel %vm1691_vm6, %v3983_v13, 0.0  ;;  %4800 = vset.pattern.permute.xlu2 %v4825_v37 }
 0x528   :  { %v4001_v41 = vadd.f32 %v4000_v4, %v3999_v35  ;;  %3964 = vperm.xlu2 %4800, %v3790_v18   ;;  %v3796_v35 = vld [vmem:[%s6702_s9 + $0x28] sm:$0xff] }
 0x529   :  { %4803 = vset.pattern.permute.xlu0 %v4825_v37  ;;  %v3793_v37 = vld [vmem:[%s6702_s9 + $0x10] sm:$0xff] }
 0x52b   :  { %v3812_v47 = vpop.permute.xlu1 %3811 }
 0x52c   :  { %v3881_v49 = vmul.f32 %v3812_v47, %v3793_v37  ;;  %v6623_v33 = vpop.permute.xlu2 %3924 }
 0x531   :  { %v3817_v28 = vpop.permute.xlu0 %3816 }
 0x532   :  { %v3882_v58 = vmul.f32 %v3817_v28, %v3794_v2  ;;  %v3900_v28 = vld [vmem:[%s6703_s10 + $0x28] sm:$0xff] }
 0x534   :  { %v3913_v54 = vpop.permute.xlu1 %3912  ;;  %v3986_v42 = vadd.f32 %v3970_v16, %v3882_v58  ;;  %v3798_v16 = vld [vmem:[%s6702_s9 + $0x38] sm:$0xff] }
 0x535   :  { %v3969_v63 = vmul.f32 %v3913_v54, %v3897_v38 }
 0x536   :  { %v4004_v48 = vsel %vm1691_vm6, %v3986_v42, 0.0 }
 0x537   :  { %v3985_v39 = vadd.f32 %v3969_v63, %v3881_v49  ;;  %v3901_v63 = vld [vmem:[%s6703_s10 + $0x30] sm:$0xff] }
 0x539   :  { %v4002_v1 = vsel %vm1691_vm6, %v3985_v39, 0.0 }
 0x53a   :  { %v4003_v55 = vadd.f32 %v4002_v1, %v4001_v41 }
 0x53c   :  { %v6616_v3 = vadd.f32 %v4004_v48, %v4003_v55  ;;  %v3921_v59 = vpop.permute.xlu1 %3920 }
 0x53d   :  { %v3971_v54 = vmul.f32 %v3921_v59, %v3899_v21 }
 0x541   :  { %v3842_v46 = vpop.permute.xlu2 %3841  ;;  %v3827_v40 = vpop.permute.xlu0 %3826 }
 0x542   :  { %v3887_v0 = vmul.f32 %v3842_v46, %v6584_v27  ;;  %v3884_v48 = vmul.f32 %v3827_v40, %v3796_v35 }
 0x549   :  { %v6631_v15 = vpop.permute.xlu1 %3831 }
 0x54a   :  { %v3941_v57 = vpop.permute.xlu2 %3940 }
 0x54b   :  { %v3976_v8 = vmul.f32 %v3941_v57, %v6570_v31  ;;  %v3795_v31 = vld [vmem:[%s6702_s9 + $0x20] sm:$0xff] }
 0x54c   :  { %v3883_v55 = vmul.f32 %v6618_v25, %v3795_v31 }
 0x552   :  { %v3929_v6 = vpop.permute.xlu1 %3928 }
 0x559   :  { %v3857_v23 = vpop.permute.xlu2 %3856 }
 0x55a   :  { %v3937_v19 = vpop.permute.xlu1 %3936  ;;  %v3890_v27 = vmul.f32 %v3857_v23, %v3794_v2  ;;  %v4049_v2 = vld [vmem:[%s6701_s12] sm:$0xff]  ;;  %v3972_v23 = vmul.f32 %v6623_v33, %v3900_v28 }
 0x55b   :  { %v3975_v44 = vmul.f32 %v3937_v19, %v3895_v11  ;;  %4083 = vmatpush.msra.mxu1 %v4049_v2 }
 0x55d   :  { %v3991_v51 = vadd.f32 %v3975_v44, %v3887_v0 }
 0x55f   :  { %v4020_v11 = vsel %vm1691_vm6, %v3991_v51, 0.0 }
 0x561   :  { %v3847_v14 = vpop.permute.xlu0 %3846 }
 0x562   :  { %v3949_v60 = vpop.permute.xlu2 %3948  ;;  %v3888_v45 = vmul.f32 %v3847_v14, %v6565_v30  ;;  %v3987_v14 = vadd.f32 %v3971_v54, %v3883_v55 }
 0x563   :  { %v3978_v18 = vmul.f32 %v3949_v60, %v3898_v24  ;;  %v3902_v24 = vld [vmem:[%s6703_s10 + $0x38] sm:$0xff]  ;;  %v3973_v60 = vmul.f32 %v3929_v6, %v3901_v63 }
 0x564   :  { %v3992_v10 = vadd.f32 %v3976_v8, %v3888_v45  ;;  %v4006_v8 = vsel %vm1691_vm6, %v3987_v14, 0.0 }
 0x565   :  { %v3994_v4 = vadd.f32 %v3978_v18, %v3890_v27 }
 0x566   :  { %v4021_v34 = vsel %vm1691_vm6, %v3992_v10, 0.0 }
 0x567   :  { %v4022_v61 = vadd.f32 %v4021_v34, %v4020_v11 }
 0x569   :  { %v3852_v22 = vpop.permute.xlu0 %3851 }
 0x56a   :  { %v3957_v20 = vpop.permute.xlu2 %3956  ;;  %v3889_v36 = vmul.f32 %v3852_v22, %v3793_v37  ;;  %v4025_v37 = vsel %vm1691_vm6, %v3994_v4, 0.0  ;;  %v19_v22 = vstv %s6705_s13 }
 0x56b   :  { %20 = vst [vmem:[#allocation4] sm:$0x1] %v19_v22 }
 0x572   :  { %v3945_v50 = vpop.permute.xlu0 %3944 }
 0x573   :  { %v3977_v29 = vmul.f32 %v3945_v50, %v3897_v38  ;;  %v3980_v38 = vmul.f32 %v3957_v20, %v3900_v28  ;;  %v3988_v20 = vadd.f32 %v3972_v23, %v3884_v48  ;;  %v3885_v50 = vmul.f32 %v6631_v15, %v3797_v43 }
 0x575   :  { %v3993_v12 = vadd.f32 %v3977_v29, %v3889_v36  ;;  %v3989_v33 = vadd.f32 %v3973_v60, %v3885_v50  ;;  %v4008_v29 = vsel %vm1691_vm6, %v3988_v20, 0.0  ;;  %v4007_v36 = vadd.f32 %v4006_v8, %v6616_v3  ;;  %v4808_v3 = vld [vmem:[%s6704_s11] ss:$0 sm:$0xff] }
 0x577   :  { %v4023_v9 = vsel %vm1691_vm6, %v3993_v12, 0.0  ;;  %v4010_v12 = vsel %vm1691_vm6, %v3989_v33, 0.0  ;;  %v4009_v34 = vadd.f32 %v4008_v29, %v4007_v36 }
 0x578   :  { %v4024_v41 = vadd.f32 %v4023_v9, %v4022_v61 }
 0x579   :  { %v3862_v32 = vpop.permute.xlu1 %3861  ;;  %v3877_v62 = vpop.permute.xlu2 %3876 }
 0x57a   :  { %v3891_v17 = vmul.f32 %v3862_v32, %v3795_v31  ;;  %v4026_v49 = vadd.f32 %v4025_v37, %v4024_v41  ;;  %v3894_v57 = vmul.f32 %v3877_v62, %v3798_v16  ;;  %v4011_v31 = vadd.f32 %v4010_v12, %v4009_v34 }
 0x581   :  { %v3867_v30 = vpop.permute.xlu0 %3866 }
 0x582   :  { %v3953_v26 = vpop.permute.xlu1 %3952  ;;  %v3892_v7 = vmul.f32 %v3867_v30, %v3796_v35  ;;  %v3965_v56 = vpop.permute.xlu2 %3964 }
 0x583   :  { %v3979_v13 = vmul.f32 %v3953_v26, %v3899_v21  ;;  %v3982_v39 = vmul.f32 %v3965_v56, %v3902_v24 }
 0x584   :  { %v3996_v42 = vadd.f32 %v3980_v38, %v3892_v7  ;;  %v4809_v38 = vld [vmem:[#allocation4] ss:$0 sm:$0xff] }
 0x585   :  { %v3995_v47 = vadd.f32 %v3979_v13, %v3891_v17  ;;  %v3998_v40 = vadd.f32 %v3982_v39, %v3894_v57 }
 0x586   :  { %v4029_v25 = vsel %vm1691_vm6, %v3996_v42, 0.0 }
 0x587   :  { %v4027_v58 = vsel %vm1691_vm6, %v3995_v47, 0.0  ;;  %v4033_v6 = vsel %vm1691_vm6, %v3998_v40, 0.0 }
 0x588   :  { %v4028_v52 = vadd.f32 %v4027_v58, %v4026_v49 }
 0x58a   :  { %v3961_v1 = vpop.permute.xlu0 %3960  ;;  %v4030_v45 = vadd.f32 %v4029_v25, %v4028_v52 }
 0x58b   :  { %v3981_v46 = vmul.f32 %v3961_v1, %v3901_v63  ;;  %v3872_v59 = vpop.permute.xlu1 %3871 }
 0x58c   :  { %v3893_v5 = vmul.f32 %v3872_v59, %v3797_v43 }
 0x58e   :  { %v3997_v19 = vadd.f32 %v3981_v46, %v3893_v5 }
 0x590   :  { %v4031_v32 = vsel %vm1691_vm6, %v3997_v19, 0.0 }
 0x591   :  { %v4032_v44 = vadd.f32 %v4031_v32, %v4030_v45 }
 0x593   :  { %v4034_v0 = vadd.f32 %v4033_v6, %v4032_v44  ;;  %v3837_v10 = vpop.permute.xlu0 %3836 }
 0x594   :  { %v3886_v62 = vmul.f32 %v3837_v10, %v3798_v16  ;;  %v3933_v51 = vpop.permute.xlu1 %3932 }
 0x595   :  { %v4035_v15 = vrot.slane %v4034_v0, 4  ;;  %v3974_v53 = vmul.f32 %v3933_v51, %v3902_v24 }
 0x597   :  { %v4036_v18 = vadd.f32 %v4035_v15, %v4034_v0  ;;  %v3990_v30 = vadd.f32 %v3974_v53, %v3886_v62 }
 0x599   :  { %v4037_v21 = vrot.slane %v4036_v18, 2  ;;  %v4012_v27 = vsel %vm1691_vm6, %v3990_v30, 0.0 }
 0x59a   :  { %v4013_v11 = vadd.f32 %v4012_v27, %v4011_v31 }
 0x59b   :  { %v4038_v9 = vadd.f32 %v4037_v21, %v4036_v18 }
 0x59c   :  { %v4014_v26 = vrot.slane %v4013_v11, 4 }
 0x59d   :  { %v4039_v61 = vrot.slane %v4038_v9, 1 }
 0x59e   :  { %v4015_v17 = vadd.f32 %v4014_v26, %v4013_v11 }
 0x59f   :  { %v4040_v13 = vadd.f32 %v4039_v61, %v4038_v9 }
 0x5a0   :  { %v4016_v4 = vrot.slane %v4015_v17, 2 }
 0x5a1   :  { %v4046_v41 = vadd.f32 %v4808_v3, %v4040_v13 }
 0x5a2   :  { %v4017_v35 = vadd.f32 %v4016_v4, %v4015_v17 }
 0x5a3   :  { %v4048_v2 = vmax.f32 %v4046_v41, 0.0 }
 0x5a4   :  { %v4018_v47 = vrot.slane %v4017_v35, 1 }
 0x5a5   :  { %v4063_v56 = vrot.slane %v4048_v2, 7 }
 0x5a6   :  { %v4019_v7 = vadd.f32 %v4018_v47, %v4017_v35 }
 0x5a8   :  { %v4045_v28 = vadd.f32 %v4808_v3, %v4019_v7 }
 0x5aa   :  { %v4047_v24 = vmax.f32 %v4045_v28, 0.0 }
 0x5ac   :  { %v4065_v37 = vsel %vm4064_vm4, %v4063_v56, %v4047_v24 }
 0x5ad   :  { %4663 = vmatmul.msk.f32.vlgmr.msra.gmra.mxu1 %vm1691_vm6, %v4065_v37 }
 0x62a   :  { %v4085_v58 = vpop.f32.mrf.mxu1 }
 0x62b   :  { %v4086_v54 = vadd.f32 %v4809_v38, %v4085_v58 }
 0x62d   :  { %4810 = vtanh.f32 %v4086_v54 }
 0x633   :  { %v4811_v16 = vpop.eup %4810 }
 0x634   :  { %4090 = vst.msk [vmem:[%s6706_s14] sm:$0x3] %vm4089_vm7, %v4811_v16 }

</bundles_post_ra>
